<compile_context>
chip_gen: v7x
topology: tpu7x:2x2x1
jax: 0.10.0
libtpu: 0.0.40
codegen_flags: <defaults>
</compile_context>

<pallas_src>
import functools

import numpy as np

import jax
import jax.numpy as jnp
from jax.experimental import pallas as pl
from jax.experimental.pallas import tpu as pltpu


# ----------------------------------------------------------------------------
# Host-side (trace-time) helper: per-layer "tap" table.
#   taps[t, m] = flattened input column that feeds output column m through
#                kernel offset t = i*K + j, or -1 if that tap lands in the
#                zero padding.
# Columns are ordered m = n*(OH*OW) + oh*OW + ow, matching the channel-major
# [C, N*H*W] layout used for every activation inside the kernel.
# ----------------------------------------------------------------------------
def _conv_tap_table(N, H, W, OH, OW, K, S, PAD):
    n = np.repeat(np.arange(N), OH * OW)
    oh = np.tile(np.repeat(np.arange(OH), OW), N)
    ow = np.tile(np.arange(OW), N * OH)
    rows = []
    for i in range(K):
        for j in range(K):
            h = S * oh + i - PAD
            w = S * ow + j - PAD
            valid = (h >= 0) & (h < H) & (w >= 0) & (w < W)
            rows.append(np.where(valid, n * (H * W) + h * W + w, -1))
    return np.stack(rows).astype(np.int32)            # [K*K, N*OH*OW]


# ----------------------------------------------------------------------------
# Fused Pallas kernel: the ENTIRE forward pass in one launch.
# Per layer (refs): w [K*K, OC, C], b [OC, 1], taps [K*K, M] (int32).
# Activation layout everywhere: a[c, m] with m = flattened (n, h, w).
# ----------------------------------------------------------------------------
def _build_fused_kernel(lrelu_flags, neg_slope=0.2):

    def kernel(x_ref, *refs):
        *param_refs, o_ref = refs
        a = x_ref[...]                                      # [C0, P0] f32
        for li, pre_lrelu in enumerate(lrelu_flags):
            w_ref = param_refs[3 * li]                      # [K*K, OC, C]
            b_ref = param_refs[3 * li + 1]                  # [OC, 1]
            tap_ref = param_refs[3 * li + 2]                # [K*K, M] int32

            if pre_lrelu:
                a = jnp.where(a >= 0, a, neg_slope * a)     # LeakyReLU(0.2)

            P = a.shape[1]                                  # input columns
            KK, M = tap_ref.shape                           # taps, output cols
            OC = w_ref.shape[1]

            # Row-index map, built once per layer and reused by all taps.
            p_row = jax.lax.broadcasted_iota(jnp.int32, (P, M), 0)

            acc = jnp.zeros((OC, M), dtype=jnp.float32)
            for t in range(KK):
                tgt = tap_ref[t:t + 1, :]                   # [1, M]
                # gather-as-matmul: one-hot column selector; tap==-1 (zero
                # padding) never matches -> all-zero column -> contributes 0.
                sel = jnp.where(p_row == tgt, 1.0, 0.0)     # [P, M] f32
                x_t = jnp.dot(a, sel,
                              preferred_element_type=jnp.float32)       # [C, M]
                acc = acc + jnp.dot(w_ref[t], x_t,
                                    preferred_element_type=jnp.float32)  # [OC, M]
            a = acc + b_ref[...]                            # bias, lane-broadcast

        # Final Sigmoid (exp goes to the EUP; exact divide keeps 1e-5 check).
        a = 1.0 / (1.0 + jnp.exp(-a))
        o_ref[...] = a.astype(o_ref.dtype)

    return kernel


# ----------------------------------------------------------------------------
# Jitted wrapper: layout plumbing + one pallas_call.
# ----------------------------------------------------------------------------
@functools.partial(jax.jit, static_argnames=("layer_meta",))
def _fused_forward(x, params, layer_meta):
    """x: [N, C, H, W] f32.  params: tuple of (w [OC,IC,K,K], b [OC]).
    layer_meta (static): tuple of (ic, oc, k, s, p, pre_lrelu) per layer."""
    N, C0, H0, W0 = x.shape
    x2d = x.astype(jnp.float32).transpose(1, 0, 2, 3).reshape(C0, N * H0 * W0)

    kernel_inputs = [x2d]
    in_specs = [pl.BlockSpec((C0, N * H0 * W0), lambda i: (0, 0))]
    lrelu_flags = []

    c, h, w = C0, H0, W0
    for (ic, oc, k, s, p, pre_lrelu), (wgt, bias) in zip(layer_meta, params):
        assert ic == c, "layer channel mismatch"
        oh = (h + 2 * p - k) // s + 1
        ow = (w + 2 * p - k) // s + 1
        lrelu_flags.append(pre_lrelu)

        w_slabs = wgt.astype(jnp.float32).transpose(2, 3, 0, 1).reshape(k * k, oc, ic)
        b_col = bias.astype(jnp.float32).reshape(oc, 1)
        taps = jnp.asarray(_conv_tap_table(N, h, w, oh, ow, k, s, p))

        kernel_inputs += [w_slabs, b_col, taps]
        in_specs += [
            pl.BlockSpec((k * k, oc, ic), lambda i: (0, 0, 0)),
            pl.BlockSpec((oc, 1), lambda i: (0, 0)),
            pl.BlockSpec((k * k, N * oh * ow), lambda i: (0, 0)),
        ]
        c, h, w = oc, oh, ow

    oc_last, oh_last, ow_last = c, h, w
    m_last = N * oh_last * ow_last

    # NOTE: at these toy sizes a single full-array block (grid=(1,)) is best.
    # If the discriminator is scaled up, tile the M (=N*OH*OW) lane axis with a
    # real parallel grid and keep per-step blocks under v7x's 64 MiB VMEM.
    out = pl.pallas_call(
        _build_fused_kernel(tuple(lrelu_flags)),
        out_shape=jax.ShapeDtypeStruct((oc_last, m_last), jnp.float32),
        grid=(1,),
        in_specs=in_specs,
        out_specs=pl.BlockSpec((oc_last, m_last), lambda i: (0, 0)),
        compiler_params=pltpu.CompilerParams(
            dimension_semantics=("arbitrary",)),
    )(*kernel_inputs)

    # [OC_last, (n, oh, ow)] -> PyTorch NCHW flatten order, once, at the end.
    out = out.reshape(oc_last, N, oh_last, ow_last).transpose(1, 0, 2, 3)
    return out.reshape(-1)


# ----------------------------------------------------------------------------
# CNN_Disc equivalent
# ----------------------------------------------------------------------------
class CNNDiscPallas:
    def __init__(self, num_sec_layers, *layers_shapes, key):
        self.nc = num_sec_layers
        self.layer_shapes = tuple(tuple(int(v) for v in s) for s in layers_shapes)
        self.secured_layer_shapes = self.layer_shapes[:num_sec_layers]
        self.public_layer_shapes = self.layer_shapes[num_sec_layers:]

        # LeakyReLU(0.2) precedes every conv EXCEPT the first conv of each of
        # the two nn.Sequential groups (secured / public).
        flags = []
        for idx in range(len(self.layer_shapes)):
            if idx < self.nc:
                flags.append(idx > 0)
            else:
                flags.append((idx - self.nc) > 0)
        self.layer_meta = tuple(
            (ic, oc, k, s, p, bool(f))
            for (ic, oc, k, s, p), f in zip(self.layer_shapes, flags))

        # Deterministic PyTorch-like init: U(-1/sqrt(fan_in), 1/sqrt(fan_in)).
        params = []
        for (ic, oc, k, s, p) in self.layer_shapes:
            key, kw_, kb_ = jax.random.split(key, 3)
            bound = 1.0 / float(ic * k * k) ** 0.5
            wgt = jax.random.uniform(kw_, (oc, ic, k, k), jnp.float32,
                                     minval=-bound, maxval=bound)
            bias = jax.random.uniform(kb_, (oc,), jnp.float32,
                                      minval=-bound, maxval=bound)
            params.append((wgt, bias))
        self.params = tuple(params)

    def forward(self, x):
        return _fused_forward(x, self.params, layer_meta=self.layer_meta)

    # Pure-JAX reference (self-check only).
    def forward_ref(self, x):
        y = x
        for (ic, oc, k, s, p, pre_lrelu), (wgt, bias) in zip(self.layer_meta,
                                                             self.params):
            if pre_lrelu:
                y = jnp.where(y >= 0, y, 0.2 * y)
            y = jax.lax.conv_general_dilated(
                y, wgt, window_strides=(s, s), padding=((p, p), (p, p)),
                dimension_numbers=('NCHW', 'OIHW', 'NCHW'))
            y = y + bias.reshape(1, -1, 1, 1)
        y = jax.nn.sigmoid(y)
        return y.reshape(-1)


if __name__ == "__main__":
    key = jax.random.PRNGKey(0)
    k_x, k_params = jax.random.split(key)

    # 2 "secured" convs + 1 "public" conv:
    #   (4->8, k3, s2, p1), (8->8, k3, s2, p1), (8->1, k3, s1, p1)
    model = CNNDiscPallas(
        2,
        (4, 8, 3, 2, 1),
        (8, 8, 3, 2, 1),
        (8, 1, 3, 1, 1),
        key=k_params,
    )

    x = jax.random.normal(k_x, (2, 4, 16, 16), dtype=jnp.float32)

    out = jax.block_until_ready(model.forward(x))
    ref = jax.block_until_ready(model.forward_ref(x))

    assert out.shape == ref.shape == (2 * 1 * 4 * 4,)
    assert jnp.allclose(out, ref, atol=1e-5, rtol=1e-5), "mismatch vs reference"

    print("KERNEL_OK")
</pallas_src>

<mosaic_0001>
module attributes {stable_mosaic.version = 11 : i64} {
  func.func @kernel(%arg0: i32, %arg1: memref<4x512xf32, #tpu.memory_space<vmem>>, %arg2: memref<9x8x4xf32, #tpu.memory_space<vmem>>, %arg3: memref<8x1xf32, #tpu.memory_space<vmem>>, %arg4: memref<9x128xi32, #tpu.memory_space<vmem>>, %arg5: memref<9x8x8xf32, #tpu.memory_space<vmem>>, %arg6: memref<8x1xf32, #tpu.memory_space<vmem>>, %arg7: memref<9x32xi32, #tpu.memory_space<vmem>>, %arg8: memref<9x1x8xf32, #tpu.memory_space<vmem>>, %arg9: memref<1x1xf32, #tpu.memory_space<vmem>>, %arg10: memref<9x32xi32, #tpu.memory_space<vmem>>, %arg11: memref<1x32xf32, #tpu.memory_space<vmem>>) attributes {dimension_semantics = [#tpu.dimension_semantics<arbitrary>], iteration_bounds = array<i64: 1>, scalar_prefetch = 0 : i64, scratch_operands = 0 : i64, tpu.core_type = #tpu.core_type<tc>, window_params = [{pipeline_mode = #tpu.pipeline_mode<synchronous>, transform_indices = @transform_0, window_bounds = array<i64: 4, 512>}, {pipeline_mode = #tpu.pipeline_mode<synchronous>, transform_indices = @transform_1, window_bounds = array<i64: 9, 8, 4>}, {pipeline_mode = #tpu.pipeline_mode<synchronous>, transform_indices = @transform_2, window_bounds = array<i64: 8, 1>}, {pipeline_mode = #tpu.pipeline_mode<synchronous>, transform_indices = @transform_3, window_bounds = array<i64: 9, 128>}, {pipeline_mode = #tpu.pipeline_mode<synchronous>, transform_indices = @transform_4, window_bounds = array<i64: 9, 8, 8>}, {pipeline_mode = #tpu.pipeline_mode<synchronous>, transform_indices = @transform_5, window_bounds = array<i64: 8, 1>}, {pipeline_mode = #tpu.pipeline_mode<synchronous>, transform_indices = @transform_6, window_bounds = array<i64: 9, 32>}, {pipeline_mode = #tpu.pipeline_mode<synchronous>, transform_indices = @transform_7, window_bounds = array<i64: 9, 1, 8>}, {pipeline_mode = #tpu.pipeline_mode<synchronous>, transform_indices = @transform_8, window_bounds = array<i64: 1, 1>}, {pipeline_mode = #tpu.pipeline_mode<synchronous>, transform_indices = @transform_9, window_bounds = array<i64: 9, 32>}, {pipeline_mode = #tpu.pipeline_mode<synchronous>, transform_indices = @transform_10, window_bounds = array<i64: 1, 32>}]} {
    %c0 = arith.constant 0 : index
    %c0_0 = arith.constant 0 : index
    %0 = vector.load %arg1[%c0, %c0_0] : memref<4x512xf32, #tpu.memory_space<vmem>>, vector<4x512xf32>
    %1 = tpu.iota {dimensions = array<i32: 0>} : vector<512x128xi32>
    %cst = arith.constant 0.000000e+00 : f32
    %2 = vector.broadcast %cst : f32 to vector<8x128xf32>
    %c0_1 = arith.constant 0 : index
    %c0_2 = arith.constant 0 : index
    %3 = vector.load %arg4[%c0_1, %c0_2] : memref<9x128xi32, #tpu.memory_space<vmem>>, vector<1x128xi32>
    %4 = vector.broadcast %3 : vector<1x128xi32> to vector<512x128xi32>
    %5 = arith.cmpi eq, %1, %4 : vector<512x128xi32>
    %cst_3 = arith.constant 1.000000e+00 : f32
    %cst_4 = arith.constant 0.000000e+00 : f32
    %6 = vector.broadcast %cst_3 : f32 to vector<512x128xf32>
    %7 = vector.broadcast %cst_4 : f32 to vector<512x128xf32>
    %8 = arith.select %5, %6, %7 : vector<512x128xi1>, vector<512x128xf32>
    %cst_5 = arith.constant dense<0.000000e+00> : vector<4x128xf32>
    %9 = tpu.matmul %0, %8, %cst_5 {dimension_numbers = #tpu.dot_dimension_numbers<[1], [0], [0], [1], [0, 0, 1, 1], [], []>} : vector<4x512xf32>, vector<512x128xf32>, vector<4x128xf32> -> vector<4x128xf32>
    %c0_6 = arith.constant 0 : index
    %c0_7 = arith.constant 0 : index
    %c0_8 = arith.constant 0 : index
    %10 = vector.load %arg2[%c0_6, %c0_7, %c0_8] : memref<9x8x4xf32, #tpu.memory_space<vmem>>, vector<1x8x4xf32>
    %11 = vector.shape_cast %10 : vector<1x8x4xf32> to vector<8x4xf32>
    %cst_9 = arith.constant dense<0.000000e+00> : vector<8x128xf32>
    %12 = tpu.matmul %11, %9, %cst_9 {dimension_numbers = #tpu.dot_dimension_numbers<[1], [0], [0], [1], [0, 0, 1, 1], [], []>} : vector<8x4xf32>, vector<4x128xf32>, vector<8x128xf32> -> vector<8x128xf32>
    %13 = arith.addf %2, %12 : vector<8x128xf32>
    %c1 = arith.constant 1 : index
    %c0_10 = arith.constant 0 : index
    %14 = vector.load %arg4[%c1, %c0_10] : memref<9x128xi32, #tpu.memory_space<vmem>>, vector<1x128xi32>
    %15 = vector.broadcast %14 : vector<1x128xi32> to vector<512x128xi32>
    %16 = arith.cmpi eq, %1, %15 : vector<512x128xi32>
    %cst_11 = arith.constant 1.000000e+00 : f32
    %cst_12 = arith.constant 0.000000e+00 : f32
    %17 = vector.broadcast %cst_11 : f32 to vector<512x128xf32>
    %18 = vector.broadcast %cst_12 : f32 to vector<512x128xf32>
    %19 = arith.select %16, %17, %18 : vector<512x128xi1>, vector<512x128xf32>
    %cst_13 = arith.constant dense<0.000000e+00> : vector<4x128xf32>
    %20 = tpu.matmul %0, %19, %cst_13 {dimension_numbers = #tpu.dot_dimension_numbers<[1], [0], [0], [1], [0, 0, 1, 1], [], []>} : vector<4x512xf32>, vector<512x128xf32>, vector<4x128xf32> -> vector<4x128xf32>
    %c1_14 = arith.constant 1 : index
    %c0_15 = arith.constant 0 : index
    %c0_16 = arith.constant 0 : index
    %21 = vector.load %arg2[%c1_14, %c0_15, %c0_16] : memref<9x8x4xf32, #tpu.memory_space<vmem>>, vector<1x8x4xf32>
    %22 = vector.shape_cast %21 : vector<1x8x4xf32> to vector<8x4xf32>
    %cst_17 = arith.constant dense<0.000000e+00> : vector<8x128xf32>
    %23 = tpu.matmul %22, %20, %cst_17 {dimension_numbers = #tpu.dot_dimension_numbers<[1], [0], [0], [1], [0, 0, 1, 1], [], []>} : vector<8x4xf32>, vector<4x128xf32>, vector<8x128xf32> -> vector<8x128xf32>
    %24 = arith.addf %13, %23 : vector<8x128xf32>
    %c2 = arith.constant 2 : index
    %c0_18 = arith.constant 0 : index
    %25 = vector.load %arg4[%c2, %c0_18] : memref<9x128xi32, #tpu.memory_space<vmem>>, vector<1x128xi32>
    %26 = vector.broadcast %25 : vector<1x128xi32> to vector<512x128xi32>
    %27 = arith.cmpi eq, %1, %26 : vector<512x128xi32>
    %cst_19 = arith.constant 1.000000e+00 : f32
    %cst_20 = arith.constant 0.000000e+00 : f32
    %28 = vector.broadcast %cst_19 : f32 to vector<512x128xf32>
    %29 = vector.broadcast %cst_20 : f32 to vector<512x128xf32>
    %30 = arith.select %27, %28, %29 : vector<512x128xi1>, vector<512x128xf32>
    %cst_21 = arith.constant dense<0.000000e+00> : vector<4x128xf32>
    %31 = tpu.matmul %0, %30, %cst_21 {dimension_numbers = #tpu.dot_dimension_numbers<[1], [0], [0], [1], [0, 0, 1, 1], [], []>} : vector<4x512xf32>, vector<512x128xf32>, vector<4x128xf32> -> vector<4x128xf32>
    %c2_22 = arith.constant 2 : index
    %c0_23 = arith.constant 0 : index
    %c0_24 = arith.constant 0 : index
    %32 = vector.load %arg2[%c2_22, %c0_23, %c0_24] : memref<9x8x4xf32, #tpu.memory_space<vmem>>, vector<1x8x4xf32>
    %33 = vector.shape_cast %32 : vector<1x8x4xf32> to vector<8x4xf32>
    %cst_25 = arith.constant dense<0.000000e+00> : vector<8x128xf32>
    %34 = tpu.matmul %33, %31, %cst_25 {dimension_numbers = #tpu.dot_dimension_numbers<[1], [0], [0], [1], [0, 0, 1, 1], [], []>} : vector<8x4xf32>, vector<4x128xf32>, vector<8x128xf32> -> vector<8x128xf32>
    %35 = arith.addf %24, %34 : vector<8x128xf32>
    %c3 = arith.constant 3 : index
    %c0_26 = arith.constant 0 : index
    %36 = vector.load %arg4[%c3, %c0_26] : memref<9x128xi32, #tpu.memory_space<vmem>>, vector<1x128xi32>
    %37 = vector.broadcast %36 : vector<1x128xi32> to vector<512x128xi32>
    %38 = arith.cmpi eq, %1, %37 : vector<512x128xi32>
    %cst_27 = arith.constant 1.000000e+00 : f32
    %cst_28 = arith.constant 0.000000e+00 : f32
    %39 = vector.broadcast %cst_27 : f32 to vector<512x128xf32>
    %40 = vector.broadcast %cst_28 : f32 to vector<512x128xf32>
    %41 = arith.select %38, %39, %40 : vector<512x128xi1>, vector<512x128xf32>
    %cst_29 = arith.constant dense<0.000000e+00> : vector<4x128xf32>
    %42 = tpu.matmul %0, %41, %cst_29 {dimension_numbers = #tpu.dot_dimension_numbers<[1], [0], [0], [1], [0, 0, 1, 1], [], []>} : vector<4x512xf32>, vector<512x128xf32>, vector<4x128xf32> -> vector<4x128xf32>
    %c3_30 = arith.constant 3 : index
    %c0_31 = arith.constant 0 : index
    %c0_32 = arith.constant 0 : index
    %43 = vector.load %arg2[%c3_30, %c0_31, %c0_32] : memref<9x8x4xf32, #tpu.memory_space<vmem>>, vector<1x8x4xf32>
    %44 = vector.shape_cast %43 : vector<1x8x4xf32> to vector<8x4xf32>
    %cst_33 = arith.constant dense<0.000000e+00> : vector<8x128xf32>
    %45 = tpu.matmul %44, %42, %cst_33 {dimension_numbers = #tpu.dot_dimension_numbers<[1], [0], [0], [1], [0, 0, 1, 1], [], []>} : vector<8x4xf32>, vector<4x128xf32>, vector<8x128xf32> -> vector<8x128xf32>
    %46 = arith.addf %35, %45 : vector<8x128xf32>
    %c4 = arith.constant 4 : index
    %c0_34 = arith.constant 0 : index
    %47 = vector.load %arg4[%c4, %c0_34] : memref<9x128xi32, #tpu.memory_space<vmem>>, vector<1x128xi32>
    %48 = vector.broadcast %47 : vector<1x128xi32> to vector<512x128xi32>
    %49 = arith.cmpi eq, %1, %48 : vector<512x128xi32>
    %cst_35 = arith.constant 1.000000e+00 : f32
    %cst_36 = arith.constant 0.000000e+00 : f32
    %50 = vector.broadcast %cst_35 : f32 to vector<512x128xf32>
    %51 = vector.broadcast %cst_36 : f32 to vector<512x128xf32>
    %52 = arith.select %49, %50, %51 : vector<512x128xi1>, vector<512x128xf32>
    %cst_37 = arith.constant dense<0.000000e+00> : vector<4x128xf32>
    %53 = tpu.matmul %0, %52, %cst_37 {dimension_numbers = #tpu.dot_dimension_numbers<[1], [0], [0], [1], [0, 0, 1, 1], [], []>} : vector<4x512xf32>, vector<512x128xf32>, vector<4x128xf32> -> vector<4x128xf32>
    %c4_38 = arith.constant 4 : index
    %c0_39 = arith.constant 0 : index
    %c0_40 = arith.constant 0 : index
    %54 = vector.load %arg2[%c4_38, %c0_39, %c0_40] : memref<9x8x4xf32, #tpu.memory_space<vmem>>, vector<1x8x4xf32>
    %55 = vector.shape_cast %54 : vector<1x8x4xf32> to vector<8x4xf32>
    %cst_41 = arith.constant dense<0.000000e+00> : vector<8x128xf32>
    %56 = tpu.matmul %55, %53, %cst_41 {dimension_numbers = #tpu.dot_dimension_numbers<[1], [0], [0], [1], [0, 0, 1, 1], [], []>} : vector<8x4xf32>, vector<4x128xf32>, vector<8x128xf32> -> vector<8x128xf32>
    %57 = arith.addf %46, %56 : vector<8x128xf32>
    %c5 = arith.constant 5 : index
    %c0_42 = arith.constant 0 : index
    %58 = vector.load %arg4[%c5, %c0_42] : memref<9x128xi32, #tpu.memory_space<vmem>>, vector<1x128xi32>
    %59 = vector.broadcast %58 : vector<1x128xi32> to vector<512x128xi32>
    %60 = arith.cmpi eq, %1, %59 : vector<512x128xi32>
    %cst_43 = arith.constant 1.000000e+00 : f32
    %cst_44 = arith.constant 0.000000e+00 : f32
    %61 = vector.broadcast %cst_43 : f32 to vector<512x128xf32>
    %62 = vector.broadcast %cst_44 : f32 to vector<512x128xf32>
    %63 = arith.select %60, %61, %62 : vector<512x128xi1>, vector<512x128xf32>
    %cst_45 = arith.constant dense<0.000000e+00> : vector<4x128xf32>
    %64 = tpu.matmul %0, %63, %cst_45 {dimension_numbers = #tpu.dot_dimension_numbers<[1], [0], [0], [1], [0, 0, 1, 1], [], []>} : vector<4x512xf32>, vector<512x128xf32>, vector<4x128xf32> -> vector<4x128xf32>
    %c5_46 = arith.constant 5 : index
    %c0_47 = arith.constant 0 : index
    %c0_48 = arith.constant 0 : index
    %65 = vector.load %arg2[%c5_46, %c0_47, %c0_48] : memref<9x8x4xf32, #tpu.memory_space<vmem>>, vector<1x8x4xf32>
    %66 = vector.shape_cast %65 : vector<1x8x4xf32> to vector<8x4xf32>
    %cst_49 = arith.constant dense<0.000000e+00> : vector<8x128xf32>
    %67 = tpu.matmul %66, %64, %cst_49 {dimension_numbers = #tpu.dot_dimension_numbers<[1], [0], [0], [1], [0, 0, 1, 1], [], []>} : vector<8x4xf32>, vector<4x128xf32>, vector<8x128xf32> -> vector<8x128xf32>
    %68 = arith.addf %57, %67 : vector<8x128xf32>
    %c6 = arith.constant 6 : index
    %c0_50 = arith.constant 0 : index
    %69 = vector.load %arg4[%c6, %c0_50] : memref<9x128xi32, #tpu.memory_space<vmem>>, vector<1x128xi32>
    %70 = vector.broadcast %69 : vector<1x128xi32> to vector<512x128xi32>
    %71 = arith.cmpi eq, %1, %70 : vector<512x128xi32>
    %cst_51 = arith.constant 1.000000e+00 : f32
    %cst_52 = arith.constant 0.000000e+00 : f32
    %72 = vector.broadcast %cst_51 : f32 to vector<512x128xf32>
    %73 = vector.broadcast %cst_52 : f32 to vector<512x128xf32>
    %74 = arith.select %71, %72, %73 : vector<512x128xi1>, vector<512x128xf32>
    %cst_53 = arith.constant dense<0.000000e+00> : vector<4x128xf32>
    %75 = tpu.matmul %0, %74, %cst_53 {dimension_numbers = #tpu.dot_dimension_numbers<[1], [0], [0], [1], [0, 0, 1, 1], [], []>} : vector<4x512xf32>, vector<512x128xf32>, vector<4x128xf32> -> vector<4x128xf32>
    %c6_54 = arith.constant 6 : index
    %c0_55 = arith.constant 0 : index
    %c0_56 = arith.constant 0 : index
    %76 = vector.load %arg2[%c6_54, %c0_55, %c0_56] : memref<9x8x4xf32, #tpu.memory_space<vmem>>, vector<1x8x4xf32>
    %77 = vector.shape_cast %76 : vector<1x8x4xf32> to vector<8x4xf32>
    %cst_57 = arith.constant dense<0.000000e+00> : vector<8x128xf32>
    %78 = tpu.matmul %77, %75, %cst_57 {dimension_numbers = #tpu.dot_dimension_numbers<[1], [0], [0], [1], [0, 0, 1, 1], [], []>} : vector<8x4xf32>, vector<4x128xf32>, vector<8x128xf32> -> vector<8x128xf32>
    %79 = arith.addf %68, %78 : vector<8x128xf32>
    %c7 = arith.constant 7 : index
    %c0_58 = arith.constant 0 : index
    %80 = vector.load %arg4[%c7, %c0_58] : memref<9x128xi32, #tpu.memory_space<vmem>>, vector<1x128xi32>
    %81 = vector.broadcast %80 : vector<1x128xi32> to vector<512x128xi32>
    %82 = arith.cmpi eq, %1, %81 : vector<512x128xi32>
    %cst_59 = arith.constant 1.000000e+00 : f32
    %cst_60 = arith.constant 0.000000e+00 : f32
    %83 = vector.broadcast %cst_59 : f32 to vector<512x128xf32>
    %84 = vector.broadcast %cst_60 : f32 to vector<512x128xf32>
    %85 = arith.select %82, %83, %84 : vector<512x128xi1>, vector<512x128xf32>
    %cst_61 = arith.constant dense<0.000000e+00> : vector<4x128xf32>
    %86 = tpu.matmul %0, %85, %cst_61 {dimension_numbers = #tpu.dot_dimension_numbers<[1], [0], [0], [1], [0, 0, 1, 1], [], []>} : vector<4x512xf32>, vector<512x128xf32>, vector<4x128xf32> -> vector<4x128xf32>
    %c7_62 = arith.constant 7 : index
    %c0_63 = arith.constant 0 : index
    %c0_64 = arith.constant 0 : index
    %87 = vector.load %arg2[%c7_62, %c0_63, %c0_64] : memref<9x8x4xf32, #tpu.memory_space<vmem>>, vector<1x8x4xf32>
    %88 = vector.shape_cast %87 : vector<1x8x4xf32> to vector<8x4xf32>
    %cst_65 = arith.constant dense<0.000000e+00> : vector<8x128xf32>
    %89 = tpu.matmul %88, %86, %cst_65 {dimension_numbers = #tpu.dot_dimension_numbers<[1], [0], [0], [1], [0, 0, 1, 1], [], []>} : vector<8x4xf32>, vector<4x128xf32>, vector<8x128xf32> -> vector<8x128xf32>
    %90 = arith.addf %79, %89 : vector<8x128xf32>
    %c8 = arith.constant 8 : index
    %c0_66 = arith.constant 0 : index
    %91 = vector.load %arg4[%c8, %c0_66] : memref<9x128xi32, #tpu.memory_space<vmem>>, vector<1x128xi32>
    %92 = vector.broadcast %91 : vector<1x128xi32> to vector<512x128xi32>
    %93 = arith.cmpi eq, %1, %92 : vector<512x128xi32>
    %cst_67 = arith.constant 1.000000e+00 : f32
    %cst_68 = arith.constant 0.000000e+00 : f32
    %94 = vector.broadcast %cst_67 : f32 to vector<512x128xf32>
    %95 = vector.broadcast %cst_68 : f32 to vector<512x128xf32>
    %96 = arith.select %93, %94, %95 : vector<512x128xi1>, vector<512x128xf32>
    %cst_69 = arith.constant dense<0.000000e+00> : vector<4x128xf32>
    %97 = tpu.matmul %0, %96, %cst_69 {dimension_numbers = #tpu.dot_dimension_numbers<[1], [0], [0], [1], [0, 0, 1, 1], [], []>} : vector<4x512xf32>, vector<512x128xf32>, vector<4x128xf32> -> vector<4x128xf32>
    %c8_70 = arith.constant 8 : index
    %c0_71 = arith.constant 0 : index
    %c0_72 = arith.constant 0 : index
    %98 = vector.load %arg2[%c8_70, %c0_71, %c0_72] : memref<9x8x4xf32, #tpu.memory_space<vmem>>, vector<1x8x4xf32>
    %99 = vector.shape_cast %98 : vector<1x8x4xf32> to vector<8x4xf32>
    %cst_73 = arith.constant dense<0.000000e+00> : vector<8x128xf32>
    %100 = tpu.matmul %99, %97, %cst_73 {dimension_numbers = #tpu.dot_dimension_numbers<[1], [0], [0], [1], [0, 0, 1, 1], [], []>} : vector<8x4xf32>, vector<4x128xf32>, vector<8x128xf32> -> vector<8x128xf32>
    %101 = arith.addf %90, %100 : vector<8x128xf32>
    %c0_74 = arith.constant 0 : index
    %c0_75 = arith.constant 0 : index
    %102 = vector.load %arg3[%c0_74, %c0_75] : memref<8x1xf32, #tpu.memory_space<vmem>>, vector<8x1xf32>
    %103 = vector.broadcast %102 : vector<8x1xf32> to vector<8x128xf32>
    %104 = arith.addf %101, %103 : vector<8x128xf32>
    %cst_76 = arith.constant 0.000000e+00 : f32
    %105 = vector.broadcast %cst_76 : f32 to vector<8x128xf32>
    %106 = arith.cmpf oge, %104, %105 : vector<8x128xf32>
    %cst_77 = arith.constant 2.000000e-01 : f32
    %107 = vector.broadcast %cst_77 : f32 to vector<8x128xf32>
    %108 = arith.mulf %107, %104 : vector<8x128xf32>
    %109 = arith.select %106, %104, %108 : vector<8x128xi1>, vector<8x128xf32>
    %110 = tpu.iota {dimensions = array<i32: 0>} : vector<128x32xi32>
    %cst_78 = arith.constant 0.000000e+00 : f32
    %111 = vector.broadcast %cst_78 : f32 to vector<8x32xf32>
    %c0_79 = arith.constant 0 : index
    %c0_80 = arith.constant 0 : index
    %112 = vector.load %arg7[%c0_79, %c0_80] : memref<9x32xi32, #tpu.memory_space<vmem>>, vector<1x32xi32>
    %113 = vector.broadcast %112 : vector<1x32xi32> to vector<128x32xi32>
    %114 = arith.cmpi eq, %110, %113 : vector<128x32xi32>
    %cst_81 = arith.constant 1.000000e+00 : f32
    %cst_82 = arith.constant 0.000000e+00 : f32
    %115 = vector.broadcast %cst_81 : f32 to vector<128x32xf32>
    %116 = vector.broadcast %cst_82 : f32 to vector<128x32xf32>
    %117 = arith.select %114, %115, %116 : vector<128x32xi1>, vector<128x32xf32>
    %cst_83 = arith.constant dense<0.000000e+00> : vector<8x32xf32>
    %118 = tpu.matmul %109, %117, %cst_83 {dimension_numbers = #tpu.dot_dimension_numbers<[1], [0], [0], [1], [0, 0, 1, 1], [], []>} : vector<8x128xf32>, vector<128x32xf32>, vector<8x32xf32> -> vector<8x32xf32>
    %c0_84 = arith.constant 0 : index
    %c0_85 = arith.constant 0 : index
    %c0_86 = arith.constant 0 : index
    %119 = vector.load %arg5[%c0_84, %c0_85, %c0_86] : memref<9x8x8xf32, #tpu.memory_space<vmem>>, vector<1x8x8xf32>
    %120 = vector.shape_cast %119 : vector<1x8x8xf32> to vector<8x8xf32>
    %cst_87 = arith.constant dense<0.000000e+00> : vector<8x32xf32>
    %121 = tpu.matmul %120, %118, %cst_87 {dimension_numbers = #tpu.dot_dimension_numbers<[1], [0], [0], [1], [0, 0, 1, 1], [], []>} : vector<8x8xf32>, vector<8x32xf32>, vector<8x32xf32> -> vector<8x32xf32>
    %122 = arith.addf %111, %121 : vector<8x32xf32>
    %c1_88 = arith.constant 1 : index
    %c0_89 = arith.constant 0 : index
    %123 = vector.load %arg7[%c1_88, %c0_89] : memref<9x32xi32, #tpu.memory_space<vmem>>, vector<1x32xi32>
    %124 = vector.broadcast %123 : vector<1x32xi32> to vector<128x32xi32>
    %125 = arith.cmpi eq, %110, %124 : vector<128x32xi32>
    %cst_90 = arith.constant 1.000000e+00 : f32
    %cst_91 = arith.constant 0.000000e+00 : f32
    %126 = vector.broadcast %cst_90 : f32 to vector<128x32xf32>
    %127 = vector.broadcast %cst_91 : f32 to vector<128x32xf32>
    %128 = arith.select %125, %126, %127 : vector<128x32xi1>, vector<128x32xf32>
    %cst_92 = arith.constant dense<0.000000e+00> : vector<8x32xf32>
    %129 = tpu.matmul %109, %128, %cst_92 {dimension_numbers = #tpu.dot_dimension_numbers<[1], [0], [0], [1], [0, 0, 1, 1], [], []>} : vector<8x128xf32>, vector<128x32xf32>, vector<8x32xf32> -> vector<8x32xf32>
    %c1_93 = arith.constant 1 : index
    %c0_94 = arith.constant 0 : index
    %c0_95 = arith.constant 0 : index
    %130 = vector.load %arg5[%c1_93, %c0_94, %c0_95] : memref<9x8x8xf32, #tpu.memory_space<vmem>>, vector<1x8x8xf32>
    %131 = vector.shape_cast %130 : vector<1x8x8xf32> to vector<8x8xf32>
    %cst_96 = arith.constant dense<0.000000e+00> : vector<8x32xf32>
    %132 = tpu.matmul %131, %129, %cst_96 {dimension_numbers = #tpu.dot_dimension_numbers<[1], [0], [0], [1], [0, 0, 1, 1], [], []>} : vector<8x8xf32>, vector<8x32xf32>, vector<8x32xf32> -> vector<8x32xf32>
    %133 = arith.addf %122, %132 : vector<8x32xf32>
    %c2_97 = arith.constant 2 : index
    %c0_98 = arith.constant 0 : index
    %134 = vector.load %arg7[%c2_97, %c0_98] : memref<9x32xi32, #tpu.memory_space<vmem>>, vector<1x32xi32>
    %135 = vector.broadcast %134 : vector<1x32xi32> to vector<128x32xi32>
    %136 = arith.cmpi eq, %110, %135 : vector<128x32xi32>
    %cst_99 = arith.constant 1.000000e+00 : f32
    %cst_100 = arith.constant 0.000000e+00 : f32
    %137 = vector.broadcast %cst_99 : f32 to vector<128x32xf32>
    %138 = vector.broadcast %cst_100 : f32 to vector<128x32xf32>
    %139 = arith.select %136, %137, %138 : vector<128x32xi1>, vector<128x32xf32>
    %cst_101 = arith.constant dense<0.000000e+00> : vector<8x32xf32>
    %140 = tpu.matmul %109, %139, %cst_101 {dimension_numbers = #tpu.dot_dimension_numbers<[1], [0], [0], [1], [0, 0, 1, 1], [], []>} : vector<8x128xf32>, vector<128x32xf32>, vector<8x32xf32> -> vector<8x32xf32>
    %c2_102 = arith.constant 2 : index
    %c0_103 = arith.constant 0 : index
    %c0_104 = arith.constant 0 : index
    %141 = vector.load %arg5[%c2_102, %c0_103, %c0_104] : memref<9x8x8xf32, #tpu.memory_space<vmem>>, vector<1x8x8xf32>
    %142 = vector.shape_cast %141 : vector<1x8x8xf32> to vector<8x8xf32>
    %cst_105 = arith.constant dense<0.000000e+00> : vector<8x32xf32>
    %143 = tpu.matmul %142, %140, %cst_105 {dimension_numbers = #tpu.dot_dimension_numbers<[1], [0], [0], [1], [0, 0, 1, 1], [], []>} : vector<8x8xf32>, vector<8x32xf32>, vector<8x32xf32> -> vector<8x32xf32>
    %144 = arith.addf %133, %143 : vector<8x32xf32>
    %c3_106 = arith.constant 3 : index
    %c0_107 = arith.constant 0 : index
    %145 = vector.load %arg7[%c3_106, %c0_107] : memref<9x32xi32, #tpu.memory_space<vmem>>, vector<1x32xi32>
    %146 = vector.broadcast %145 : vector<1x32xi32> to vector<128x32xi32>
    %147 = arith.cmpi eq, %110, %146 : vector<128x32xi32>
    %cst_108 = arith.constant 1.000000e+00 : f32
    %cst_109 = arith.constant 0.000000e+00 : f32
    %148 = vector.broadcast %cst_108 : f32 to vector<128x32xf32>
    %149 = vector.broadcast %cst_109 : f32 to vector<128x32xf32>
    %150 = arith.select %147, %148, %149 : vector<128x32xi1>, vector<128x32xf32>
    %cst_110 = arith.constant dense<0.000000e+00> : vector<8x32xf32>
    %151 = tpu.matmul %109, %150, %cst_110 {dimension_numbers = #tpu.dot_dimension_numbers<[1], [0], [0], [1], [0, 0, 1, 1], [], []>} : vector<8x128xf32>, vector<128x32xf32>, vector<8x32xf32> -> vector<8x32xf32>
    %c3_111 = arith.constant 3 : index
    %c0_112 = arith.constant 0 : index
    %c0_113 = arith.constant 0 : index
    %152 = vector.load %arg5[%c3_111, %c0_112, %c0_113] : memref<9x8x8xf32, #tpu.memory_space<vmem>>, vector<1x8x8xf32>
    %153 = vector.shape_cast %152 : vector<1x8x8xf32> to vector<8x8xf32>
    %cst_114 = arith.constant dense<0.000000e+00> : vector<8x32xf32>
    %154 = tpu.matmul %153, %151, %cst_114 {dimension_numbers = #tpu.dot_dimension_numbers<[1], [0], [0], [1], [0, 0, 1, 1], [], []>} : vector<8x8xf32>, vector<8x32xf32>, vector<8x32xf32> -> vector<8x32xf32>
    %155 = arith.addf %144, %154 : vector<8x32xf32>
    %c4_115 = arith.constant 4 : index
    %c0_116 = arith.constant 0 : index
    %156 = vector.load %arg7[%c4_115, %c0_116] : memref<9x32xi32, #tpu.memory_space<vmem>>, vector<1x32xi32>
    %157 = vector.broadcast %156 : vector<1x32xi32> to vector<128x32xi32>
    %158 = arith.cmpi eq, %110, %157 : vector<128x32xi32>
    %cst_117 = arith.constant 1.000000e+00 : f32
    %cst_118 = arith.constant 0.000000e+00 : f32
    %159 = vector.broadcast %cst_117 : f32 to vector<128x32xf32>
    %160 = vector.broadcast %cst_118 : f32 to vector<128x32xf32>
    %161 = arith.select %158, %159, %160 : vector<128x32xi1>, vector<128x32xf32>
    %cst_119 = arith.constant dense<0.000000e+00> : vector<8x32xf32>
    %162 = tpu.matmul %109, %161, %cst_119 {dimension_numbers = #tpu.dot_dimension_numbers<[1], [0], [0], [1], [0, 0, 1, 1], [], []>} : vector<8x128xf32>, vector<128x32xf32>, vector<8x32xf32> -> vector<8x32xf32>
    %c4_120 = arith.constant 4 : index
    %c0_121 = arith.constant 0 : index
    %c0_122 = arith.constant 0 : index
    %163 = vector.load %arg5[%c4_120, %c0_121, %c0_122] : memref<9x8x8xf32, #tpu.memory_space<vmem>>, vector<1x8x8xf32>
    %164 = vector.shape_cast %163 : vector<1x8x8xf32> to vector<8x8xf32>
    %cst_123 = arith.constant dense<0.000000e+00> : vector<8x32xf32>
    %165 = tpu.matmul %164, %162, %cst_123 {dimension_numbers = #tpu.dot_dimension_numbers<[1], [0], [0], [1], [0, 0, 1, 1], [], []>} : vector<8x8xf32>, vector<8x32xf32>, vector<8x32xf32> -> vector<8x32xf32>
    %166 = arith.addf %155, %165 : vector<8x32xf32>
    %c5_124 = arith.constant 5 : index
    %c0_125 = arith.constant 0 : index
    %167 = vector.load %arg7[%c5_124, %c0_125] : memref<9x32xi32, #tpu.memory_space<vmem>>, vector<1x32xi32>
    %168 = vector.broadcast %167 : vector<1x32xi32> to vector<128x32xi32>
    %169 = arith.cmpi eq, %110, %168 : vector<128x32xi32>
    %cst_126 = arith.constant 1.000000e+00 : f32
    %cst_127 = arith.constant 0.000000e+00 : f32
    %170 = vector.broadcast %cst_126 : f32 to vector<128x32xf32>
    %171 = vector.broadcast %cst_127 : f32 to vector<128x32xf32>
    %172 = arith.select %169, %170, %171 : vector<128x32xi1>, vector<128x32xf32>
    %cst_128 = arith.constant dense<0.000000e+00> : vector<8x32xf32>
    %173 = tpu.matmul %109, %172, %cst_128 {dimension_numbers = #tpu.dot_dimension_numbers<[1], [0], [0], [1], [0, 0, 1, 1], [], []>} : vector<8x128xf32>, vector<128x32xf32>, vector<8x32xf32> -> vector<8x32xf32>
    %c5_129 = arith.constant 5 : index
    %c0_130 = arith.constant 0 : index
    %c0_131 = arith.constant 0 : index
    %174 = vector.load %arg5[%c5_129, %c0_130, %c0_131] : memref<9x8x8xf32, #tpu.memory_space<vmem>>, vector<1x8x8xf32>
    %175 = vector.shape_cast %174 : vector<1x8x8xf32> to vector<8x8xf32>
    %cst_132 = arith.constant dense<0.000000e+00> : vector<8x32xf32>
    %176 = tpu.matmul %175, %173, %cst_132 {dimension_numbers = #tpu.dot_dimension_numbers<[1], [0], [0], [1], [0, 0, 1, 1], [], []>} : vector<8x8xf32>, vector<8x32xf32>, vector<8x32xf32> -> vector<8x32xf32>
    %177 = arith.addf %166, %176 : vector<8x32xf32>
    %c6_133 = arith.constant 6 : index
    %c0_134 = arith.constant 0 : index
    %178 = vector.load %arg7[%c6_133, %c0_134] : memref<9x32xi32, #tpu.memory_space<vmem>>, vector<1x32xi32>
    %179 = vector.broadcast %178 : vector<1x32xi32> to vector<128x32xi32>
    %180 = arith.cmpi eq, %110, %179 : vector<128x32xi32>
    %cst_135 = arith.constant 1.000000e+00 : f32
    %cst_136 = arith.constant 0.000000e+00 : f32
    %181 = vector.broadcast %cst_135 : f32 to vector<128x32xf32>
    %182 = vector.broadcast %cst_136 : f32 to vector<128x32xf32>
    %183 = arith.select %180, %181, %182 : vector<128x32xi1>, vector<128x32xf32>
    %cst_137 = arith.constant dense<0.000000e+00> : vector<8x32xf32>
    %184 = tpu.matmul %109, %183, %cst_137 {dimension_numbers = #tpu.dot_dimension_numbers<[1], [0], [0], [1], [0, 0, 1, 1], [], []>} : vector<8x128xf32>, vector<128x32xf32>, vector<8x32xf32> -> vector<8x32xf32>
    %c6_138 = arith.constant 6 : index
    %c0_139 = arith.constant 0 : index
    %c0_140 = arith.constant 0 : index
    %185 = vector.load %arg5[%c6_138, %c0_139, %c0_140] : memref<9x8x8xf32, #tpu.memory_space<vmem>>, vector<1x8x8xf32>
    %186 = vector.shape_cast %185 : vector<1x8x8xf32> to vector<8x8xf32>
    %cst_141 = arith.constant dense<0.000000e+00> : vector<8x32xf32>
    %187 = tpu.matmul %186, %184, %cst_141 {dimension_numbers = #tpu.dot_dimension_numbers<[1], [0], [0], [1], [0, 0, 1, 1], [], []>} : vector<8x8xf32>, vector<8x32xf32>, vector<8x32xf32> -> vector<8x32xf32>
    %188 = arith.addf %177, %187 : vector<8x32xf32>
    %c7_142 = arith.constant 7 : index
    %c0_143 = arith.constant 0 : index
    %189 = vector.load %arg7[%c7_142, %c0_143] : memref<9x32xi32, #tpu.memory_space<vmem>>, vector<1x32xi32>
    %190 = vector.broadcast %189 : vector<1x32xi32> to vector<128x32xi32>
    %191 = arith.cmpi eq, %110, %190 : vector<128x32xi32>
    %cst_144 = arith.constant 1.000000e+00 : f32
    %cst_145 = arith.constant 0.000000e+00 : f32
    %192 = vector.broadcast %cst_144 : f32 to vector<128x32xf32>
    %193 = vector.broadcast %cst_145 : f32 to vector<128x32xf32>
    %194 = arith.select %191, %192, %193 : vector<128x32xi1>, vector<128x32xf32>
    %cst_146 = arith.constant dense<0.000000e+00> : vector<8x32xf32>
    %195 = tpu.matmul %109, %194, %cst_146 {dimension_numbers = #tpu.dot_dimension_numbers<[1], [0], [0], [1], [0, 0, 1, 1], [], []>} : vector<8x128xf32>, vector<128x32xf32>, vector<8x32xf32> -> vector<8x32xf32>
    %c7_147 = arith.constant 7 : index
    %c0_148 = arith.constant 0 : index
    %c0_149 = arith.constant 0 : index
    %196 = vector.load %arg5[%c7_147, %c0_148, %c0_149] : memref<9x8x8xf32, #tpu.memory_space<vmem>>, vector<1x8x8xf32>
    %197 = vector.shape_cast %196 : vector<1x8x8xf32> to vector<8x8xf32>
    %cst_150 = arith.constant dense<0.000000e+00> : vector<8x32xf32>
    %198 = tpu.matmul %197, %195, %cst_150 {dimension_numbers = #tpu.dot_dimension_numbers<[1], [0], [0], [1], [0, 0, 1, 1], [], []>} : vector<8x8xf32>, vector<8x32xf32>, vector<8x32xf32> -> vector<8x32xf32>
    %199 = arith.addf %188, %198 : vector<8x32xf32>
    %c8_151 = arith.constant 8 : index
    %c0_152 = arith.constant 0 : index
    %200 = vector.load %arg7[%c8_151, %c0_152] : memref<9x32xi32, #tpu.memory_space<vmem>>, vector<1x32xi32>
    %201 = vector.broadcast %200 : vector<1x32xi32> to vector<128x32xi32>
    %202 = arith.cmpi eq, %110, %201 : vector<128x32xi32>
    %cst_153 = arith.constant 1.000000e+00 : f32
    %cst_154 = arith.constant 0.000000e+00 : f32
    %203 = vector.broadcast %cst_153 : f32 to vector<128x32xf32>
    %204 = vector.broadcast %cst_154 : f32 to vector<128x32xf32>
    %205 = arith.select %202, %203, %204 : vector<128x32xi1>, vector<128x32xf32>
    %cst_155 = arith.constant dense<0.000000e+00> : vector<8x32xf32>
    %206 = tpu.matmul %109, %205, %cst_155 {dimension_numbers = #tpu.dot_dimension_numbers<[1], [0], [0], [1], [0, 0, 1, 1], [], []>} : vector<8x128xf32>, vector<128x32xf32>, vector<8x32xf32> -> vector<8x32xf32>
    %c8_156 = arith.constant 8 : index
    %c0_157 = arith.constant 0 : index
    %c0_158 = arith.constant 0 : index
    %207 = vector.load %arg5[%c8_156, %c0_157, %c0_158] : memref<9x8x8xf32, #tpu.memory_space<vmem>>, vector<1x8x8xf32>
    %208 = vector.shape_cast %207 : vector<1x8x8xf32> to vector<8x8xf32>
    %cst_159 = arith.constant dense<0.000000e+00> : vector<8x32xf32>
    %209 = tpu.matmul %208, %206, %cst_159 {dimension_numbers = #tpu.dot_dimension_numbers<[1], [0], [0], [1], [0, 0, 1, 1], [], []>} : vector<8x8xf32>, vector<8x32xf32>, vector<8x32xf32> -> vector<8x32xf32>
    %210 = arith.addf %199, %209 : vector<8x32xf32>
    %c0_160 = arith.constant 0 : index
    %c0_161 = arith.constant 0 : index
    %211 = vector.load %arg6[%c0_160, %c0_161] : memref<8x1xf32, #tpu.memory_space<vmem>>, vector<8x1xf32>
    %212 = vector.broadcast %211 : vector<8x1xf32> to vector<8x32xf32>
    %213 = arith.addf %210, %212 : vector<8x32xf32>
    %214 = tpu.iota {dimensions = array<i32: 0>} : vector<32x32xi32>
    %cst_162 = arith.constant 0.000000e+00 : f32
    %215 = vector.broadcast %cst_162 : f32 to vector<1x32xf32>
    %c0_163 = arith.constant 0 : index
    %c0_164 = arith.constant 0 : index
    %216 = vector.load %arg10[%c0_163, %c0_164] : memref<9x32xi32, #tpu.memory_space<vmem>>, vector<1x32xi32>
    %217 = vector.broadcast %216 : vector<1x32xi32> to vector<32x32xi32>
    %218 = arith.cmpi eq, %214, %217 : vector<32x32xi32>
    %cst_165 = arith.constant 1.000000e+00 : f32
    %cst_166 = arith.constant 0.000000e+00 : f32
    %219 = vector.broadcast %cst_165 : f32 to vector<32x32xf32>
    %220 = vector.broadcast %cst_166 : f32 to vector<32x32xf32>
    %221 = arith.select %218, %219, %220 : vector<32x32xi1>, vector<32x32xf32>
    %cst_167 = arith.constant dense<0.000000e+00> : vector<8x32xf32>
    %222 = tpu.matmul %213, %221, %cst_167 {dimension_numbers = #tpu.dot_dimension_numbers<[1], [0], [0], [1], [0, 0, 1, 1], [], []>} : vector<8x32xf32>, vector<32x32xf32>, vector<8x32xf32> -> vector<8x32xf32>
    %c0_168 = arith.constant 0 : index
    %c0_169 = arith.constant 0 : index
    %c0_170 = arith.constant 0 : index
    %223 = vector.load %arg8[%c0_168, %c0_169, %c0_170] : memref<9x1x8xf32, #tpu.memory_space<vmem>>, vector<1x1x8xf32>
    %224 = vector.shape_cast %223 : vector<1x1x8xf32> to vector<1x8xf32>
    %cst_171 = arith.constant dense<0.000000e+00> : vector<1x32xf32>
    %225 = tpu.matmul %224, %222, %cst_171 {dimension_numbers = #tpu.dot_dimension_numbers<[1], [0], [0], [1], [0, 0, 1, 1], [], []>} : vector<1x8xf32>, vector<8x32xf32>, vector<1x32xf32> -> vector<1x32xf32>
    %226 = arith.addf %215, %225 : vector<1x32xf32>
    %c1_172 = arith.constant 1 : index
    %c0_173 = arith.constant 0 : index
    %227 = vector.load %arg10[%c1_172, %c0_173] : memref<9x32xi32, #tpu.memory_space<vmem>>, vector<1x32xi32>
    %228 = vector.broadcast %227 : vector<1x32xi32> to vector<32x32xi32>
    %229 = arith.cmpi eq, %214, %228 : vector<32x32xi32>
    %cst_174 = arith.constant 1.000000e+00 : f32
    %cst_175 = arith.constant 0.000000e+00 : f32
    %230 = vector.broadcast %cst_174 : f32 to vector<32x32xf32>
    %231 = vector.broadcast %cst_175 : f32 to vector<32x32xf32>
    %232 = arith.select %229, %230, %231 : vector<32x32xi1>, vector<32x32xf32>
    %cst_176 = arith.constant dense<0.000000e+00> : vector<8x32xf32>
    %233 = tpu.matmul %213, %232, %cst_176 {dimension_numbers = #tpu.dot_dimension_numbers<[1], [0], [0], [1], [0, 0, 1, 1], [], []>} : vector<8x32xf32>, vector<32x32xf32>, vector<8x32xf32> -> vector<8x32xf32>
    %c1_177 = arith.constant 1 : index
    %c0_178 = arith.constant 0 : index
    %c0_179 = arith.constant 0 : index
    %234 = vector.load %arg8[%c1_177, %c0_178, %c0_179] : memref<9x1x8xf32, #tpu.memory_space<vmem>>, vector<1x1x8xf32>
    %235 = vector.shape_cast %234 : vector<1x1x8xf32> to vector<1x8xf32>
    %cst_180 = arith.constant dense<0.000000e+00> : vector<1x32xf32>
    %236 = tpu.matmul %235, %233, %cst_180 {dimension_numbers = #tpu.dot_dimension_numbers<[1], [0], [0], [1], [0, 0, 1, 1], [], []>} : vector<1x8xf32>, vector<8x32xf32>, vector<1x32xf32> -> vector<1x32xf32>
    %237 = arith.addf %226, %236 : vector<1x32xf32>
    %c2_181 = arith.constant 2 : index
    %c0_182 = arith.constant 0 : index
    %238 = vector.load %arg10[%c2_181, %c0_182] : memref<9x32xi32, #tpu.memory_space<vmem>>, vector<1x32xi32>
    %239 = vector.broadcast %238 : vector<1x32xi32> to vector<32x32xi32>
    %240 = arith.cmpi eq, %214, %239 : vector<32x32xi32>
    %cst_183 = arith.constant 1.000000e+00 : f32
    %cst_184 = arith.constant 0.000000e+00 : f32
    %241 = vector.broadcast %cst_183 : f32 to vector<32x32xf32>
    %242 = vector.broadcast %cst_184 : f32 to vector<32x32xf32>
    %243 = arith.select %240, %241, %242 : vector<32x32xi1>, vector<32x32xf32>
    %cst_185 = arith.constant dense<0.000000e+00> : vector<8x32xf32>
    %244 = tpu.matmul %213, %243, %cst_185 {dimension_numbers = #tpu.dot_dimension_numbers<[1], [0], [0], [1], [0, 0, 1, 1], [], []>} : vector<8x32xf32>, vector<32x32xf32>, vector<8x32xf32> -> vector<8x32xf32>
    %c2_186 = arith.constant 2 : index
    %c0_187 = arith.constant 0 : index
    %c0_188 = arith.constant 0 : index
    %245 = vector.load %arg8[%c2_186, %c0_187, %c0_188] : memref<9x1x8xf32, #tpu.memory_space<vmem>>, vector<1x1x8xf32>
    %246 = vector.shape_cast %245 : vector<1x1x8xf32> to vector<1x8xf32>
    %cst_189 = arith.constant dense<0.000000e+00> : vector<1x32xf32>
    %247 = tpu.matmul %246, %244, %cst_189 {dimension_numbers = #tpu.dot_dimension_numbers<[1], [0], [0], [1], [0, 0, 1, 1], [], []>} : vector<1x8xf32>, vector<8x32xf32>, vector<1x32xf32> -> vector<1x32xf32>
    %248 = arith.addf %237, %247 : vector<1x32xf32>
    %c3_190 = arith.constant 3 : index
    %c0_191 = arith.constant 0 : index
    %249 = vector.load %arg10[%c3_190, %c0_191] : memref<9x32xi32, #tpu.memory_space<vmem>>, vector<1x32xi32>
    %250 = vector.broadcast %249 : vector<1x32xi32> to vector<32x32xi32>
    %251 = arith.cmpi eq, %214, %250 : vector<32x32xi32>
    %cst_192 = arith.constant 1.000000e+00 : f32
    %cst_193 = arith.constant 0.000000e+00 : f32
    %252 = vector.broadcast %cst_192 : f32 to vector<32x32xf32>
    %253 = vector.broadcast %cst_193 : f32 to vector<32x32xf32>
    %254 = arith.select %251, %252, %253 : vector<32x32xi1>, vector<32x32xf32>
    %cst_194 = arith.constant dense<0.000000e+00> : vector<8x32xf32>
    %255 = tpu.matmul %213, %254, %cst_194 {dimension_numbers = #tpu.dot_dimension_numbers<[1], [0], [0], [1], [0, 0, 1, 1], [], []>} : vector<8x32xf32>, vector<32x32xf32>, vector<8x32xf32> -> vector<8x32xf32>
    %c3_195 = arith.constant 3 : index
    %c0_196 = arith.constant 0 : index
    %c0_197 = arith.constant 0 : index
    %256 = vector.load %arg8[%c3_195, %c0_196, %c0_197] : memref<9x1x8xf32, #tpu.memory_space<vmem>>, vector<1x1x8xf32>
    %257 = vector.shape_cast %256 : vector<1x1x8xf32> to vector<1x8xf32>
    %cst_198 = arith.constant dense<0.000000e+00> : vector<1x32xf32>
    %258 = tpu.matmul %257, %255, %cst_198 {dimension_numbers = #tpu.dot_dimension_numbers<[1], [0], [0], [1], [0, 0, 1, 1], [], []>} : vector<1x8xf32>, vector<8x32xf32>, vector<1x32xf32> -> vector<1x32xf32>
    %259 = arith.addf %248, %258 : vector<1x32xf32>
    %c4_199 = arith.constant 4 : index
    %c0_200 = arith.constant 0 : index
    %260 = vector.load %arg10[%c4_199, %c0_200] : memref<9x32xi32, #tpu.memory_space<vmem>>, vector<1x32xi32>
    %261 = vector.broadcast %260 : vector<1x32xi32> to vector<32x32xi32>
    %262 = arith.cmpi eq, %214, %261 : vector<32x32xi32>
    %cst_201 = arith.constant 1.000000e+00 : f32
    %cst_202 = arith.constant 0.000000e+00 : f32
    %263 = vector.broadcast %cst_201 : f32 to vector<32x32xf32>
    %264 = vector.broadcast %cst_202 : f32 to vector<32x32xf32>
    %265 = arith.select %262, %263, %264 : vector<32x32xi1>, vector<32x32xf32>
    %cst_203 = arith.constant dense<0.000000e+00> : vector<8x32xf32>
    %266 = tpu.matmul %213, %265, %cst_203 {dimension_numbers = #tpu.dot_dimension_numbers<[1], [0], [0], [1], [0, 0, 1, 1], [], []>} : vector<8x32xf32>, vector<32x32xf32>, vector<8x32xf32> -> vector<8x32xf32>
    %c4_204 = arith.constant 4 : index
    %c0_205 = arith.constant 0 : index
    %c0_206 = arith.constant 0 : index
    %267 = vector.load %arg8[%c4_204, %c0_205, %c0_206] : memref<9x1x8xf32, #tpu.memory_space<vmem>>, vector<1x1x8xf32>
    %268 = vector.shape_cast %267 : vector<1x1x8xf32> to vector<1x8xf32>
    %cst_207 = arith.constant dense<0.000000e+00> : vector<1x32xf32>
    %269 = tpu.matmul %268, %266, %cst_207 {dimension_numbers = #tpu.dot_dimension_numbers<[1], [0], [0], [1], [0, 0, 1, 1], [], []>} : vector<1x8xf32>, vector<8x32xf32>, vector<1x32xf32> -> vector<1x32xf32>
    %270 = arith.addf %259, %269 : vector<1x32xf32>
    %c5_208 = arith.constant 5 : index
    %c0_209 = arith.constant 0 : index
    %271 = vector.load %arg10[%c5_208, %c0_209] : memref<9x32xi32, #tpu.memory_space<vmem>>, vector<1x32xi32>
    %272 = vector.broadcast %271 : vector<1x32xi32> to vector<32x32xi32>
    %273 = arith.cmpi eq, %214, %272 : vector<32x32xi32>
    %cst_210 = arith.constant 1.000000e+00 : f32
    %cst_211 = arith.constant 0.000000e+00 : f32
    %274 = vector.broadcast %cst_210 : f32 to vector<32x32xf32>
    %275 = vector.broadcast %cst_211 : f32 to vector<32x32xf32>
    %276 = arith.select %273, %274, %275 : vector<32x32xi1>, vector<32x32xf32>
    %cst_212 = arith.constant dense<0.000000e+00> : vector<8x32xf32>
    %277 = tpu.matmul %213, %276, %cst_212 {dimension_numbers = #tpu.dot_dimension_numbers<[1], [0], [0], [1], [0, 0, 1, 1], [], []>} : vector<8x32xf32>, vector<32x32xf32>, vector<8x32xf32> -> vector<8x32xf32>
    %c5_213 = arith.constant 5 : index
    %c0_214 = arith.constant 0 : index
    %c0_215 = arith.constant 0 : index
    %278 = vector.load %arg8[%c5_213, %c0_214, %c0_215] : memref<9x1x8xf32, #tpu.memory_space<vmem>>, vector<1x1x8xf32>
    %279 = vector.shape_cast %278 : vector<1x1x8xf32> to vector<1x8xf32>
    %cst_216 = arith.constant dense<0.000000e+00> : vector<1x32xf32>
    %280 = tpu.matmul %279, %277, %cst_216 {dimension_numbers = #tpu.dot_dimension_numbers<[1], [0], [0], [1], [0, 0, 1, 1], [], []>} : vector<1x8xf32>, vector<8x32xf32>, vector<1x32xf32> -> vector<1x32xf32>
    %281 = arith.addf %270, %280 : vector<1x32xf32>
    %c6_217 = arith.constant 6 : index
    %c0_218 = arith.constant 0 : index
    %282 = vector.load %arg10[%c6_217, %c0_218] : memref<9x32xi32, #tpu.memory_space<vmem>>, vector<1x32xi32>
    %283 = vector.broadcast %282 : vector<1x32xi32> to vector<32x32xi32>
    %284 = arith.cmpi eq, %214, %283 : vector<32x32xi32>
    %cst_219 = arith.constant 1.000000e+00 : f32
    %cst_220 = arith.constant 0.000000e+00 : f32
    %285 = vector.broadcast %cst_219 : f32 to vector<32x32xf32>
    %286 = vector.broadcast %cst_220 : f32 to vector<32x32xf32>
    %287 = arith.select %284, %285, %286 : vector<32x32xi1>, vector<32x32xf32>
    %cst_221 = arith.constant dense<0.000000e+00> : vector<8x32xf32>
    %288 = tpu.matmul %213, %287, %cst_221 {dimension_numbers = #tpu.dot_dimension_numbers<[1], [0], [0], [1], [0, 0, 1, 1], [], []>} : vector<8x32xf32>, vector<32x32xf32>, vector<8x32xf32> -> vector<8x32xf32>
    %c6_222 = arith.constant 6 : index
    %c0_223 = arith.constant 0 : index
    %c0_224 = arith.constant 0 : index
    %289 = vector.load %arg8[%c6_222, %c0_223, %c0_224] : memref<9x1x8xf32, #tpu.memory_space<vmem>>, vector<1x1x8xf32>
    %290 = vector.shape_cast %289 : vector<1x1x8xf32> to vector<1x8xf32>
    %cst_225 = arith.constant dense<0.000000e+00> : vector<1x32xf32>
    %291 = tpu.matmul %290, %288, %cst_225 {dimension_numbers = #tpu.dot_dimension_numbers<[1], [0], [0], [1], [0, 0, 1, 1], [], []>} : vector<1x8xf32>, vector<8x32xf32>, vector<1x32xf32> -> vector<1x32xf32>
    %292 = arith.addf %281, %291 : vector<1x32xf32>
    %c7_226 = arith.constant 7 : index
    %c0_227 = arith.constant 0 : index
    %293 = vector.load %arg10[%c7_226, %c0_227] : memref<9x32xi32, #tpu.memory_space<vmem>>, vector<1x32xi32>
    %294 = vector.broadcast %293 : vector<1x32xi32> to vector<32x32xi32>
    %295 = arith.cmpi eq, %214, %294 : vector<32x32xi32>
    %cst_228 = arith.constant 1.000000e+00 : f32
    %cst_229 = arith.constant 0.000000e+00 : f32
    %296 = vector.broadcast %cst_228 : f32 to vector<32x32xf32>
    %297 = vector.broadcast %cst_229 : f32 to vector<32x32xf32>
    %298 = arith.select %295, %296, %297 : vector<32x32xi1>, vector<32x32xf32>
    %cst_230 = arith.constant dense<0.000000e+00> : vector<8x32xf32>
    %299 = tpu.matmul %213, %298, %cst_230 {dimension_numbers = #tpu.dot_dimension_numbers<[1], [0], [0], [1], [0, 0, 1, 1], [], []>} : vector<8x32xf32>, vector<32x32xf32>, vector<8x32xf32> -> vector<8x32xf32>
    %c7_231 = arith.constant 7 : index
    %c0_232 = arith.constant 0 : index
    %c0_233 = arith.constant 0 : index
    %300 = vector.load %arg8[%c7_231, %c0_232, %c0_233] : memref<9x1x8xf32, #tpu.memory_space<vmem>>, vector<1x1x8xf32>
    %301 = vector.shape_cast %300 : vector<1x1x8xf32> to vector<1x8xf32>
    %cst_234 = arith.constant dense<0.000000e+00> : vector<1x32xf32>
    %302 = tpu.matmul %301, %299, %cst_234 {dimension_numbers = #tpu.dot_dimension_numbers<[1], [0], [0], [1], [0, 0, 1, 1], [], []>} : vector<1x8xf32>, vector<8x32xf32>, vector<1x32xf32> -> vector<1x32xf32>
    %303 = arith.addf %292, %302 : vector<1x32xf32>
    %c8_235 = arith.constant 8 : index
    %c0_236 = arith.constant 0 : index
    %304 = vector.load %arg10[%c8_235, %c0_236] : memref<9x32xi32, #tpu.memory_space<vmem>>, vector<1x32xi32>
    %305 = vector.broadcast %304 : vector<1x32xi32> to vector<32x32xi32>
    %306 = arith.cmpi eq, %214, %305 : vector<32x32xi32>
    %cst_237 = arith.constant 1.000000e+00 : f32
    %cst_238 = arith.constant 0.000000e+00 : f32
    %307 = vector.broadcast %cst_237 : f32 to vector<32x32xf32>
    %308 = vector.broadcast %cst_238 : f32 to vector<32x32xf32>
    %309 = arith.select %306, %307, %308 : vector<32x32xi1>, vector<32x32xf32>
    %cst_239 = arith.constant dense<0.000000e+00> : vector<8x32xf32>
    %310 = tpu.matmul %213, %309, %cst_239 {dimension_numbers = #tpu.dot_dimension_numbers<[1], [0], [0], [1], [0, 0, 1, 1], [], []>} : vector<8x32xf32>, vector<32x32xf32>, vector<8x32xf32> -> vector<8x32xf32>
    %c8_240 = arith.constant 8 : index
    %c0_241 = arith.constant 0 : index
    %c0_242 = arith.constant 0 : index
    %311 = vector.load %arg8[%c8_240, %c0_241, %c0_242] : memref<9x1x8xf32, #tpu.memory_space<vmem>>, vector<1x1x8xf32>
    %312 = vector.shape_cast %311 : vector<1x1x8xf32> to vector<1x8xf32>
    %cst_243 = arith.constant dense<0.000000e+00> : vector<1x32xf32>
    %313 = tpu.matmul %312, %310, %cst_243 {dimension_numbers = #tpu.dot_dimension_numbers<[1], [0], [0], [1], [0, 0, 1, 1], [], []>} : vector<1x8xf32>, vector<8x32xf32>, vector<1x32xf32> -> vector<1x32xf32>
    %314 = arith.addf %303, %313 : vector<1x32xf32>
    %c0_244 = arith.constant 0 : index
    %c0_245 = arith.constant 0 : index
    %315 = vector.load %arg9[%c0_244, %c0_245] : memref<1x1xf32, #tpu.memory_space<vmem>>, vector<1x1xf32>
    %316 = vector.broadcast %315 : vector<1x1xf32> to vector<1x32xf32>
    %317 = arith.addf %314, %316 : vector<1x32xf32>
    %cst_246 = arith.constant 0.000000e+00 : f32
    %318 = vector.broadcast %cst_246 : f32 to vector<1x32xf32>
    %319 = arith.subf %318, %317 : vector<1x32xf32>
    %320 = math.exp %319 : vector<1x32xf32>
    %cst_247 = arith.constant 1.000000e+00 : f32
    %321 = vector.broadcast %cst_247 : f32 to vector<1x32xf32>
    %322 = arith.addf %321, %320 : vector<1x32xf32>
    %cst_248 = arith.constant 1.000000e+00 : f32
    %323 = vector.broadcast %cst_248 : f32 to vector<1x32xf32>
    %324 = arith.divf %323, %322 : vector<1x32xf32>
    %c0_249 = arith.constant 0 : index
    %c0_250 = arith.constant 0 : index
    %325 = vector.load %arg11[%c0_249, %c0_250] : memref<1x32xf32, #tpu.memory_space<vmem>>, vector<1x32xf32>
    tpu.vector_store %arg11[%c0_249, %c0_250], %324 {strides = array<i32>} : memref<1x32xf32, #tpu.memory_space<vmem>>, vector<1x32xf32>,
    return
  }
  func.func @transform_0(%arg0: i32) -> (i32, i32) {
    %c0_i32 = arith.constant 0 : i32
    %c0_i32_0 = arith.constant 0 : i32
    %c0_i32_1 = arith.constant 0 : i32
    return %c0_i32, %c0_i32_0 : i32, i32
  }
  func.func @transform_1(%arg0: i32) -> (i32, i32, i32) {
    %c0_i32 = arith.constant 0 : i32
    %c0_i32_0 = arith.constant 0 : i32
    %c0_i32_1 = arith.constant 0 : i32
    %c0_i32_2 = arith.constant 0 : i32
    return %c0_i32, %c0_i32_0, %c0_i32_1 : i32, i32, i32
  }
  func.func @transform_2(%arg0: i32) -> (i32, i32) {
    %c0_i32 = arith.constant 0 : i32
    %c0_i32_0 = arith.constant 0 : i32
    %c0_i32_1 = arith.constant 0 : i32
    return %c0_i32, %c0_i32_0 : i32, i32
  }
  func.func @transform_3(%arg0: i32) -> (i32, i32) {
    %c0_i32 = arith.constant 0 : i32
    %c0_i32_0 = arith.constant 0 : i32
    %c0_i32_1 = arith.constant 0 : i32
    return %c0_i32, %c0_i32_0 : i32, i32
  }
  func.func @transform_4(%arg0: i32) -> (i32, i32, i32) {
    %c0_i32 = arith.constant 0 : i32
    %c0_i32_0 = arith.constant 0 : i32
    %c0_i32_1 = arith.constant 0 : i32
    %c0_i32_2 = arith.constant 0 : i32
    return %c0_i32, %c0_i32_0, %c0_i32_1 : i32, i32, i32
  }
  func.func @transform_5(%arg0: i32) -> (i32, i32) {
    %c0_i32 = arith.constant 0 : i32
    %c0_i32_0 = arith.constant 0 : i32
    %c0_i32_1 = arith.constant 0 : i32
    return %c0_i32, %c0_i32_0 : i32, i32
  }
  func.func @transform_6(%arg0: i32) -> (i32, i32) {
    %c0_i32 = arith.constant 0 : i32
    %c0_i32_0 = arith.constant 0 : i32
    %c0_i32_1 = arith.constant 0 : i32
    return %c0_i32, %c0_i32_0 : i32, i32
  }
  func.func @transform_7(%arg0: i32) -> (i32, i32, i32) {
    %c0_i32 = arith.constant 0 : i32
    %c0_i32_0 = arith.constant 0 : i32
    %c0_i32_1 = arith.constant 0 : i32
    %c0_i32_2 = arith.constant 0 : i32
    return %c0_i32, %c0_i32_0, %c0_i32_1 : i32, i32, i32
  }
  func.func @transform_8(%arg0: i32) -> (i32, i32) {
    %c0_i32 = arith.constant 0 : i32
    %c0_i32_0 = arith.constant 0 : i32
    %c0_i32_1 = arith.constant 0 : i32
    return %c0_i32, %c0_i32_0 : i32, i32
  }
  func.func @transform_9(%arg0: i32) -> (i32, i32) {
    %c0_i32 = arith.constant 0 : i32
    %c0_i32_0 = arith.constant 0 : i32
    %c0_i32_1 = arith.constant 0 : i32
    return %c0_i32, %c0_i32_0 : i32, i32
  }
  func.func @transform_10(%arg0: i32) -> (i32, i32) {
    %c0_i32 = arith.constant 0 : i32
    %c0_i32_0 = arith.constant 0 : i32
    %c0_i32_1 = arith.constant 0 : i32
    return %c0_i32, %c0_i32_0 : i32, i32
  }
}

</mosaic_0001>

<bundles_post_ra>
// kernel: _fused_forward.1
= control target key start
LH: loop header
LB: loop body
LE: loop exit
PB: predicated region body
PF: predicated region fallthrough
CT: control target
= control target key end

     0   :  { %s12187_s0 = inlined_call_operand.vmem [shape: f32[4,512], index: 0, kind: input, shape index: {}]   ;;  %s12188_s1 = inlined_call_operand.vmem [shape: f32[9,8,4], index: 1, kind: input, shape index: {}]   ;;  %s12189_s2 = inlined_call_operand.vmem [shape: f32[8,1], index: 2, kind: input, shape index: {}]   ;;  %s12190_s3 = inlined_call_operand.vmem [shape: s32[9,128], index: 3, kind: input, shape index: {}]   ;;  %s12191_s4 = inlined_call_operand.vmem [shape: f32[9,8,8], index: 4, kind: input, shape index: {}]   ;;  %s12192_s5 = inlined_call_operand.vmem [shape: f32[8,1], index: 5, kind: input, shape index: {}]   ;;  %s12193_s6 = inlined_call_operand.vmem [shape: s32[9,32], index: 6, kind: input, shape index: {}]   ;;  %s12194_s7 = inlined_call_operand.vmem [shape: f32[9,1,8], index: 7, kind: input, shape index: {}]   ;;  %s12195_s8 = inlined_call_operand.<no memory space> [shape: f32[1,1], index: 8, kind: input, shape index: {}]   ;;  %s12196_s9 = inlined_call_operand.vmem [shape: s32[9,32], index: 9, kind: input, shape index: {}]   ;;  %s12197_s10 = inlined_call_operand.hbm [shape: f32[1,32], index: 10, kind: output, shape index: {}]  }
   0x1   :  { %v15_v0 = vstv %s12195_s8 }
   0x2   :  { %16 = vst [vmem:[#allocation2] sm:$0x1] %v15_v0 }
   0x3   :  { %v40_v1 = vlaneseq  ;;  %v9643_v2 = vld [vmem:[%s12187_s0] sm:$0xff]  ;;  %v9648_v3 = vld [vmem:[%s12187_s0 + $0x8] sm:$0xff] }
   0x4   :  { %12268 = vst [vmem:[#allocation6_spill] sm:$0xff] %v9643_v2  ;;  %v9652_v4 = vcombine.high %v9643_v2, %v9643_v2  ;;  %v9656_v5 = vcombine.high %v9648_v3, %v9648_v3 }
   0x6   :  { %12269 = vst [vmem:[#allocation7_spill] sm:$0xff] %v9652_v4 }
   0x7   :  { %17 = vsyncpa [#allocation4], 0  ;;  %v9658_v6 = vshrl.u32 %v40_v1, 7  ;;  %v9663_v7 = vld [vmem:[%s12190_s3] ss:$0 sm:$0xff]  ;;  %308 = vmatprep.mubr.f32.mxu0 %v9652_v4  ;;  %378 = vmatprep.mubr.f32.mxu1 %v9656_v5 }
   0x8   :  { %v12224_v16 = vmov 1.0|1.0  }
   0x9   :  { %v9668_v8 = vadd.s32 128, %v9658_v6  ;;  %v9671_v9 = vadd.s32 136, %v9658_v6  ;;  %v9674_v10 = vadd.s32 384, %v9658_v6  ;;  %v9677_v11 = vadd.s32 392, %v9658_v6 }
   0xa   :  { %v9680_v12 = vadd.s32 8, %v9658_v6  ;;  %vm110_vm0 = vcmp.eq.s32.totalorder %v9658_v6, %v9663_v7  ;;  %v9685_v13 = vadd.s32 256, %v9658_v6  ;;  %v9688_v14 = vadd.s32 264, %v9658_v6 }
   0xb   :  { %vm126_vm1 = vcmp.eq.s32.totalorder %v9668_v8, %v9663_v7  ;;  %vm127_vm2 = vcmp.eq.s32.totalorder %v9671_v9, %v9663_v7  ;;  %vm158_vm3 = vcmp.eq.s32.totalorder %v9674_v10, %v9663_v7  ;;  %vm159_vm4 = vcmp.eq.s32.totalorder %v9677_v11, %v9663_v7 }
   0xc   :  { %vm8688_vm5 = vmpackc.low %vm127_vm2, %vm126_vm1  ;;  %vm111_vm6 = vcmp.eq.s32.totalorder %v9680_v12, %v9663_v7  ;;  %vm142_vm7 = vcmp.eq.s32.totalorder %v9685_v13, %v9663_v7  ;;  %vm143_vm8 = vcmp.eq.s32.totalorder %v9688_v14, %v9663_v7  ;;  %v9705_v15 = vadd.s32 144, %v9658_v6 }
   0xd   :  { %8689 = vmatprep.subr.msk.bf16.mxu0 %vm8688_vm5, %v12224_v16  ;;  %vm8720_vm9 = vmpackc.low %vm159_vm4, %vm158_vm3  ;;  %v9709_v17 = vadd.s32 152, %v9658_v6  ;;  %v9712_v18 = vadd.s32 400, %v9658_v6  ;;  %v9715_v19 = vadd.s32 408, %v9658_v6  ;;  %v9718_v20 = vadd.s32 16, %v9658_v6 }
   0xe   :  { %8721 = vmatprep.subr.msk.bf16.mxu1 %vm8720_vm9, %v12224_v16  ;;  %vm8690_vm10 = vmpackc.low %vm111_vm6, %vm110_vm0  ;;  %vm128_vm11 = vcmp.eq.s32.totalorder %v9705_v15, %v9663_v7  ;;  %v9727_v21 = vadd.s32 24, %v9658_v6  ;;  %v9730_v22 = vadd.s32 272, %v9658_v6  ;;  %v9733_v23 = vadd.s32 280, %v9658_v6 }
   0xf   :  { %8691 = vmatpush3.bf16.msk.msra.mxu0 %vm8690_vm10, %v12224_v16  ;;  %vm8722_vm12 = vmpackc.low %vm143_vm8, %vm142_vm7  ;;  %vm129_vm13 = vcmp.eq.s32.totalorder %v9709_v17, %v9663_v7  ;;  %vm160_vm14 = vcmp.eq.s32.totalorder %v9712_v18, %v9663_v7  ;;  %vm161_vm15 = vcmp.eq.s32.totalorder %v9715_v19, %v9663_v7  ;;  %vm112_vm0 = vcmp.eq.s32.totalorder %v9718_v20, %v9663_v7 }
  0x10   :  { %8723 = vmatpush3.bf16.msk.msra.mxu1 %vm8722_vm12, %v12224_v16  ;;  %vm8692_vm1 = vmpackc.low %vm129_vm13, %vm128_vm11  ;;  %vm113_vm2 = vcmp.eq.s32.totalorder %v9727_v21, %v9663_v7  ;;  %vm144_vm3 = vcmp.eq.s32.totalorder %v9730_v22, %v9663_v7  ;;  %vm145_vm4 = vcmp.eq.s32.totalorder %v9733_v23, %v9663_v7  ;;  %v9758_v24 = vadd.s32 160, %v9658_v6 }
  0x11   :  { %8693 = vmatprep.subr.msk.bf16.mxu0 %vm8692_vm1, %v12224_v16  ;;  %vm8724_vm5 = vmpackc.low %vm161_vm15, %vm160_vm14  ;;  %v9762_v25 = vadd.s32 168, %v9658_v6  ;;  %v9765_v26 = vadd.s32 416, %v9658_v6  ;;  %v9768_v27 = vadd.s32 424, %v9658_v6  ;;  %v9771_v28 = vadd.s32 32, %v9658_v6 }
  0x12   :  { %8725 = vmatprep.subr.msk.bf16.mxu1 %vm8724_vm5, %v12224_v16  ;;  %vm8694_vm6 = vmpackc.low %vm113_vm2, %vm112_vm0  ;;  %vm130_vm7 = vcmp.eq.s32.totalorder %v9758_v24, %v9663_v7  ;;  %v9777_v29 = vadd.s32 40, %v9658_v6  ;;  %v9780_v30 = vadd.s32 288, %v9658_v6  ;;  %v9783_v31 = vadd.s32 296, %v9658_v6 }
  0x13   :  { %8695 = vmatpush3.bf16.msk.msra.mxu0 %vm8694_vm6, %v12224_v16  ;;  %vm8726_vm8 = vmpackc.low %vm145_vm4, %vm144_vm3  ;;  %vm131_vm9 = vcmp.eq.s32.totalorder %v9762_v25, %v9663_v7  ;;  %vm162_vm10 = vcmp.eq.s32.totalorder %v9765_v26, %v9663_v7  ;;  %vm163_vm11 = vcmp.eq.s32.totalorder %v9768_v27, %v9663_v7  ;;  %vm114_vm12 = vcmp.eq.s32.totalorder %v9771_v28, %v9663_v7 }
  0x14   :  { %8727 = vmatpush3.bf16.msk.msra.mxu1 %vm8726_vm8, %v12224_v16  ;;  %vm8696_vm13 = vmpackc.low %vm131_vm9, %vm130_vm7  ;;  %vm115_vm14 = vcmp.eq.s32.totalorder %v9777_v29, %v9663_v7  ;;  %vm146_vm15 = vcmp.eq.s32.totalorder %v9780_v30, %v9663_v7  ;;  %vm147_vm0 = vcmp.eq.s32.totalorder %v9783_v31, %v9663_v7  ;;  %v9808_v32 = vadd.s32 176, %v9658_v6 }
  0x15   :  { %8697 = vmatprep.subr.msk.bf16.mxu0 %vm8696_vm13, %v12224_v16  ;;  %vm8728_vm1 = vmpackc.low %vm163_vm11, %vm162_vm10  ;;  %v9812_v33 = vadd.s32 184, %v9658_v6  ;;  %v9815_v34 = vadd.s32 432, %v9658_v6  ;;  %v9818_v35 = vadd.s32 440, %v9658_v6  ;;  %v9821_v36 = vadd.s32 48, %v9658_v6 }
  0x16   :  { %8729 = vmatprep.subr.msk.bf16.mxu1 %vm8728_vm1, %v12224_v16  ;;  %vm8698_vm2 = vmpackc.low %vm115_vm14, %vm114_vm12  ;;  %vm132_vm3 = vcmp.eq.s32.totalorder %v9808_v32, %v9663_v7  ;;  %v9827_v37 = vadd.s32 56, %v9658_v6  ;;  %v9830_v38 = vadd.s32 304, %v9658_v6  ;;  %v9833_v39 = vadd.s32 312, %v9658_v6 }
  0x17   :  { %8699 = vmatpush3.bf16.msk.msra.mxu0 %vm8698_vm2, %v12224_v16  ;;  %vm8730_vm4 = vmpackc.low %vm147_vm0, %vm146_vm15  ;;  %vm133_vm5 = vcmp.eq.s32.totalorder %v9812_v33, %v9663_v7  ;;  %vm164_vm6 = vcmp.eq.s32.totalorder %v9815_v34, %v9663_v7  ;;  %vm165_vm7 = vcmp.eq.s32.totalorder %v9818_v35, %v9663_v7  ;;  %vm116_vm8 = vcmp.eq.s32.totalorder %v9821_v36, %v9663_v7 }
  0x18   :  { %8731 = vmatpush3.bf16.msk.msra.mxu1 %vm8730_vm4, %v12224_v16  ;;  %vm8700_vm9 = vmpackc.low %vm133_vm5, %vm132_vm3  ;;  %vm117_vm10 = vcmp.eq.s32.totalorder %v9827_v37, %v9663_v7  ;;  %vm148_vm11 = vcmp.eq.s32.totalorder %v9830_v38, %v9663_v7  ;;  %vm149_vm12 = vcmp.eq.s32.totalorder %v9833_v39, %v9663_v7  ;;  %v9858_v40 = vadd.s32 192, %v9658_v6 }
  0x19   :  { %8701 = vmatprep.subr.msk.bf16.mxu0 %vm8700_vm9, %v12224_v16  ;;  %vm8732_vm13 = vmpackc.low %vm165_vm7, %vm164_vm6  ;;  %v9862_v41 = vadd.s32 200, %v9658_v6  ;;  %v9865_v42 = vadd.s32 448, %v9658_v6  ;;  %v9868_v43 = vadd.s32 456, %v9658_v6  ;;  %v9871_v44 = vadd.s32 64, %v9658_v6 }
  0x1a   :  { %8733 = vmatprep.subr.msk.bf16.mxu1 %vm8732_vm13, %v12224_v16  ;;  %vm8702_vm14 = vmpackc.low %vm117_vm10, %vm116_vm8  ;;  %vm134_vm15 = vcmp.eq.s32.totalorder %v9858_v40, %v9663_v7  ;;  %v9877_v45 = vadd.s32 72, %v9658_v6  ;;  %v9880_v46 = vadd.s32 320, %v9658_v6  ;;  %v9883_v47 = vadd.s32 328, %v9658_v6 }
  0x1b   :  { %12270 = vst [vmem:[#allocation8_spill] sm:$0xff] %v9862_v41  ;;  %12271 = vst [vmem:[#allocation9_spill] sm:$0xff] %v9871_v44  ;;  %8703 = vmatpush3.bf16.msk.msra.mxu0 %vm8702_vm14, %v12224_v16  ;;  %vm135_vm1 = vcmp.eq.s32.totalorder %v9862_v41, %v9663_v7  ;;  %vm166_vm2 = vcmp.eq.s32.totalorder %v9865_v42, %v9663_v7  ;;  %vm167_vm3 = vcmp.eq.s32.totalorder %v9868_v43, %v9663_v7 }
  0x1c   :  { %12272 = vst [vmem:[#allocation10_spill] sm:$0xff] %v9877_v45  ;;  %vm8734_vm0 = vmpackc.low %vm149_vm12, %vm148_vm11  ;;  %vm118_vm4 = vcmp.eq.s32.totalorder %v9871_v44, %v9663_v7  ;;  %vm119_vm6 = vcmp.eq.s32.totalorder %v9877_v45, %v9663_v7  ;;  %vm150_vm7 = vcmp.eq.s32.totalorder %v9880_v46, %v9663_v7  ;;  %vm151_vm8 = vcmp.eq.s32.totalorder %v9883_v47, %v9663_v7 }
  0x1d   :  { %8735 = vmatpush3.bf16.msk.msra.mxu1 %vm8734_vm0, %v12224_v16  ;;  %vm8704_vm5 = vmpackc.low %vm135_vm1, %vm134_vm15  ;;  %v9908_v48 = vadd.s32 208, %v9658_v6  ;;  %v9912_v49 = vadd.s32 216, %v9658_v6  ;;  %v9915_v50 = vadd.s32 464, %v9658_v6  ;;  %v9918_v51 = vadd.s32 472, %v9658_v6 }
  0x1e   :  { %8705 = vmatprep.subr.msk.bf16.mxu0 %vm8704_vm5, %v12224_v16  ;;  %vm8736_vm9 = vmpackc.low %vm167_vm3, %vm166_vm2  ;;  %v9921_v52 = vadd.s32 80, %v9658_v6  ;;  %v9927_v53 = vadd.s32 88, %v9658_v6  ;;  %v9930_v54 = vadd.s32 336, %v9658_v6  ;;  %v9933_v55 = vadd.s32 344, %v9658_v6 }
  0x1f   :  { %12273 = vst [vmem:[#allocation11_spill] sm:$0xff] %v9908_v48  ;;  %12274 = vst [vmem:[#allocation12_spill] sm:$0xff] %v9912_v49  ;;  %8737 = vmatprep.subr.msk.bf16.mxu1 %vm8736_vm9, %v12224_v16  ;;  %vm136_vm11 = vcmp.eq.s32.totalorder %v9908_v48, %v9663_v7  ;;  %vm137_vm13 = vcmp.eq.s32.totalorder %v9912_v49, %v9663_v7  ;;  %vm168_vm14 = vcmp.eq.s32.totalorder %v9915_v50, %v9663_v7 }
  0x20   :  { %12275 = vst [vmem:[#allocation13_spill] sm:$0xff] %v9921_v52  ;;  %vm8706_vm10 = vmpackc.low %vm119_vm6, %vm118_vm4  ;;  %vm169_vm15 = vcmp.eq.s32.totalorder %v9918_v51, %v9663_v7  ;;  %vm120_vm0 = vcmp.eq.s32.totalorder %v9921_v52, %v9663_v7  ;;  %vm121_vm2 = vcmp.eq.s32.totalorder %v9927_v53, %v9663_v7  ;;  %vm152_vm3 = vcmp.eq.s32.totalorder %v9930_v54, %v9663_v7 }
  0x21   :  { %12276 = vst [vmem:[#allocation14_spill] sm:$0xff] %v9927_v53  ;;  %12277 = vst [vmem:[#allocation15_spill] sm:$0xff] %v9933_v55  ;;  %8707 = vmatpush3.bf16.msk.msra.mxu0 %vm8706_vm10, %v12224_v16  ;;  %vm153_vm4 = vcmp.eq.s32.totalorder %v9933_v55, %v9663_v7  ;;  %v9958_v56 = vadd.s32 224, %v9658_v6  ;;  %v9962_v57 = vadd.s32 232, %v9658_v6  ;;  %v9965_v58 = vadd.s32 480, %v9658_v6 }
  0x22   :  { %vm8738_vm12 = vmpackc.low %vm151_vm8, %vm150_vm7  ;;  %v9968_v59 = vadd.s32 488, %v9658_v6  ;;  %v9971_v60 = vadd.s32 96, %v9658_v6  ;;  %v9977_v61 = vadd.s32 104, %v9658_v6  ;;  %v9980_v62 = vadd.s32 352, %v9658_v6  ;;  %v10038_v55 = vld [vmem:[%s12190_s3 + $0x1] ss:$0 sm:$0xff] }
  0x23   :  { %8739 = vmatpush3.bf16.msk.msra.mxu1 %vm8738_vm12, %v12224_v16  ;;  %vm8708_vm1 = vmpackc.low %vm137_vm13, %vm136_vm11  ;;  %12278 = vst [vmem:[#allocation16_spill] sm:$0xff] %v9958_v56  ;;  %vm138_vm7 = vcmp.eq.s32.totalorder %v9958_v56, %v9663_v7  ;;  %v9983_v63 = vadd.s32 360, %v9658_v6  ;;  %vm139_vm9 = vcmp.eq.s32.totalorder %v9962_v57, %v9663_v7  ;;  %vm170_vm10 = vcmp.eq.s32.totalorder %v9965_v58, %v9663_v7 }
  0x24   :  { %8709 = vmatprep.subr.msk.bf16.mxu0 %vm8708_vm1, %v12224_v16  ;;  %vm8740_vm5 = vmpackc.low %vm169_vm15, %vm168_vm14  ;;  %12279 = vst [vmem:[#allocation17_spill] sm:$0xff] %v9962_v57  ;;  %vm171_vm11 = vcmp.eq.s32.totalorder %v9968_v59, %v9663_v7  ;;  %vm122_vm12 = vcmp.eq.s32.totalorder %v9971_v60, %v9663_v7  ;;  %vm123_vm14 = vcmp.eq.s32.totalorder %v9977_v61, %v9663_v7  ;;  %v10008_v0 = vadd.s32 240, %v9658_v6 }
  0x25   :  { %12280 = vst [vmem:[#allocation18_spill] sm:$0xff] %v9965_v58  ;;  %12281 = vst [vmem:[#allocation19_spill] sm:$0xff] %v9968_v59  ;;  %8741 = vmatprep.subr.msk.bf16.mxu1 %vm8740_vm5, %v12224_v16  ;;  %vm154_vm15 = vcmp.eq.s32.totalorder %v9980_v62, %v9663_v7  ;;  %v10012_v1 = vadd.s32 248, %v9658_v6  ;;  %v10021_v59 = vadd.s32 112, %v9658_v6  ;;  %v10027_v58 = vadd.s32 120, %v9658_v6 }
  0x26   :  { %12282 = vst [vmem:[#allocation20_spill] sm:$0xff] %v9971_v60  ;;  %vm8710_vm6 = vmpackc.low %vm121_vm2, %vm120_vm0  ;;  %vm155_vm0 = vcmp.eq.s32.totalorder %v9983_v63, %v9663_v7  ;;  %v10015_v60 = vadd.s32 496, %v9658_v6  ;;  %v10030_v57 = vadd.s32 368, %v9658_v6  ;;  %v10033_v56 = vadd.s32 376, %v9658_v6 }
  0x27   :  { %12283 = vst [vmem:[#allocation21_spill] sm:$0xff] %v9977_v61  ;;  %12284 = vst [vmem:[#allocation22_spill] sm:$0xff] %v9980_v62  ;;  %8711 = vmatpush3.bf16.msk.msra.mxu0 %vm8710_vm6, %v12224_v16  ;;  %v10018_v61 = vadd.s32 504, %v9658_v6  ;;  %vm141_vm5 = vcmp.eq.s32.totalorder %v10012_v1, %v9663_v7 }
  0x28   :  { %12285 = vst [vmem:[#allocation23_spill] sm:$0xff] %v9983_v63  ;;  %vm8742_vm8 = vmpackc.low %vm153_vm4, %vm152_vm3  ;;  %vm140_vm3 = vcmp.eq.s32.totalorder %v10008_v0, %v9663_v7  ;;  %vm172_vm6 = vcmp.eq.s32.totalorder %v10015_v60, %v9663_v7 }
  0x29   :  { %8743 = vmatpush3.bf16.msk.msra.mxu1 %vm8742_vm8, %v12224_v16  ;;  %vm8712_vm13 = vmpackc.low %vm139_vm9, %vm138_vm7  ;;  %12286 = vst [vmem:[#allocation24_spill] sm:$0xff] %v10008_v0  ;;  %vm173_vm7 = vcmp.eq.s32.totalorder %v10018_v61, %v9663_v7  ;;  %vm124_vm8 = vcmp.eq.s32.totalorder %v10021_v59, %v9663_v7 }
  0x2a   :  { %8713 = vmatprep.subr.msk.bf16.mxu0 %vm8712_vm13, %v12224_v16  ;;  %vm8744_vm1 = vmpackc.low %vm171_vm11, %vm170_vm10  ;;  %12287 = vst [vmem:[#allocation25_spill] sm:$0xff] %v10012_v1  ;;  %vm125_vm10 = vcmp.eq.s32.totalorder %v10027_v58, %v9663_v7  ;;  %vm156_vm11 = vcmp.eq.s32.totalorder %v10030_v57, %v9663_v7 }
  0x2b   :  { %12288 = vst [vmem:[#allocation26_spill] sm:$0xff] %v10015_v60  ;;  %12289 = vst [vmem:[#allocation27_spill] sm:$0xff] %v10018_v61  ;;  %8745 = vmatprep.subr.msk.bf16.mxu1 %vm8744_vm1, %v12224_v16  ;;  %vm438_vm1 = vcmp.eq.s32.totalorder %v9674_v10, %v10038_v55 }
  0x2c   :  { %12290 = vst [vmem:[#allocation28_spill] sm:$0xff] %v10021_v59  ;;  %vm8714_vm2 = vmpackc.low %vm123_vm14, %vm122_vm12  ;;  %vm157_vm12 = vcmp.eq.s32.totalorder %v10033_v56, %v9663_v7  ;;  %vm406_vm14 = vcmp.eq.s32.totalorder %v9668_v8, %v10038_v55  ;;  %v12294_v7 = vld [vmem:[#allocation15_spill] sm:$0xff] }
  0x2d   :  { %12291 = vst [vmem:[#allocation29_spill] sm:$0xff] %v10027_v58  ;;  %12292 = vst [vmem:[#allocation30_spill] sm:$0xff] %v10030_v57  ;;  %8715 = vmatpush3.bf16.msk.msra.mxu0 %vm8714_vm2, %v12224_v16  ;;  %vm439_vm2 = vcmp.eq.s32.totalorder %v9677_v11, %v10038_v55 }
  0x2e   :  { %12293 = vst [vmem:[#allocation31_spill] sm:$0xff] %v10033_v56  ;;  %vm8746_vm4 = vmpackc.low %vm155_vm0, %vm154_vm15  ;;  %vm407_vm15 = vcmp.eq.s32.totalorder %v9671_v9, %v10038_v55 }
  0x2f   :  { %8747 = vmatpush3.bf16.msk.msra.mxu1 %vm8746_vm4, %v12224_v16  ;;  %vm8716_vm9 = vmpackc.low %vm141_vm5, %vm140_vm3  ;;  %vm390_vm4 = vcmp.eq.s32.totalorder %v9658_v6, %v10038_v55  ;;  %vm391_vm5 = vcmp.eq.s32.totalorder %v9680_v12, %v10038_v55 }
  0x30   :  { %8717 = vmatprep.subr.msk.bf16.mxu0 %vm8716_vm9, %v12224_v16  ;;  %vm8748_vm13 = vmpackc.low %vm173_vm7, %vm172_vm6  ;;  %vm422_vm7 = vcmp.eq.s32.totalorder %v9685_v13, %v10038_v55 }
  0x31   :  { %8749 = vmatprep.subr.msk.bf16.mxu1 %vm8748_vm13, %v12224_v16  ;;  %vm8718_vm0 = vmpackc.low %vm125_vm10, %vm124_vm8  ;;  %vm423_vm8 = vcmp.eq.s32.totalorder %v9688_v14, %v10038_v55  ;;  %vm408_vm10 = vcmp.eq.s32.totalorder %v9705_v15, %v10038_v55  ;;  %vm440_vm13 = vcmp.eq.s32.totalorder %v9712_v18, %v10038_v55 }
  0x32   :  { %8719 = vmatpush3.bf16.msk.msra.mxu0 %vm8718_vm0, %v12224_v16  ;;  %vm8750_vm3 = vmpackc.low %vm157_vm12, %vm156_vm11  ;;  %vm409_vm11 = vcmp.eq.s32.totalorder %v9709_v17, %v10038_v55  ;;  %vm392_vm0 = vcmp.eq.s32.totalorder %v9718_v20, %v10038_v55 }
  0x33   :  { %8751 = vmatpush3.bf16.msk.msra.mxu1 %vm8750_vm3, %v12224_v16  ;;  %vm8752_vm6 = vmpackc.low %vm407_vm15, %vm406_vm14  ;;  %vm441_vm14 = vcmp.eq.s32.totalorder %v9715_v19, %v10038_v55  ;;  %vm424_vm3 = vcmp.eq.s32.totalorder %v9730_v22, %v10038_v55 }
  0x34   :  { %8753 = vmatprep.subr.msk.bf16.mxu0 %vm8752_vm6, %v12224_v16  ;;  %vm8784_vm9 = vmpackc.low %vm439_vm2, %vm438_vm1  ;;  %vm393_vm1 = vcmp.eq.s32.totalorder %v9727_v21, %v10038_v55  ;;  %vm410_vm6 = vcmp.eq.s32.totalorder %v9758_v24, %v10038_v55 }
  0x35   :  { %309 = vmatmul.mubr.f32.vlgmr.msra.gmra.mrb[0].mxu0 %v9643_v2  ;;  %8785 = vmatprep.subr.msk.bf16.mxu1 %vm8784_vm9, %v12224_v16  ;;  %vm8754_vm12 = vmpackc.low %vm391_vm5, %vm390_vm4  ;;  %vm425_vm4 = vcmp.eq.s32.totalorder %v9733_v23, %v10038_v55  ;;  %vm442_vm9 = vcmp.eq.s32.totalorder %v9765_v26, %v10038_v55 }
  0x36   :  { %379 = vmatmul.mubr.f32.vlgmr.msra.gmra.mrb[0].mxu1 %v9648_v3  ;;  %8755 = vmatpush3.bf16.msk.msra.mxu0 %vm8754_vm12, %v12224_v16  ;;  %vm8786_vm15 = vmpackc.low %vm423_vm8, %vm422_vm7  ;;  %vm411_vm7 = vcmp.eq.s32.totalorder %v9762_v25, %v10038_v55  ;;  %vm394_vm12 = vcmp.eq.s32.totalorder %v9771_v28, %v10038_v55 }
  0x37   :  { %8787 = vmatpush3.bf16.msk.msra.mxu1 %vm8786_vm15, %v12224_v16  ;;  %vm8756_vm2 = vmpackc.low %vm409_vm11, %vm408_vm10  ;;  %vm443_vm10 = vcmp.eq.s32.totalorder %v9768_v27, %v10038_v55  ;;  %vm426_vm15 = vcmp.eq.s32.totalorder %v9780_v30, %v10038_v55  ;;  %582 = vmatprep.mubr.f32.mxu0 %v9652_v4 }
  0x38   :  { %8757 = vmatprep.subr.msk.bf16.mxu0 %vm8756_vm2, %v12224_v16  ;;  %vm8788_vm5 = vmpackc.low %vm441_vm14, %vm440_vm13  ;;  %vm395_vm13 = vcmp.eq.s32.totalorder %v9777_v29, %v10038_v55  ;;  %vm412_vm2 = vcmp.eq.s32.totalorder %v9808_v32, %v10038_v55  ;;  %652 = vmatprep.mubr.f32.mxu1 %v9656_v5 }
  0x39   :  { %8789 = vmatprep.subr.msk.bf16.mxu1 %vm8788_vm5, %v12224_v16  ;;  %vm8758_vm8 = vmpackc.low %vm393_vm1, %vm392_vm0  ;;  %vm427_vm0 = vcmp.eq.s32.totalorder %v9783_v31, %v10038_v55  ;;  %vm444_vm5 = vcmp.eq.s32.totalorder %v9815_v34, %v10038_v55 }
  0x3a   :  { %8759 = vmatpush3.bf16.msk.msra.mxu0 %vm8758_vm8, %v12224_v16  ;;  %vm8790_vm11 = vmpackc.low %vm425_vm4, %vm424_vm3  ;;  %vm413_vm3 = vcmp.eq.s32.totalorder %v9812_v33, %v10038_v55  ;;  %vm396_vm8 = vcmp.eq.s32.totalorder %v9821_v36, %v10038_v55 }
  0x3b   :  { %8791 = vmatpush3.bf16.msk.msra.mxu1 %vm8790_vm11, %v12224_v16  ;;  %vm8760_vm14 = vmpackc.low %vm411_vm7, %vm410_vm6  ;;  %vm445_vm6 = vcmp.eq.s32.totalorder %v9818_v35, %v10038_v55  ;;  %vm428_vm11 = vcmp.eq.s32.totalorder %v9830_v38, %v10038_v55 }
  0x3c   :  { %8761 = vmatprep.subr.msk.bf16.mxu0 %vm8760_vm14, %v12224_v16  ;;  %vm8792_vm1 = vmpackc.low %vm443_vm10, %vm442_vm9  ;;  %vm397_vm9 = vcmp.eq.s32.totalorder %v9827_v37, %v10038_v55  ;;  %vm414_vm14 = vcmp.eq.s32.totalorder %v9858_v40, %v10038_v55 }
  0x3d   :  { %8793 = vmatprep.subr.msk.bf16.mxu1 %vm8792_vm1, %v12224_v16  ;;  %vm8762_vm4 = vmpackc.low %vm395_vm13, %vm394_vm12  ;;  %vm429_vm12 = vcmp.eq.s32.totalorder %v9833_v39, %v10038_v55  ;;  %vm446_vm1 = vcmp.eq.s32.totalorder %v9865_v42, %v10038_v55 }
  0x3e   :  { %8763 = vmatpush3.bf16.msk.msra.mxu0 %vm8762_vm4, %v12224_v16  ;;  %vm8794_vm7 = vmpackc.low %vm427_vm0, %vm426_vm15  ;;  %vm415_vm15 = vcmp.eq.s32.totalorder %v9862_v41, %v10038_v55  ;;  %vm398_vm4 = vcmp.eq.s32.totalorder %v9871_v44, %v10038_v55 }
  0x3f   :  { %8795 = vmatpush3.bf16.msk.msra.mxu1 %vm8794_vm7, %v12224_v16  ;;  %vm8764_vm10 = vmpackc.low %vm413_vm3, %vm412_vm2  ;;  %vm447_vm2 = vcmp.eq.s32.totalorder %v9868_v43, %v10038_v55  ;;  %vm430_vm7 = vcmp.eq.s32.totalorder %v9880_v46, %v10038_v55 }
  0x40   :  { %8765 = vmatprep.subr.msk.bf16.mxu0 %vm8764_vm10, %v12224_v16  ;;  %vm8796_vm13 = vmpackc.low %vm445_vm6, %vm444_vm5  ;;  %vm399_vm5 = vcmp.eq.s32.totalorder %v9877_v45, %v10038_v55  ;;  %vm416_vm10 = vcmp.eq.s32.totalorder %v9908_v48, %v10038_v55  ;;  %v12298_v48 = vld [vmem:[#allocation19_spill] sm:$0xff]  ;;  %v12299_v45 = vld [vmem:[#allocation20_spill] sm:$0xff] }
  0x41   :  { %8797 = vmatprep.subr.msk.bf16.mxu1 %vm8796_vm13, %v12224_v16  ;;  %vm8766_vm0 = vmpackc.low %vm397_vm9, %vm396_vm8  ;;  %vm431_vm8 = vcmp.eq.s32.totalorder %v9883_v47, %v10038_v55  ;;  %vm448_vm13 = vcmp.eq.s32.totalorder %v9915_v50, %v10038_v55 }
  0x42   :  { %8767 = vmatpush3.bf16.msk.msra.mxu0 %vm8766_vm0, %v12224_v16  ;;  %vm8798_vm3 = vmpackc.low %vm429_vm12, %vm428_vm11  ;;  %vm417_vm11 = vcmp.eq.s32.totalorder %v9912_v49, %v10038_v55  ;;  %vm400_vm0 = vcmp.eq.s32.totalorder %v9921_v52, %v10038_v55  ;;  %v12295_v49 = vld [vmem:[#allocation16_spill] sm:$0xff]  ;;  %v12296_v52 = vld [vmem:[#allocation17_spill] sm:$0xff] }
  0x43   :  { %8799 = vmatpush3.bf16.msk.msra.mxu1 %vm8798_vm3, %v12224_v16  ;;  %vm8768_vm6 = vmpackc.low %vm415_vm15, %vm414_vm14  ;;  %vm449_vm14 = vcmp.eq.s32.totalorder %v9918_v51, %v10038_v55  ;;  %vm432_vm3 = vcmp.eq.s32.totalorder %v9930_v54, %v10038_v55 }
  0x44   :  { %8769 = vmatprep.subr.msk.bf16.mxu0 %vm8768_vm6, %v12224_v16  ;;  %vm8800_vm9 = vmpackc.low %vm447_vm2, %vm446_vm1  ;;  %vm401_vm1 = vcmp.eq.s32.totalorder %v9927_v53, %v10038_v55  ;;  %vm418_vm6 = vcmp.eq.s32.totalorder %v12295_v49, %v10038_v55  ;;  %v12297_v53 = vld [vmem:[#allocation18_spill] sm:$0xff]  ;;  %v12300_v49 = vld [vmem:[#allocation21_spill] sm:$0xff] }
  0x45   :  { %8801 = vmatprep.subr.msk.bf16.mxu1 %vm8800_vm9, %v12224_v16  ;;  %vm8770_vm12 = vmpackc.low %vm399_vm5, %vm398_vm4  ;;  %vm433_vm4 = vcmp.eq.s32.totalorder %v12294_v7, %v10038_v55  ;;  %vm450_vm9 = vcmp.eq.s32.totalorder %v12297_v53, %v10038_v55 }
  0x46   :  { %8771 = vmatpush3.bf16.msk.msra.mxu0 %vm8770_vm12, %v12224_v16  ;;  %vm8802_vm15 = vmpackc.low %vm431_vm8, %vm430_vm7  ;;  %vm419_vm7 = vcmp.eq.s32.totalorder %v12296_v52, %v10038_v55  ;;  %vm402_vm12 = vcmp.eq.s32.totalorder %v12299_v45, %v10038_v55 }
  0x47   :  { %8803 = vmatpush3.bf16.msk.msra.mxu1 %vm8802_vm15, %v12224_v16  ;;  %vm8772_vm2 = vmpackc.low %vm417_vm11, %vm416_vm10  ;;  %vm451_vm10 = vcmp.eq.s32.totalorder %v12298_v48, %v10038_v55  ;;  %vm434_vm15 = vcmp.eq.s32.totalorder %v9980_v62, %v10038_v55 }
  0x48   :  { %8773 = vmatprep.subr.msk.bf16.mxu0 %vm8772_vm2, %v12224_v16  ;;  %vm8804_vm5 = vmpackc.low %vm449_vm14, %vm448_vm13  ;;  %vm403_vm13 = vcmp.eq.s32.totalorder %v12300_v49, %v10038_v55  ;;  %vm420_vm2 = vcmp.eq.s32.totalorder %v10008_v0, %v10038_v55 }
  0x49   :  { %8805 = vmatprep.subr.msk.bf16.mxu1 %vm8804_vm5, %v12224_v16  ;;  %vm8774_vm8 = vmpackc.low %vm401_vm1, %vm400_vm0  ;;  %vm435_vm0 = vcmp.eq.s32.totalorder %v9983_v63, %v10038_v55  ;;  %vm452_vm5 = vcmp.eq.s32.totalorder %v10015_v60, %v10038_v55 }
  0x4a   :  { %8775 = vmatpush3.bf16.msk.msra.mxu0 %vm8774_vm8, %v12224_v16  ;;  %vm8806_vm11 = vmpackc.low %vm433_vm4, %vm432_vm3  ;;  %vm421_vm3 = vcmp.eq.s32.totalorder %v10012_v1, %v10038_v55  ;;  %vm404_vm8 = vcmp.eq.s32.totalorder %v10021_v59, %v10038_v55 }
  0x4b   :  { %8807 = vmatpush3.bf16.msk.msra.mxu1 %vm8806_vm11, %v12224_v16  ;;  %vm8776_vm14 = vmpackc.low %vm419_vm7, %vm418_vm6  ;;  %vm453_vm6 = vcmp.eq.s32.totalorder %v10018_v61, %v10038_v55  ;;  %vm436_vm11 = vcmp.eq.s32.totalorder %v10030_v57, %v10038_v55 }
  0x4c   :  { %8777 = vmatprep.subr.msk.bf16.mxu0 %vm8776_vm14, %v12224_v16  ;;  %vm8808_vm1 = vmpackc.low %vm451_vm10, %vm450_vm9  ;;  %vm405_vm9 = vcmp.eq.s32.totalorder %v10027_v58, %v10038_v55  ;;  %v12233_v58 = vmov 0.0  }
  0x4d   :  { %8809 = vmatprep.subr.msk.bf16.mxu1 %vm8808_vm1, %v12224_v16  ;;  %vm8778_vm4 = vmpackc.low %vm403_vm13, %vm402_vm12  ;;  %vm437_vm12 = vcmp.eq.s32.totalorder %v10033_v56, %v10038_v55  ;;  %v10241_v55 = vld [vmem:[%s12190_s3 + $0x2] ss:$0 sm:$0xff] }
  0x4e   :  { %8779 = vmatpush3.bf16.msk.msra.mxu0 %vm8778_vm4, %v12224_v16  ;;  %vm8810_vm7 = vmpackc.low %vm435_vm0, %vm434_vm15  ;;  %vm9578_vm0 = vmmov 0   ;;  %vm867_vm1 = vcmp.eq.s32.totalorder %v9674_v10, %v10241_v55  ;;  %vm852_vm4 = vcmp.eq.s32.totalorder %v9688_v14, %v10241_v55 }
  0x4f   :  { %8811 = vmatpush3.bf16.msk.msra.mxu1 %vm8810_vm7, %v12224_v16  ;;  %vm8780_vm10 = vmpackc.low %vm421_vm3, %vm420_vm2  ;;  %vm868_vm2 = vcmp.eq.s32.totalorder %v9677_v11, %v10241_v55  ;;  %vm851_vm3 = vcmp.eq.s32.totalorder %v9685_v13, %v10241_v55  ;;  %vm870_vm7 = vcmp.eq.s32.totalorder %v9715_v19, %v10241_v55 }
  0x50   :  { %8781 = vmatprep.subr.msk.bf16.mxu0 %vm8780_vm10, %v12224_v16  ;;  %vm8812_vm13 = vmpackc.low %vm453_vm6, %vm452_vm5  ;;  %vm664_vm5 = vcmask 1043456   ;;  %vm869_vm6 = vcmp.eq.s32.totalorder %v9712_v18, %v10241_v55 }
  0x51   :  { %8813 = vmatprep.subr.msk.bf16.mxu1 %vm8812_vm13, %v12224_v16  ;;  %vm8782_vm14 = vmpackc.low %vm405_vm9, %vm404_vm8  ;;  %vm660_vm9 = vcmask 31744   ;;  %vm854_vm13 = vcmp.eq.s32.totalorder %v9733_v23, %v10241_v55 }
  0x52   :  { %8783 = vmatpush3.bf16.msk.msra.mxu0 %vm8782_vm14, %v12224_v16  ;;  %vm8814_vm15 = vmpackc.low %vm437_vm12, %vm436_vm11  ;;  %vm853_vm12 = vcmp.eq.s32.totalorder %v9730_v22, %v10241_v55  ;;  %vm871_vm14 = vcmp.eq.s32.totalorder %v9765_v26, %v10241_v55 }
  0x53   :  { %8815 = vmatpush3.bf16.msk.msra.mxu1 %vm8814_vm15, %v12224_v16  ;;  %8139 = vmatprep.subr.mxu0 %v12233_v58  ;;  %vm8848_vm8 = vmpackc.low %vm868_vm2, %vm867_vm1  ;;  %vm872_vm15 = vcmp.eq.s32.totalorder %v9768_v27, %v10241_v55 }
  0x54   :  { %8144 = vmatprep.subr.mxu1 %v12233_v58  ;;  %vm8850_vm10 = vmpackc.low %vm852_vm4, %vm851_vm3  ;;  %vm855_vm3 = vcmp.eq.s32.totalorder %v9780_v30, %v10241_v55  ;;  %vm856_vm4 = vcmp.eq.s32.totalorder %v9783_v31, %v10241_v55 }
  0x55   :  { %583 = vmatmul.mubr.f32.vlgmr.msra.gmra.mrb[2].mxu0 %v9643_v2  ;;  %vm8852_vm11 = vmpackc.low %vm870_vm7, %vm869_vm6  ;;  %vm873_vm6 = vcmp.eq.s32.totalorder %v9815_v34, %v10241_v55  ;;  %vm874_vm7 = vcmp.eq.s32.totalorder %v9818_v35, %v10241_v55 }
  0x56   :  { %653 = vmatmul.mubr.f32.vlgmr.msra.gmra.mrb[2].mxu1 %v9648_v3  ;;  %8141 = vmatprep.mubr.msk.f32.mxu0 %vm9578_vm0, %v12233_v58  ;;  %vm8854_vm1 = vmpackc.low %vm854_vm13, %vm853_vm12  ;;  %vm858_vm12 = vcmp.eq.s32.totalorder %v9833_v39, %v10241_v55  ;;  %vm875_vm13 = vcmp.eq.s32.totalorder %v9865_v42, %v10241_v55 }
  0x57   :  { %8146 = vmatprep.mubr.msk.f32.mxu1 %vm9578_vm0, %v12233_v58  ;;  %vm8856_vm2 = vmpackc.low %vm872_vm15, %vm871_vm14  ;;  %vm876_vm14 = vcmp.eq.s32.totalorder %v9868_v43, %v10241_v55 }
 0x108   :  { %v7289_v16 = vpop.f32.mrb[0].mxu0 }
 0x109   :  { %v7324_v2 = vpop.f32.mrb[0].mxu1  ;;  %v7290_v59 = vpop.f32.mrb[1].mxu0 }
 0x10a   :  { %v7291_v1 = vadd.f32 %v7290_v59, %v7289_v16  ;;  %v7325_v0 = vpop.f32.mrb[1].mxu1  ;;  %v12301_v59 = vmov 1.0|1.0  }
 0x10b   :  { %v7326_v49 = vadd.f32 %v7325_v0, %v7324_v2  ;;  %v384_v2 = vld [vmem:[%s12188_s1] sm:$0xff] }
 0x10d   :  { %v381_v16 = vadd.f32 %v7326_v49, %v7291_v1 }
 0x10f   :  { %8145 = vmatpush3.msk.msra.mxu1 %vm664_vm5, %v381_v16 }
 0x110   :  { %8849 = vmatprep.subr.msk.bf16.mxu1 %vm8848_vm8, %v12301_v59  ;;  %8147 = vmatmul.mubr.msk.f32.vlgmr.msra.gmra.mrb[4].mxu1 %vm660_vm9, %v384_v2  ;;  %vm8858_vm8 = vmpackc.low %vm856_vm4, %vm855_vm3  ;;  %vm860_vm3 = vcmp.eq.s32.totalorder %v9883_v47, %v10241_v55  ;;  %vm877_vm4 = vcmp.eq.s32.totalorder %v9915_v50, %v10241_v55 }
 0x111   :  { %8851 = vmatpush3.bf16.msk.msra.mxu1 %vm8850_vm10, %v12301_v59  ;;  %1081 = vmatprep.mubr.f32.mxu1 %v9656_v5  ;;  %vm8860_vm10 = vmpackc.low %vm874_vm7, %vm873_vm6  ;;  %vm878_vm6 = vcmp.eq.s32.totalorder %v9918_v51, %v10241_v55 }
 0x112   :  { %8853 = vmatprep.subr.msk.bf16.mxu1 %vm8852_vm11, %v12301_v59  ;;  %vm857_vm11 = vcmp.eq.s32.totalorder %v9830_v38, %v10241_v55 }
 0x113   :  { %vm8862_vm15 = vmpackc.low %vm858_vm12, %vm857_vm11  ;;  %vm862_vm11 = vcmp.eq.s32.totalorder %v12294_v7, %v10241_v55  ;;  %vm879_vm12 = vcmp.eq.s32.totalorder %v12297_v53, %v10241_v55 }
 0x115   :  { %8855 = vmatpush3.bf16.msk.msra.mxu1 %vm8854_vm1, %v12301_v59  ;;  %vm8864_vm1 = vmpackc.low %vm876_vm14, %vm875_vm13  ;;  %vm880_vm13 = vcmp.eq.s32.totalorder %v12298_v48, %v10241_v55 }
 0x116   :  { %8857 = vmatprep.subr.msk.bf16.mxu1 %vm8856_vm2, %v12301_v59  ;;  %vm859_vm2 = vcmp.eq.s32.totalorder %v9880_v46, %v10241_v55 }
 0x117   :  { %vm8866_vm7 = vmpackc.low %vm860_vm3, %vm859_vm2  ;;  %vm864_vm2 = vcmp.eq.s32.totalorder %v9983_v63, %v10241_v55  ;;  %vm881_vm3 = vcmp.eq.s32.totalorder %v10015_v60, %v10241_v55  ;;  %v12313_v60 = vmov 0.0   ;;  %v12314_v63 = vld [vmem:[#allocation6_spill] sm:$0xff] }
 0x119   :  { %8859 = vmatpush3.bf16.msk.msra.mxu1 %vm8858_vm8, %v12301_v59  ;;  %vm8868_vm8 = vmpackc.low %vm878_vm6, %vm877_vm4  ;;  %vm882_vm4 = vcmp.eq.s32.totalorder %v10018_v61, %v10241_v55  ;;  %v12312_v61 = vld [vmem:[#allocation29_spill] sm:$0xff] }
 0x11a   :  { %8861 = vmatprep.subr.msk.bf16.mxu1 %vm8860_vm10, %v12301_v59  ;;  %vm861_vm10 = vcmp.eq.s32.totalorder %v9930_v54, %v10241_v55 }
 0x11b   :  { %vm8870_vm14 = vmpackc.low %vm862_vm11, %vm861_vm10  ;;  %vm866_vm10 = vcmp.eq.s32.totalorder %v10033_v56, %v10241_v55  ;;  %vm835_vm11 = vcmp.eq.s32.totalorder %v9668_v8, %v10241_v55  ;;  %v12310_v56 = vld [vmem:[#allocation25_spill] sm:$0xff] }
 0x11d   :  { %8863 = vmatpush3.bf16.msk.msra.mxu1 %vm8862_vm15, %v12301_v59  ;;  %vm8872_vm15 = vmpackc.low %vm880_vm13, %vm879_vm12  ;;  %vm836_vm12 = vcmp.eq.s32.totalorder %v9671_v9, %v10241_v55 }
 0x11e   :  { %8865 = vmatprep.subr.msk.bf16.mxu1 %vm8864_vm1, %v12301_v59  ;;  %vm863_vm1 = vcmp.eq.s32.totalorder %v9980_v62, %v10241_v55  ;;  %v10424_v62 = vld [vmem:[%s12190_s3 + $0x3] ss:$0 sm:$0xff] }
 0x11f   :  { %vm8874_vm6 = vmpackc.low %vm864_vm2, %vm863_vm1  ;;  %vm837_vm1 = vcmp.eq.s32.totalorder %v9705_v15, %v10241_v55  ;;  %vm838_vm2 = vcmp.eq.s32.totalorder %v9709_v17, %v10241_v55 }
 0x121   :  { %8867 = vmatpush3.bf16.msk.msra.mxu1 %vm8866_vm7, %v12301_v59  ;;  %vm8876_vm7 = vmpackc.low %vm882_vm4, %vm881_vm3 }
 0x122   :  { %8869 = vmatprep.subr.msk.bf16.mxu1 %vm8868_vm8, %v12301_v59  ;;  %vm865_vm8 = vcmp.eq.s32.totalorder %v10030_v57, %v10241_v55  ;;  %vm8816_vm3 = vmpackc.low %vm836_vm12, %vm835_vm11  ;;  %vm840_vm11 = vcmp.eq.s32.totalorder %v9762_v25, %v10241_v55  ;;  %v12311_v57 = vld [vmem:[#allocation28_spill] sm:$0xff] }
 0x123   :  { %vm8878_vm13 = vmpackc.low %vm866_vm10, %vm865_vm8  ;;  %vm822_vm8 = vcmp.eq.s32.totalorder %v9727_v21, %v10241_v55  ;;  %vm839_vm10 = vcmp.eq.s32.totalorder %v9758_v24, %v10241_v55 }
 0x125   :  { %8871 = vmatpush3.bf16.msk.msra.mxu1 %vm8870_vm14, %v12301_v59  ;;  %vm819_vm14 = vcmp.eq.s32.totalorder %v9658_v6, %v10241_v55 }
 0x126   :  { %8873 = vmatprep.subr.msk.bf16.mxu1 %vm8872_vm15, %v12301_v59  ;;  %vm820_vm15 = vcmp.eq.s32.totalorder %v9680_v12, %v10241_v55 }
 0x127   :  { %vm8818_vm4 = vmpackc.low %vm820_vm15, %vm819_vm14  ;;  %vm823_vm14 = vcmp.eq.s32.totalorder %v9771_v28, %v10241_v55  ;;  %vm824_vm15 = vcmp.eq.s32.totalorder %v9777_v29, %v10241_v55 }
 0x128   :  { %v7359_v49 = vpop.f32.mrb[2].mxu0 }
 0x129   :  { %v7394_v0 = vpop.f32.mrb[2].mxu1  ;;  %v7360_v1 = vpop.f32.mrb[3].mxu0  ;;  %8875 = vmatpush3.bf16.msk.msra.mxu1 %vm8874_vm6, %v12301_v59  ;;  %vm8820_vm6 = vmpackc.low %vm838_vm2, %vm837_vm1  ;;  %vm841_vm1 = vcmp.eq.s32.totalorder %v9808_v32, %v10241_v55  ;;  %vm842_vm2 = vcmp.eq.s32.totalorder %v9812_v33, %v10241_v55 }
 0x12a   :  { %v7361_v16 = vadd.f32 %v7360_v1, %v7359_v49  ;;  %v7395_v2 = vpop.f32.mrb[3].mxu1  ;;  %8877 = vmatprep.subr.msk.bf16.mxu1 %vm8876_vm7, %v12301_v59  ;;  %v6535_v1 = vld [vmem:[%s12188_s1 + $0x8] sm:$0xff]  ;;  %vm821_vm7 = vcmp.eq.s32.totalorder %v9718_v20, %v10241_v55 }
 0x12b   :  { %v7396_v58 = vadd.f32 %v7395_v2, %v7394_v0  ;;  %vm8822_vm12 = vmpackc.low %vm822_vm8, %vm821_vm7  ;;  %vm826_vm7 = vcmp.eq.s32.totalorder %v9827_v37, %v10241_v55  ;;  %vm843_vm8 = vcmp.eq.s32.totalorder %v9858_v40, %v10241_v55  ;;  %v12304_v0 = vld [vmem:[#allocation12_spill] sm:$0xff]  ;;  %v12306_v2 = vld [vmem:[#allocation14_spill] sm:$0xff] }
 0x12d   :  { %v655_v49 = vadd.f32 %v7396_v58, %v7361_v16  ;;  %8879 = vmatpush3.bf16.msk.msra.mxu1 %vm8878_vm13, %v12301_v59  ;;  %vm8824_vm13 = vmpackc.low %vm840_vm11, %vm839_vm10  ;;  %vm844_vm10 = vcmp.eq.s32.totalorder %v9862_v41, %v10241_v55  ;;  %v12303_v58 = vld [vmem:[#allocation11_spill] sm:$0xff]  ;;  %v12305_v16 = vld [vmem:[#allocation13_spill] sm:$0xff] }
 0x12f   :  { %8140 = vmatpush3.msk.msra.mxu0 %vm664_vm5, %v655_v49  ;;  %v12307_v49 = vld [vmem:[#allocation16_spill] sm:$0xff] }
 0x130   :  { %8142 = vmatmul.mubr.msk.f32.vlgmr.msra.gmra.mrb[4].mxu0 %vm660_vm9, %v6535_v1  ;;  %8817 = vmatprep.subr.msk.bf16.mxu0 %vm8816_vm3, %v12301_v59  ;;  %vm8826_vm3 = vmpackc.low %vm824_vm15, %vm823_vm14  ;;  %vm845_vm15 = vcmp.eq.s32.totalorder %v12303_v58, %v10241_v55  ;;  %v12308_v1 = vld [vmem:[#allocation21_spill] sm:$0xff] }
 0x131   :  { %8819 = vmatpush3.bf16.msk.msra.mxu0 %vm8818_vm4, %v12301_v59  ;;  %1011 = vmatprep.mubr.f32.mxu0 %v9652_v4  ;;  %vm8828_vm4 = vmpackc.low %vm842_vm2, %vm841_vm1  ;;  %vm846_vm1 = vcmp.eq.s32.totalorder %v12304_v0, %v10241_v55 }
 0x132   :  { %8821 = vmatprep.subr.msk.bf16.mxu0 %vm8820_vm6, %v12301_v59  ;;  %1082 = vmatmul.mubr.f32.vlgmr.msra.gmra.mrb[6].mxu1 %v9648_v3  ;;  %vm825_vm6 = vcmp.eq.s32.totalorder %v9821_v36, %v10241_v55  ;;  %v12302_v3 = vld [vmem:[#allocation10_spill] sm:$0xff] }
 0x133   :  { %1363 = vmatprep.mubr.f32.mxu1 %v9652_v4  ;;  %vm8830_vm11 = vmpackc.low %vm826_vm7, %vm825_vm6  ;;  %vm828_vm14 = vcmp.eq.s32.totalorder %v12302_v3, %v10241_v55  ;;  %vm830_vm6 = vcmp.eq.s32.totalorder %v12306_v2, %v10241_v55  ;;  %vm847_vm7 = vcmp.eq.s32.totalorder %v12307_v49, %v10241_v55  ;;  %v12309_v4 = vld [vmem:[#allocation24_spill] sm:$0xff] }
 0x135   :  { %8823 = vmatpush3.bf16.msk.msra.mxu0 %vm8822_vm12, %v12301_v59  ;;  %vm8832_vm12 = vmpackc.low %vm844_vm10, %vm843_vm8  ;;  %vm848_vm8 = vcmp.eq.s32.totalorder %v12296_v52, %v10241_v55 }
 0x136   :  { %8825 = vmatprep.subr.msk.bf16.mxu0 %vm8824_vm13, %v12301_v59  ;;  %vm827_vm13 = vcmp.eq.s32.totalorder %v9871_v44, %v10241_v55 }
 0x137   :  { %vm8834_vm2 = vmpackc.low %vm828_vm14, %vm827_vm13  ;;  %vm832_vm13 = vcmp.eq.s32.totalorder %v12308_v1, %v10241_v55  ;;  %vm849_vm14 = vcmp.eq.s32.totalorder %v12309_v4, %v10241_v55 }
 0x139   :  { %8827 = vmatpush3.bf16.msk.msra.mxu0 %vm8826_vm3, %v12301_v59  ;;  %vm8836_vm3 = vmpackc.low %vm846_vm1, %vm845_vm15  ;;  %vm850_vm15 = vcmp.eq.s32.totalorder %v12310_v56, %v10241_v55 }
 0x13a   :  { %8829 = vmatprep.subr.msk.bf16.mxu0 %vm8828_vm4, %v12301_v59  ;;  %vm829_vm4 = vcmp.eq.s32.totalorder %v12305_v16, %v10241_v55 }
 0x13b   :  { %vm8838_vm10 = vmpackc.low %vm830_vm6, %vm829_vm4  ;;  %vm834_vm4 = vcmp.eq.s32.totalorder %v12312_v61, %v10241_v55 }
 0x13d   :  { %8831 = vmatpush3.bf16.msk.msra.mxu0 %vm8830_vm11, %v12301_v59  ;;  %vm8840_vm11 = vmpackc.low %vm848_vm8, %vm847_vm7  ;;  %vm1187_vm7 = vcmp.eq.s32.totalorder %v9668_v8, %v10424_v62  ;;  %vm1188_vm8 = vcmp.eq.s32.totalorder %v9671_v9, %v10424_v62 }
 0x13e   :  { %8833 = vmatprep.subr.msk.bf16.mxu0 %vm8832_vm12, %v12301_v59  ;;  %vm831_vm12 = vcmp.eq.s32.totalorder %v12299_v45, %v10241_v55 }
 0x13f   :  { %vm8842_vm1 = vmpackc.low %vm832_vm13, %vm831_vm12  ;;  %vm1172_vm12 = vcmp.eq.s32.totalorder %v9680_v12, %v10424_v62 }
 0x141   :  { %8835 = vmatpush3.bf16.msk.msra.mxu0 %vm8834_vm2, %v12301_v59  ;;  %vm8844_vm2 = vmpackc.low %vm850_vm15, %vm849_vm14  ;;  %vm1189_vm14 = vcmp.eq.s32.totalorder %v9705_v15, %v10424_v62  ;;  %vm1190_vm15 = vcmp.eq.s32.totalorder %v9709_v17, %v10424_v62 }
 0x142   :  { %8837 = vmatprep.subr.msk.bf16.mxu0 %vm8836_vm3, %v12301_v59  ;;  %vm833_vm3 = vcmp.eq.s32.totalorder %v12311_v57, %v10241_v55 }
 0x143   :  { %vm8846_vm6 = vmpackc.low %vm834_vm4, %vm833_vm3 }
 0x144   :  { %vm8884_vm3 = vmpackc.low %vm1190_vm15, %vm1189_vm14  ;;  %vm1194_vm14 = vcmp.eq.s32.totalorder %v9812_v33, %v10424_v62  ;;  %vm1177_vm15 = vcmp.eq.s32.totalorder %v9821_v36, %v10424_v62 }
 0x145   :  { %8839 = vmatpush3.bf16.msk.msra.mxu0 %vm8838_vm10, %v12301_v59  ;;  %vm8880_vm10 = vmpackc.low %vm1188_vm8, %vm1187_vm7  ;;  %vm1192_vm7 = vcmp.eq.s32.totalorder %v9762_v25, %v10424_v62  ;;  %vm1175_vm8 = vcmp.eq.s32.totalorder %v9771_v28, %v10424_v62 }
 0x146   :  { %8841 = vmatprep.subr.msk.bf16.mxu0 %vm8840_vm11, %v12301_v59  ;;  %vm1171_vm11 = vcmp.eq.s32.totalorder %v9658_v6, %v10424_v62  ;;  %8881 = vmatprep.subr.msk.bf16.mxu1 %vm8880_vm10, %v12301_v59  ;;  %vm1176_vm10 = vcmp.eq.s32.totalorder %v9777_v29, %v10424_v62 }
 0x147   :  { %vm8882_vm13 = vmpackc.low %vm1172_vm12, %vm1171_vm11 }
 0x148   :  { %8883 = vmatpush3.bf16.msk.msra.mxu1 %vm8882_vm13, %v12301_v59  ;;  %vm8890_vm12 = vmpackc.low %vm1176_vm10, %vm1175_vm8  ;;  %vm1193_vm13 = vcmp.eq.s32.totalorder %v9808_v32, %v10424_v62  ;;  %vm1180_vm8 = vcmp.eq.s32.totalorder %v12302_v3, %v10424_v62 }
 0x149   :  { %8843 = vmatpush3.bf16.msk.msra.mxu0 %vm8842_vm1, %v12301_v59  ;;  %vm1173_vm1 = vcmp.eq.s32.totalorder %v9718_v20, %v10424_v62  ;;  %8885 = vmatprep.subr.msk.bf16.mxu1 %vm8884_vm3, %v12301_v59 }
 0x14a   :  { %8845 = vmatprep.subr.msk.bf16.mxu0 %vm8844_vm2, %v12301_v59  ;;  %vm1174_vm2 = vcmp.eq.s32.totalorder %v9727_v21, %v10424_v62 }
 0x14b   :  { %vm8886_vm4 = vmpackc.low %vm1174_vm2, %vm1173_vm1  ;;  %vm1178_vm1 = vcmp.eq.s32.totalorder %v9827_v37, %v10424_v62 }
 0x14c   :  { %8887 = vmatpush3.bf16.msk.msra.mxu1 %vm8886_vm4, %v12301_v59  ;;  %vm8892_vm2 = vmpackc.low %vm1194_vm14, %vm1193_vm13  ;;  %vm1195_vm4 = vcmp.eq.s32.totalorder %v9858_v40, %v10424_v62  ;;  %vm1198_vm13 = vcmp.eq.s32.totalorder %v12304_v0, %v10424_v62  ;;  %vm1181_vm14 = vcmp.eq.s32.totalorder %v12305_v16, %v10424_v62 }
 0x14d   :  { %8847 = vmatpush3.bf16.msk.msra.mxu0 %vm8846_vm6, %v12301_v59  ;;  %vm1191_vm6 = vcmp.eq.s32.totalorder %v9758_v24, %v10424_v62  ;;  %vm8894_vm3 = vmpackc.low %vm1178_vm1, %vm1177_vm15  ;;  %vm1182_vm15 = vcmp.eq.s32.totalorder %v12306_v2, %v10424_v62 }
 0x14e   :  { %8149 = vmatprep.subr.mxu0 %v12313_v60  ;;  %vm8888_vm11 = vmpackc.low %vm1192_vm7, %vm1191_vm6  ;;  %vm1196_vm6 = vcmp.eq.s32.totalorder %v9862_v41, %v10424_v62  ;;  %vm1179_vm7 = vcmp.eq.s32.totalorder %v9871_v44, %v10424_v62 }
 0x14f   :  { %8889 = vmatprep.subr.msk.bf16.mxu1 %vm8888_vm11, %v12301_v59  ;;  %vm8896_vm10 = vmpackc.low %vm1196_vm6, %vm1195_vm4  ;;  %vm1200_vm4 = vcmp.eq.s32.totalorder %v12296_v52, %v10424_v62  ;;  %vm1183_vm6 = vcmp.eq.s32.totalorder %v12299_v45, %v10424_v62 }
 0x150   :  { %1012 = vmatmul.mubr.f32.vlgmr.msra.gmra.mrb[6].mxu0 %v12314_v63  ;;  %8891 = vmatpush3.bf16.msk.msra.mxu1 %vm8890_vm12, %v12301_v59  ;;  %vm8898_vm11 = vmpackc.low %vm1180_vm8, %vm1179_vm7  ;;  %vm1197_vm12 = vcmp.eq.s32.totalorder %v12303_v58, %v10424_v62  ;;  %vm1184_vm7 = vcmp.eq.s32.totalorder %v12308_v1, %v10424_v62  ;;  %v10510_v63 = vld [vmem:[%s12187_s0] sm:$0xff] }
 0x151   :  { %8151 = vmatprep.mubr.msk.f32.mxu0 %vm9578_vm0, %v12313_v60  ;;  %8893 = vmatprep.subr.msk.bf16.mxu1 %vm8892_vm2, %v12301_v59  ;;  %vm8900_vm1 = vmpackc.low %vm1198_vm13, %vm1197_vm12  ;;  %vm1202_vm12 = vcmp.eq.s32.totalorder %v12310_v56, %v10424_v62  ;;  %vm1185_vm13 = vcmp.eq.s32.totalorder %v12311_v57, %v10424_v62  ;;  %12315 = vst [vmem:[#allocation15_spill] sm:$0xff] %v10510_v63 }
 0x152   :  { %vm8902_vm2 = vmpackc.low %vm1182_vm15, %vm1181_vm14  ;;  %vm1186_vm14 = vcmp.eq.s32.totalorder %v12312_v61, %v10424_v62 }
 0x154   :  { %8895 = vmatpush3.bf16.msk.msra.mxu1 %vm8894_vm3, %v12301_v59  ;;  %vm1199_vm3 = vcmp.eq.s32.totalorder %v12307_v49, %v10424_v62 }
 0x155   :  { %8897 = vmatprep.subr.msk.bf16.mxu1 %vm8896_vm10, %v12301_v59  ;;  %vm8904_vm8 = vmpackc.low %vm1200_vm4, %vm1199_vm3  ;;  %vm1220_vm3 = vcmp.eq.s32.totalorder %v9677_v11, %v10424_v62  ;;  %vm1203_vm4 = vcmp.eq.s32.totalorder %v9685_v13, %v10424_v62 }
 0x156   :  { %vm8906_vm10 = vmpackc.low %vm1184_vm7, %vm1183_vm6  ;;  %vm1204_vm6 = vcmp.eq.s32.totalorder %v9688_v14, %v10424_v62  ;;  %vm1221_vm7 = vcmp.eq.s32.totalorder %v9712_v18, %v10424_v62 }
 0x158   :  { %8899 = vmatpush3.bf16.msk.msra.mxu1 %vm8898_vm11, %v12301_v59  ;;  %vm1201_vm11 = vcmp.eq.s32.totalorder %v12309_v4, %v10424_v62 }
 0x159   :  { %8901 = vmatprep.subr.msk.bf16.mxu1 %vm8900_vm1, %v12301_v59  ;;  %vm8908_vm15 = vmpackc.low %vm1202_vm12, %vm1201_vm11 }
 0x15a   :  { %vm8910_vm1 = vmpackc.low %vm1186_vm14, %vm1185_vm13  ;;  %vm1205_vm13 = vcmp.eq.s32.totalorder %v9730_v22, %v10424_v62  ;;  %vm1206_vm14 = vcmp.eq.s32.totalorder %v9733_v23, %v10424_v62 }
 0x15b   :  { %vm8914_vm11 = vmpackc.low %vm1204_vm6, %vm1203_vm4  ;;  %vm1207_vm4 = vcmp.eq.s32.totalorder %v9780_v30, %v10424_v62  ;;  %vm1208_vm6 = vcmp.eq.s32.totalorder %v9783_v31, %v10424_v62 }
 0x15c   :  { %8903 = vmatpush3.bf16.msk.msra.mxu1 %vm8902_vm2, %v12301_v59  ;;  %vm1219_vm2 = vcmp.eq.s32.totalorder %v9674_v10, %v10424_v62 }
 0x15d   :  { %8905 = vmatprep.subr.msk.bf16.mxu1 %vm8904_vm8, %v12301_v59  ;;  %vm1222_vm8 = vcmp.eq.s32.totalorder %v9715_v19, %v10424_v62 }
 0x15e   :  { %vm8916_vm12 = vmpackc.low %vm1222_vm8, %vm1221_vm7  ;;  %vm1225_vm7 = vcmp.eq.s32.totalorder %v9815_v34, %v10424_v62  ;;  %vm1226_vm8 = vcmp.eq.s32.totalorder %v9818_v35, %v10424_v62 }
 0x160   :  { %8907 = vmatpush3.bf16.msk.msra.mxu1 %vm8906_vm10, %v12301_v59  ;;  %vm8912_vm10 = vmpackc.low %vm1220_vm3, %vm1219_vm2 }
 0x161   :  { %8909 = vmatprep.subr.msk.bf16.mxu1 %vm8908_vm15, %v12301_v59  ;;  %vm1223_vm15 = vcmp.eq.s32.totalorder %v9765_v26, %v10424_v62  ;;  %vm8918_vm2 = vmpackc.low %vm1206_vm14, %vm1205_vm13  ;;  %vm1210_vm13 = vcmp.eq.s32.totalorder %v9833_v39, %v10424_v62  ;;  %vm1227_vm14 = vcmp.eq.s32.totalorder %v9865_v42, %v10424_v62 }
 0x164   :  { %8911 = vmatpush3.bf16.msk.msra.mxu1 %vm8910_vm1, %v12301_v59  ;;  %vm1224_vm1 = vcmp.eq.s32.totalorder %v9768_v27, %v10424_v62 }
 0x165   :  { %8154 = vmatprep.subr.mxu1 %v12313_v60  ;;  %vm8920_vm3 = vmpackc.low %vm1224_vm1, %vm1223_vm15  ;;  %vm1228_vm15 = vcmp.eq.s32.totalorder %v9868_v43, %v10424_v62 }
 0x167   :  { %1364 = vmatmul.mubr.f32.vlgmr.msra.gmra.mrb[8].mxu1 %v10510_v63 }
 0x168   :  { %8156 = vmatprep.mubr.msk.f32.mxu1 %vm9578_vm0, %v12313_v60 }
 0x1e3   :  { %v810_v55 = vpop.f32.mrb[4].mxu1 }
 0x1e4   :  { %v8148_v61 = vpop.f32.mrb[5].mxu1 }
 0x1e5   :  { %v12318_v61 = vld [vmem:[#allocation26_spill] sm:$0xff] }
 0x203   :  { %v734_v57 = vpop.f32.mrb[4].mxu0 }
 0x204   :  { %v10515_v56 = vadd.f32 %v810_v55, %v734_v57  ;;  %v8143_v4 = vpop.f32.mrb[5].mxu0  ;;  %v12317_v57 = vld [vmem:[#allocation23_spill] sm:$0xff] }
 0x205   :  { %v7468_v1 = vpop.f32.mrb[6].mxu1  ;;  %v12322_v55 = vld [vmem:[#allocation7_spill] sm:$0xff] }
 0x206   :  { %v7469_v45 = vpop.f32.mrb[7].mxu1 }
 0x207   :  { %v7470_v52 = vadd.f32 %v7469_v45, %v7468_v1  ;;  %v6605_v45 = vld [vmem:[%s12188_s1 + $0x10] sm:$0xff] }
 0x208   :  { %v12321_v1 = vld [vmem:[#allocation31_spill] sm:$0xff] }
 0x223   :  { %v7433_v49 = vpop.f32.mrb[6].mxu0 }
 0x224   :  { %v7434_v2 = vpop.f32.mrb[7].mxu0 }
 0x225   :  { %v7435_v63 = vadd.f32 %v7434_v2, %v7433_v49  ;;  %v12319_v2 = vld [vmem:[#allocation27_spill] sm:$0xff]  ;;  %v12320_v49 = vld [vmem:[#allocation30_spill] sm:$0xff] }
 0x227   :  { %v1084_v4 = vadd.f32 %v7470_v52, %v7435_v63  ;;  %v12316_v52 = vld [vmem:[#allocation22_spill] sm:$0xff] }
 0x228   :  { %v10606_v63 = vld [vmem:[%s12187_s0 + $0x8] sm:$0xff] }
 0x229   :  { %8150 = vmatpush3.msk.msra.mxu0 %vm664_vm5, %v1084_v4 }
 0x22a   :  { %8152 = vmatmul.mubr.msk.f32.vlgmr.msra.gmra.mrb[8].mxu0 %vm660_vm9, %v6605_v45  ;;  %8913 = vmatprep.subr.msk.bf16.mxu0 %vm8912_vm10, %v12301_v59  ;;  %vm8922_vm10 = vmpackc.low %vm1208_vm6, %vm1207_vm4  ;;  %vm1212_vm4 = vcmp.eq.s32.totalorder %v9883_v47, %v10424_v62  ;;  %vm1229_vm6 = vcmp.eq.s32.totalorder %v9915_v50, %v10424_v62 }
 0x22b   :  { %8915 = vmatpush3.bf16.msk.msra.mxu0 %vm8914_vm11, %v12301_v59  ;;  %1433 = vmatprep.mubr.f32.mxu0 %v9656_v5  ;;  %vm8924_vm11 = vmpackc.low %vm1226_vm8, %vm1225_vm7  ;;  %vm1230_vm7 = vcmp.eq.s32.totalorder %v9918_v51, %v10424_v62 }
 0x22c   :  { %8917 = vmatprep.subr.msk.bf16.mxu0 %vm8916_vm12, %v12301_v59  ;;  %vm1209_vm12 = vcmp.eq.s32.totalorder %v9830_v38, %v10424_v62 }
 0x22d   :  { %vm8926_vm1 = vmpackc.low %vm1210_vm13, %vm1209_vm12  ;;  %vm1214_vm12 = vcmp.eq.s32.totalorder %v12294_v7, %v10424_v62  ;;  %vm1231_vm13 = vcmp.eq.s32.totalorder %v12297_v53, %v10424_v62 }
 0x22f   :  { %8919 = vmatpush3.bf16.msk.msra.mxu0 %vm8918_vm2, %v12301_v59  ;;  %vm8928_vm2 = vmpackc.low %vm1228_vm15, %vm1227_vm14  ;;  %vm1232_vm14 = vcmp.eq.s32.totalorder %v12298_v48, %v10424_v62 }
 0x230   :  { %8921 = vmatprep.subr.msk.bf16.mxu0 %vm8920_vm3, %v12301_v59  ;;  %vm1211_vm3 = vcmp.eq.s32.totalorder %v9880_v46, %v10424_v62 }
 0x231   :  { %vm8930_vm8 = vmpackc.low %vm1212_vm4, %vm1211_vm3  ;;  %vm1216_vm3 = vcmp.eq.s32.totalorder %v12317_v57, %v10424_v62  ;;  %vm1233_vm4 = vcmp.eq.s32.totalorder %v12318_v61, %v10424_v62 }
 0x233   :  { %8923 = vmatpush3.bf16.msk.msra.mxu0 %vm8922_vm10, %v12301_v59  ;;  %vm8932_vm10 = vmpackc.low %vm1230_vm7, %vm1229_vm6  ;;  %vm1234_vm6 = vcmp.eq.s32.totalorder %v12319_v2, %v10424_v62 }
 0x234   :  { %8925 = vmatprep.subr.msk.bf16.mxu0 %vm8924_vm11, %v12301_v59  ;;  %vm1213_vm11 = vcmp.eq.s32.totalorder %v9930_v54, %v10424_v62 }
 0x235   :  { %vm8934_vm15 = vmpackc.low %vm1214_vm12, %vm1213_vm11  ;;  %vm1218_vm11 = vcmp.eq.s32.totalorder %v12321_v1, %v10424_v62 }
 0x237   :  { %8927 = vmatpush3.bf16.msk.msra.mxu0 %vm8926_vm1, %v12301_v59  ;;  %vm8936_vm1 = vmpackc.low %vm1232_vm14, %vm1231_vm13 }
 0x238   :  { %8929 = vmatprep.subr.msk.bf16.mxu0 %vm8928_vm2, %v12301_v59  ;;  %vm1215_vm2 = vcmp.eq.s32.totalorder %v12316_v52, %v10424_v62 }
 0x239   :  { %vm8938_vm7 = vmpackc.low %vm1216_vm3, %vm1215_vm2 }
 0x23a   :  { %v7505_v4 = vpop.f32.mrb[8].mxu1 }
 0x23b   :  { %8931 = vmatpush3.bf16.msk.msra.mxu0 %vm8930_vm8, %v12301_v59  ;;  %vm8940_vm8 = vmpackc.low %vm1234_vm6, %vm1233_vm4  ;;  %v7506_v45 = vpop.f32.mrb[9].mxu1 }
 0x23c   :  { %8933 = vmatprep.subr.msk.bf16.mxu0 %vm8932_vm10, %v12301_v59  ;;  %vm1217_vm10 = vcmp.eq.s32.totalorder %v12320_v49, %v10424_v62  ;;  %v10610_v49 = vadd.f32 %v7506_v45, %v7505_v4  ;;  %v10615_v62 = vld [vmem:[%s12190_s3 + $0x4] ss:$0 sm:$0xff]  ;;  %v12324_v45 = vld [vmem:[#allocation16_spill] sm:$0xff] }
 0x23d   :  { %vm8942_vm12 = vmpackc.low %vm1218_vm11, %vm1217_vm10  ;;  %vm1539_vm13 = vcmp.eq.s32.totalorder %v9668_v8, %v10615_v62  ;;  %vm1540_vm14 = vcmp.eq.s32.totalorder %v9671_v9, %v10615_v62  ;;  %vm1524_vm2 = vcmp.eq.s32.totalorder %v9680_v12, %v10615_v62  ;;  %vm1541_vm4 = vcmp.eq.s32.totalorder %v9705_v15, %v10615_v62  ;;  %v12323_v4 = vld [vmem:[#allocation14_spill] sm:$0xff] }
 0x23e   :  { %vm1542_vm6 = vcmp.eq.s32.totalorder %v9709_v17, %v10615_v62 }
 0x23f   :  { %8935 = vmatpush3.bf16.msk.msra.mxu0 %vm8934_vm15, %v12301_v59  ;;  %vm8944_vm15 = vmpackc.low %vm1540_vm14, %vm1539_vm13  ;;  %vm1544_vm13 = vcmp.eq.s32.totalorder %v9762_v25, %v10615_v62  ;;  %vm1527_vm14 = vcmp.eq.s32.totalorder %v9771_v28, %v10615_v62 }
 0x240   :  { %8937 = vmatprep.subr.msk.bf16.mxu0 %vm8936_vm1, %v12301_v59  ;;  %vm1523_vm1 = vcmp.eq.s32.totalorder %v9658_v6, %v10615_v62  ;;  %vm8948_vm10 = vmpackc.low %vm1542_vm6, %vm1541_vm4  ;;  %vm1546_vm4 = vcmp.eq.s32.totalorder %v9812_v33, %v10615_v62  ;;  %vm1529_vm6 = vcmp.eq.s32.totalorder %v9821_v36, %v10615_v62 }
 0x241   :  { %vm8946_vm3 = vmpackc.low %vm1524_vm2, %vm1523_vm1 }
 0x243   :  { %8939 = vmatpush3.bf16.msk.msra.mxu0 %vm8938_vm7, %v12301_v59  ;;  %vm1525_vm7 = vcmp.eq.s32.totalorder %v9718_v20, %v10615_v62 }
 0x244   :  { %8941 = vmatprep.subr.msk.bf16.mxu0 %vm8940_vm8, %v12301_v59  ;;  %vm1526_vm8 = vcmp.eq.s32.totalorder %v9727_v21, %v10615_v62 }
 0x245   :  { %vm8950_vm11 = vmpackc.low %vm1526_vm8, %vm1525_vm7  ;;  %vm1530_vm7 = vcmp.eq.s32.totalorder %v9827_v37, %v10615_v62 }
 0x247   :  { %8943 = vmatpush3.bf16.msk.msra.mxu0 %vm8942_vm12, %v12301_v59  ;;  %vm1543_vm12 = vcmp.eq.s32.totalorder %v9758_v24, %v10615_v62 }
 0x248   :  { %8945 = vmatprep.subr.msk.bf16.mxu0 %vm8944_vm15, %v12301_v59  ;;  %vm1528_vm15 = vcmp.eq.s32.totalorder %v9777_v29, %v10615_v62  ;;  %vm8952_vm1 = vmpackc.low %vm1544_vm13, %vm1543_vm12  ;;  %vm1548_vm12 = vcmp.eq.s32.totalorder %v9862_v41, %v10615_v62  ;;  %vm1531_vm13 = vcmp.eq.s32.totalorder %v9871_v44, %v10615_v62 }
 0x249   :  { %vm8954_vm2 = vmpackc.low %vm1528_vm15, %vm1527_vm14  ;;  %vm1532_vm14 = vcmp.eq.s32.totalorder %v12302_v3, %v10615_v62 }
 0x24a   :  { %1434 = vmatmul.mubr.f32.vlgmr.msra.gmra.mrb[10].mxu0 %v10606_v63 }
 0x24b   :  { %1715 = vmatprep.mubr.f32.mxu0 %v12322_v55  ;;  %8947 = vmatpush3.bf16.msk.msra.mxu0 %vm8946_vm3, %v12301_v59  ;;  %vm1545_vm3 = vcmp.eq.s32.totalorder %v9808_v32, %v10615_v62 }
 0x24c   :  { %8949 = vmatprep.subr.msk.bf16.mxu0 %vm8948_vm10, %v12301_v59  ;;  %vm8956_vm8 = vmpackc.low %vm1546_vm4, %vm1545_vm3  ;;  %vm1550_vm3 = vcmp.eq.s32.totalorder %v12304_v0, %v10615_v62  ;;  %vm1533_vm4 = vcmp.eq.s32.totalorder %v12305_v16, %v10615_v62  ;;  %v12326_v0 = vld [vmem:[#allocation20_spill] sm:$0xff]  ;;  %v12327_v16 = vld [vmem:[#allocation21_spill] sm:$0xff] }
 0x24d   :  { %vm8958_vm10 = vmpackc.low %vm1530_vm7, %vm1529_vm6  ;;  %vm1534_vm6 = vcmp.eq.s32.totalorder %v12323_v4, %v10615_v62  ;;  %v12328_v4 = vld [vmem:[#allocation24_spill] sm:$0xff] }
 0x24f   :  { %8951 = vmatpush3.bf16.msk.msra.mxu0 %vm8950_vm11, %v12301_v59  ;;  %vm1547_vm11 = vcmp.eq.s32.totalorder %v9858_v40, %v10615_v62 }
 0x250   :  { %8953 = vmatprep.subr.msk.bf16.mxu0 %vm8952_vm1, %v12301_v59  ;;  %vm8960_vm15 = vmpackc.low %vm1548_vm12, %vm1547_vm11  ;;  %vm1535_vm12 = vcmp.eq.s32.totalorder %v12326_v0, %v10615_v62  ;;  %v12331_v0 = vld [vmem:[#allocation29_spill] sm:$0xff] }
 0x251   :  { %vm8962_vm1 = vmpackc.low %vm1532_vm14, %vm1531_vm13  ;;  %vm1536_vm13 = vcmp.eq.s32.totalorder %v12327_v16, %v10615_v62  ;;  %v12332_v16 = vld [vmem:[#allocation15_spill] sm:$0xff] }
 0x253   :  { %8955 = vmatpush3.bf16.msk.msra.mxu0 %vm8954_vm2, %v12301_v59  ;;  %vm1549_vm2 = vcmp.eq.s32.totalorder %v12303_v58, %v10615_v62  ;;  %v12325_v58 = vld [vmem:[#allocation17_spill] sm:$0xff] }
 0x254   :  { %8957 = vmatprep.subr.msk.bf16.mxu0 %vm8956_vm8, %v12301_v59  ;;  %vm8964_vm7 = vmpackc.low %vm1550_vm3, %vm1549_vm2  ;;  %vm1552_vm11 = vcmp.eq.s32.totalorder %v12325_v58, %v10615_v62  ;;  %v12330_v58 = vld [vmem:[#allocation28_spill] sm:$0xff] }
 0x255   :  { %vm8966_vm8 = vmpackc.low %vm1534_vm6, %vm1533_vm4  ;;  %vm1537_vm3 = vcmp.eq.s32.totalorder %v12330_v58, %v10615_v62  ;;  %vm1538_vm4 = vcmp.eq.s32.totalorder %v12331_v0, %v10615_v62 }
 0x257   :  { %8959 = vmatpush3.bf16.msk.msra.mxu0 %vm8958_vm10, %v12301_v59  ;;  %vm1551_vm10 = vcmp.eq.s32.totalorder %v12324_v45, %v10615_v62  ;;  %v12329_v45 = vld [vmem:[#allocation25_spill] sm:$0xff] }
 0x258   :  { %8961 = vmatprep.subr.msk.bf16.mxu0 %vm8960_vm15, %v12301_v59  ;;  %vm8968_vm14 = vmpackc.low %vm1552_vm11, %vm1551_vm10  ;;  %vm1554_vm2 = vcmp.eq.s32.totalorder %v12329_v45, %v10615_v62  ;;  %vm1572_vm10 = vcmp.eq.s32.totalorder %v9677_v11, %v10615_v62  ;;  %vm1555_vm11 = vcmp.eq.s32.totalorder %v9685_v13, %v10615_v62 }
 0x259   :  { %vm8970_vm15 = vmpackc.low %vm1536_vm13, %vm1535_vm12  ;;  %vm1556_vm12 = vcmp.eq.s32.totalorder %v9688_v14, %v10615_v62  ;;  %vm1573_vm13 = vcmp.eq.s32.totalorder %v9712_v18, %v10615_v62 }
 0x25b   :  { %8963 = vmatpush3.bf16.msk.msra.mxu0 %vm8962_vm1, %v12301_v59  ;;  %vm1553_vm1 = vcmp.eq.s32.totalorder %v12328_v4, %v10615_v62 }
 0x25c   :  { %8965 = vmatprep.subr.msk.bf16.mxu0 %vm8964_vm7, %v12301_v59  ;;  %vm8972_vm6 = vmpackc.low %vm1554_vm2, %vm1553_vm1 }
 0x25d   :  { %vm8974_vm7 = vmpackc.low %vm1538_vm4, %vm1537_vm3  ;;  %vm1557_vm3 = vcmp.eq.s32.totalorder %v9730_v22, %v10615_v62  ;;  %vm1558_vm4 = vcmp.eq.s32.totalorder %v9733_v23, %v10615_v62 }
 0x25e   :  { %vm8978_vm1 = vmpackc.low %vm1556_vm12, %vm1555_vm11  ;;  %vm1559_vm11 = vcmp.eq.s32.totalorder %v9780_v30, %v10615_v62  ;;  %vm1560_vm12 = vcmp.eq.s32.totalorder %v9783_v31, %v10615_v62 }
 0x25f   :  { %8967 = vmatpush3.bf16.msk.msra.mxu0 %vm8966_vm8, %v12301_v59  ;;  %vm1571_vm8 = vcmp.eq.s32.totalorder %v9674_v10, %v10615_v62 }
 0x260   :  { %8969 = vmatprep.subr.msk.bf16.mxu0 %vm8968_vm14, %v12301_v59  ;;  %vm1574_vm14 = vcmp.eq.s32.totalorder %v9715_v19, %v10615_v62 }
 0x261   :  { %vm8980_vm2 = vmpackc.low %vm1574_vm14, %vm1573_vm13  ;;  %vm1577_vm13 = vcmp.eq.s32.totalorder %v9815_v34, %v10615_v62  ;;  %vm1578_vm14 = vcmp.eq.s32.totalorder %v9818_v35, %v10615_v62 }
 0x263   :  { %8971 = vmatpush3.bf16.msk.msra.mxu0 %vm8970_vm15, %v12301_v59  ;;  %vm8976_vm15 = vmpackc.low %vm1572_vm10, %vm1571_vm8 }
 0x264   :  { %8973 = vmatprep.subr.msk.bf16.mxu0 %vm8972_vm6, %v12301_v59  ;;  %vm1575_vm6 = vcmp.eq.s32.totalorder %v9765_v26, %v10615_v62  ;;  %vm8982_vm8 = vmpackc.low %vm1558_vm4, %vm1557_vm3  ;;  %vm1562_vm3 = vcmp.eq.s32.totalorder %v9833_v39, %v10615_v62  ;;  %vm1579_vm4 = vcmp.eq.s32.totalorder %v9865_v42, %v10615_v62 }
 0x267   :  { %8975 = vmatpush3.bf16.msk.msra.mxu0 %vm8974_vm7, %v12301_v59  ;;  %vm1576_vm7 = vcmp.eq.s32.totalorder %v9768_v27, %v10615_v62 }
 0x268   :  { %8159 = vmatprep.subr.mxu0 %v12313_v60  ;;  %vm8984_vm10 = vmpackc.low %vm1576_vm7, %vm1575_vm6  ;;  %vm1580_vm6 = vcmp.eq.s32.totalorder %v9868_v43, %v10615_v62 }
 0x26a   :  { %1716 = vmatmul.mubr.f32.vlgmr.msra.gmra.mrb[12].mxu0 %v12332_v16 }
 0x26b   :  { %8161 = vmatprep.mubr.msk.f32.mxu0 %vm9578_vm0, %v12313_v60 }
 0x2fd   :  { %v1161_v45 = vpop.f32.mrb[8].mxu0 }
 0x2fe   :  { %v10702_v4 = vadd.f32 %v1161_v45, %v10515_v56  ;;  %v8153_v58 = vpop.f32.mrb[9].mxu0  ;;  %v10798_v45 = vld [vmem:[%s12190_s3 + $0x5] ss:$0 sm:$0xff] }
 0x2ff   :  { %v6673_v58 = vld [vmem:[%s12188_s1 + $0x18] sm:$0xff] }
 0x31d   :  { %v7540_v3 = vpop.f32.mrb[10].mxu0 }
 0x31e   :  { %v7541_v0 = vpop.f32.mrb[11].mxu0 }
 0x31f   :  { %v7542_v44 = vadd.f32 %v7541_v0, %v7540_v3 }
 0x321   :  { %v1436_v56 = vadd.f32 %v7542_v44, %v10610_v49  ;;  %v12333_v44 = vld [vmem:[#allocation30_spill] sm:$0xff] }
 0x323   :  { %8155 = vmatpush3.msk.msra.mxu1 %vm664_vm5, %v1436_v56  ;;  %v12335_v56 = vld [vmem:[#allocation10_spill] sm:$0xff] }
 0x324   :  { %8157 = vmatmul.mubr.msk.f32.vlgmr.msra.gmra.mrb[10].mxu1 %vm660_vm9, %v6673_v58  ;;  %8977 = vmatprep.subr.msk.bf16.mxu1 %vm8976_vm15, %v12301_v59  ;;  %vm8986_vm15 = vmpackc.low %vm1560_vm12, %vm1559_vm11  ;;  %vm1564_vm11 = vcmp.eq.s32.totalorder %v9883_v47, %v10615_v62  ;;  %vm1581_vm12 = vcmp.eq.s32.totalorder %v9915_v50, %v10615_v62  ;;  %v12336_v58 = vld [vmem:[#allocation11_spill] sm:$0xff] }
 0x325   :  { %8979 = vmatpush3.bf16.msk.msra.mxu1 %vm8978_vm1, %v12301_v59  ;;  %1785 = vmatprep.mubr.f32.mxu1 %v9656_v5  ;;  %vm8988_vm1 = vmpackc.low %vm1578_vm14, %vm1577_vm13  ;;  %vm1582_vm13 = vcmp.eq.s32.totalorder %v9918_v51, %v10615_v62 }
 0x326   :  { %8981 = vmatprep.subr.msk.bf16.mxu1 %vm8980_vm2, %v12301_v59  ;;  %vm1561_vm2 = vcmp.eq.s32.totalorder %v9830_v38, %v10615_v62 }
 0x327   :  { %vm8990_vm7 = vmpackc.low %vm1562_vm3, %vm1561_vm2  ;;  %vm1566_vm2 = vcmp.eq.s32.totalorder %v12294_v7, %v10615_v62  ;;  %vm1583_vm3 = vcmp.eq.s32.totalorder %v12297_v53, %v10615_v62 }
 0x329   :  { %8983 = vmatpush3.bf16.msk.msra.mxu1 %vm8982_vm8, %v12301_v59  ;;  %vm8992_vm8 = vmpackc.low %vm1580_vm6, %vm1579_vm4  ;;  %vm1584_vm4 = vcmp.eq.s32.totalorder %v12298_v48, %v10615_v62 }
 0x32a   :  { %8985 = vmatprep.subr.msk.bf16.mxu1 %vm8984_vm10, %v12301_v59  ;;  %vm1563_vm10 = vcmp.eq.s32.totalorder %v9880_v46, %v10615_v62 }
 0x32b   :  { %vm8994_vm14 = vmpackc.low %vm1564_vm11, %vm1563_vm10  ;;  %vm1568_vm10 = vcmp.eq.s32.totalorder %v12317_v57, %v10615_v62  ;;  %vm1585_vm11 = vcmp.eq.s32.totalorder %v12318_v61, %v10615_v62 }
 0x32d   :  { %8987 = vmatpush3.bf16.msk.msra.mxu1 %vm8986_vm15, %v12301_v59  ;;  %vm8996_vm15 = vmpackc.low %vm1582_vm13, %vm1581_vm12  ;;  %vm1586_vm12 = vcmp.eq.s32.totalorder %v12319_v2, %v10615_v62 }
 0x32e   :  { %8989 = vmatprep.subr.msk.bf16.mxu1 %vm8988_vm1, %v12301_v59  ;;  %vm1565_vm1 = vcmp.eq.s32.totalorder %v9930_v54, %v10615_v62 }
 0x32f   :  { %vm8998_vm6 = vmpackc.low %vm1566_vm2, %vm1565_vm1  ;;  %vm1570_vm1 = vcmp.eq.s32.totalorder %v12321_v1, %v10615_v62 }
 0x331   :  { %8991 = vmatpush3.bf16.msk.msra.mxu1 %vm8990_vm7, %v12301_v59  ;;  %vm9000_vm7 = vmpackc.low %vm1584_vm4, %vm1583_vm3  ;;  %vm1891_vm3 = vcmp.eq.s32.totalorder %v9668_v8, %v10798_v45  ;;  %vm1892_vm4 = vcmp.eq.s32.totalorder %v9671_v9, %v10798_v45 }
 0x332   :  { %8993 = vmatprep.subr.msk.bf16.mxu1 %vm8992_vm8, %v12301_v59  ;;  %vm1567_vm8 = vcmp.eq.s32.totalorder %v12316_v52, %v10615_v62 }
 0x333   :  { %vm9002_vm13 = vmpackc.low %vm1568_vm10, %vm1567_vm8  ;;  %vm1876_vm8 = vcmp.eq.s32.totalorder %v9680_v12, %v10798_v45 }
 0x335   :  { %8995 = vmatpush3.bf16.msk.msra.mxu1 %vm8994_vm14, %v12301_v59  ;;  %vm9004_vm14 = vmpackc.low %vm1586_vm12, %vm1585_vm11  ;;  %vm1893_vm11 = vcmp.eq.s32.totalorder %v9705_v15, %v10798_v45  ;;  %vm1894_vm12 = vcmp.eq.s32.totalorder %v9709_v17, %v10798_v45 }
 0x336   :  { %8997 = vmatprep.subr.msk.bf16.mxu1 %vm8996_vm15, %v12301_v59  ;;  %vm1569_vm15 = vcmp.eq.s32.totalorder %v12333_v44, %v10615_v62  ;;  %v12334_v62 = vld [vmem:[#allocation9_spill] sm:$0xff] }
 0x337   :  { %vm9006_vm2 = vmpackc.low %vm1570_vm1, %vm1569_vm15 }
 0x338   :  { %vm9012_vm15 = vmpackc.low %vm1894_vm12, %vm1893_vm11  ;;  %vm1898_vm11 = vcmp.eq.s32.totalorder %v9812_v33, %v10798_v45  ;;  %vm1881_vm12 = vcmp.eq.s32.totalorder %v9821_v36, %v10798_v45 }
 0x339   :  { %8999 = vmatpush3.bf16.msk.msra.mxu1 %vm8998_vm6, %v12301_v59  ;;  %vm9008_vm6 = vmpackc.low %vm1892_vm4, %vm1891_vm3  ;;  %vm1896_vm3 = vcmp.eq.s32.totalorder %v9762_v25, %v10798_v45  ;;  %vm1879_vm4 = vcmp.eq.s32.totalorder %v9771_v28, %v10798_v45 }
 0x33a   :  { %9001 = vmatprep.subr.msk.bf16.mxu1 %vm9000_vm7, %v12301_v59  ;;  %vm1875_vm7 = vcmp.eq.s32.totalorder %v9658_v6, %v10798_v45 }
 0x33b   :  { %vm9010_vm10 = vmpackc.low %vm1876_vm8, %vm1875_vm7 }
 0x33d   :  { %9003 = vmatpush3.bf16.msk.msra.mxu1 %vm9002_vm13, %v12301_v59  ;;  %v7577_v3 = vpop.f32.mrb[12].mxu0  ;;  %vm1877_vm13 = vcmp.eq.s32.totalorder %v9718_v20, %v10798_v45 }
 0x33e   :  { %9005 = vmatprep.subr.msk.bf16.mxu1 %vm9004_vm14, %v12301_v59  ;;  %v7578_v0 = vpop.f32.mrb[13].mxu0  ;;  %vm1878_vm14 = vcmp.eq.s32.totalorder %v9727_v21, %v10798_v45 }
 0x33f   :  { %v10793_v49 = vadd.f32 %v7578_v0, %v7577_v3  ;;  %vm9014_vm1 = vmpackc.low %vm1878_vm14, %vm1877_vm13  ;;  %vm1882_vm13 = vcmp.eq.s32.totalorder %v9827_v37, %v10798_v45  ;;  %v12337_v3 = vld [vmem:[#allocation12_spill] sm:$0xff]  ;;  %v12338_v0 = vld [vmem:[#allocation13_spill] sm:$0xff] }
 0x341   :  { %9007 = vmatpush3.bf16.msk.msra.mxu1 %vm9006_vm2, %v12301_v59  ;;  %vm1895_vm2 = vcmp.eq.s32.totalorder %v9758_v24, %v10798_v45 }
 0x342   :  { %9009 = vmatprep.subr.msk.bf16.mxu1 %vm9008_vm6, %v12301_v59  ;;  %vm1880_vm6 = vcmp.eq.s32.totalorder %v9777_v29, %v10798_v45  ;;  %vm9016_vm7 = vmpackc.low %vm1896_vm3, %vm1895_vm2  ;;  %vm1900_vm2 = vcmp.eq.s32.totalorder %v9862_v41, %v10798_v45  ;;  %vm1883_vm3 = vcmp.eq.s32.totalorder %v12334_v62, %v10798_v45  ;;  %v12339_v62 = vld [vmem:[#allocation14_spill] sm:$0xff] }
 0x343   :  { %vm9018_vm8 = vmpackc.low %vm1880_vm6, %vm1879_vm4  ;;  %vm1884_vm4 = vcmp.eq.s32.totalorder %v12335_v56, %v10798_v45  ;;  %v12340_v56 = vld [vmem:[#allocation16_spill] sm:$0xff] }
 0x344   :  { %1786 = vmatmul.mubr.f32.vlgmr.msra.gmra.mrb[12].mxu1 %v10606_v63 }
 0x345   :  { %2067 = vmatprep.mubr.f32.mxu1 %v12322_v55  ;;  %9011 = vmatpush3.bf16.msk.msra.mxu1 %vm9010_vm10, %v12301_v59  ;;  %vm1897_vm10 = vcmp.eq.s32.totalorder %v9808_v32, %v10798_v45 }
 0x346   :  { %9013 = vmatprep.subr.msk.bf16.mxu1 %vm9012_vm15, %v12301_v59  ;;  %vm9020_vm14 = vmpackc.low %vm1898_vm11, %vm1897_vm10  ;;  %vm1902_vm10 = vcmp.eq.s32.totalorder %v12337_v3, %v10798_v45  ;;  %vm1885_vm11 = vcmp.eq.s32.totalorder %v12338_v0, %v10798_v45  ;;  %v12342_v3 = vld [vmem:[#allocation20_spill] sm:$0xff]  ;;  %v12343_v0 = vld [vmem:[#allocation21_spill] sm:$0xff] }
 0x347   :  { %vm9022_vm15 = vmpackc.low %vm1882_vm13, %vm1881_vm12  ;;  %vm1886_vm12 = vcmp.eq.s32.totalorder %v12339_v62, %v10798_v45  ;;  %v12344_v62 = vld [vmem:[#allocation24_spill] sm:$0xff] }
 0x349   :  { %9015 = vmatpush3.bf16.msk.msra.mxu1 %vm9014_vm1, %v12301_v59  ;;  %vm1899_vm1 = vcmp.eq.s32.totalorder %v9858_v40, %v10798_v45 }
 0x34a   :  { %9017 = vmatprep.subr.msk.bf16.mxu1 %vm9016_vm7, %v12301_v59  ;;  %vm9024_vm6 = vmpackc.low %vm1900_vm2, %vm1899_vm1  ;;  %vm1887_vm2 = vcmp.eq.s32.totalorder %v12342_v3, %v10798_v45  ;;  %v12347_v3 = vld [vmem:[#allocation29_spill] sm:$0xff] }
 0x34b   :  { %vm9026_vm7 = vmpackc.low %vm1884_vm4, %vm1883_vm3  ;;  %vm1888_vm3 = vcmp.eq.s32.totalorder %v12343_v0, %v10798_v45 }
 0x34d   :  { %9019 = vmatpush3.bf16.msk.msra.mxu1 %vm9018_vm8, %v12301_v59  ;;  %vm1901_vm8 = vcmp.eq.s32.totalorder %v12336_v58, %v10798_v45  ;;  %v12341_v58 = vld [vmem:[#allocation17_spill] sm:$0xff] }
 0x34e   :  { %9021 = vmatprep.subr.msk.bf16.mxu1 %vm9020_vm14, %v12301_v59  ;;  %vm9028_vm13 = vmpackc.low %vm1902_vm10, %vm1901_vm8  ;;  %vm1904_vm1 = vcmp.eq.s32.totalorder %v12341_v58, %v10798_v45  ;;  %v12346_v58 = vld [vmem:[#allocation28_spill] sm:$0xff] }
 0x34f   :  { %vm9030_vm14 = vmpackc.low %vm1886_vm12, %vm1885_vm11  ;;  %vm1889_vm10 = vcmp.eq.s32.totalorder %v12346_v58, %v10798_v45  ;;  %vm1890_vm11 = vcmp.eq.s32.totalorder %v12347_v3, %v10798_v45 }
 0x351   :  { %9023 = vmatpush3.bf16.msk.msra.mxu1 %vm9022_vm15, %v12301_v59  ;;  %vm1903_vm15 = vcmp.eq.s32.totalorder %v12340_v56, %v10798_v45  ;;  %v12345_v56 = vld [vmem:[#allocation25_spill] sm:$0xff] }
 0x352   :  { %9025 = vmatprep.subr.msk.bf16.mxu1 %vm9024_vm6, %v12301_v59  ;;  %vm9032_vm4 = vmpackc.low %vm1904_vm1, %vm1903_vm15  ;;  %vm1906_vm8 = vcmp.eq.s32.totalorder %v12345_v56, %v10798_v45  ;;  %vm1924_vm15 = vcmp.eq.s32.totalorder %v9677_v11, %v10798_v45  ;;  %vm1907_vm1 = vcmp.eq.s32.totalorder %v9685_v13, %v10798_v45 }
 0x353   :  { %vm9034_vm6 = vmpackc.low %vm1888_vm3, %vm1887_vm2  ;;  %vm1908_vm2 = vcmp.eq.s32.totalorder %v9688_v14, %v10798_v45  ;;  %vm1925_vm3 = vcmp.eq.s32.totalorder %v9712_v18, %v10798_v45 }
 0x355   :  { %9027 = vmatpush3.bf16.msk.msra.mxu1 %vm9026_vm7, %v12301_v59  ;;  %vm1905_vm7 = vcmp.eq.s32.totalorder %v12344_v62, %v10798_v45 }
 0x356   :  { %9029 = vmatprep.subr.msk.bf16.mxu1 %vm9028_vm13, %v12301_v59  ;;  %vm9036_vm12 = vmpackc.low %vm1906_vm8, %vm1905_vm7 }
 0x357   :  { %vm9038_vm13 = vmpackc.low %vm1890_vm11, %vm1889_vm10  ;;  %vm1909_vm10 = vcmp.eq.s32.totalorder %v9730_v22, %v10798_v45  ;;  %vm1910_vm11 = vcmp.eq.s32.totalorder %v9733_v23, %v10798_v45 }
 0x358   :  { %vm9042_vm7 = vmpackc.low %vm1908_vm2, %vm1907_vm1  ;;  %vm1911_vm1 = vcmp.eq.s32.totalorder %v9780_v30, %v10798_v45  ;;  %vm1912_vm2 = vcmp.eq.s32.totalorder %v9783_v31, %v10798_v45 }
 0x359   :  { %9031 = vmatpush3.bf16.msk.msra.mxu1 %vm9030_vm14, %v12301_v59  ;;  %vm1923_vm14 = vcmp.eq.s32.totalorder %v9674_v10, %v10798_v45 }
 0x35a   :  { %9033 = vmatprep.subr.msk.bf16.mxu1 %vm9032_vm4, %v12301_v59  ;;  %vm1926_vm4 = vcmp.eq.s32.totalorder %v9715_v19, %v10798_v45 }
 0x35b   :  { %vm9044_vm8 = vmpackc.low %vm1926_vm4, %vm1925_vm3  ;;  %vm1929_vm3 = vcmp.eq.s32.totalorder %v9815_v34, %v10798_v45  ;;  %vm1930_vm4 = vcmp.eq.s32.totalorder %v9818_v35, %v10798_v45 }
 0x35d   :  { %9035 = vmatpush3.bf16.msk.msra.mxu1 %vm9034_vm6, %v12301_v59  ;;  %vm9040_vm6 = vmpackc.low %vm1924_vm15, %vm1923_vm14 }
 0x35e   :  { %9037 = vmatprep.subr.msk.bf16.mxu1 %vm9036_vm12, %v12301_v59  ;;  %vm1927_vm12 = vcmp.eq.s32.totalorder %v9765_v26, %v10798_v45  ;;  %vm9046_vm14 = vmpackc.low %vm1910_vm11, %vm1909_vm10  ;;  %vm1914_vm10 = vcmp.eq.s32.totalorder %v9833_v39, %v10798_v45  ;;  %vm1931_vm11 = vcmp.eq.s32.totalorder %v9865_v42, %v10798_v45 }
 0x361   :  { %9039 = vmatpush3.bf16.msk.msra.mxu1 %vm9038_vm13, %v12301_v59  ;;  %vm1928_vm13 = vcmp.eq.s32.totalorder %v9768_v27, %v10798_v45 }
 0x362   :  { %8164 = vmatprep.subr.mxu1 %v12313_v60  ;;  %vm9048_vm15 = vmpackc.low %vm1928_vm13, %vm1927_vm12  ;;  %vm1932_vm12 = vcmp.eq.s32.totalorder %v9868_v43, %v10798_v45 }
 0x364   :  { %2068 = vmatmul.mubr.f32.vlgmr.msra.gmra.mrb[14].mxu1 %v12332_v16 }
 0x365   :  { %8166 = vmatprep.mubr.msk.f32.mxu1 %vm9578_vm0, %v12313_v60 }
 0x3f7   :  { %v1513_v56 = vpop.f32.mrb[10].mxu1 }
 0x3f8   :  { %v10885_v62 = vadd.f32 %v1513_v56, %v10702_v4  ;;  %v8158_v58 = vpop.f32.mrb[11].mxu1  ;;  %v6741_v56 = vld [vmem:[%s12188_s1 + $0x20] sm:$0xff] }
 0x417   :  { %v7612_v0 = vpop.f32.mrb[12].mxu1 }
 0x418   :  { %v7613_v3 = vpop.f32.mrb[13].mxu1 }
 0x419   :  { %v7614_v41 = vadd.f32 %v7613_v3, %v7612_v0  ;;  %v10981_v3 = vld [vmem:[%s12190_s3 + $0x6] ss:$0 sm:$0xff]  ;;  %v12349_v0 = vld [vmem:[#allocation9_spill] sm:$0xff] }
 0x41b   :  { %v1788_v4 = vadd.f32 %v7614_v41, %v10793_v49 }
 0x41d   :  { %8160 = vmatpush3.msk.msra.mxu0 %vm664_vm5, %v1788_v4  ;;  %v12350_v4 = vld [vmem:[#allocation10_spill] sm:$0xff] }
 0x41e   :  { %8162 = vmatmul.mubr.msk.f32.vlgmr.msra.gmra.mrb[14].mxu0 %vm660_vm9, %v6741_v56  ;;  %9041 = vmatprep.subr.msk.bf16.mxu0 %vm9040_vm6, %v12301_v59  ;;  %vm9050_vm6 = vmpackc.low %vm1912_vm2, %vm1911_vm1  ;;  %vm1916_vm1 = vcmp.eq.s32.totalorder %v9883_v47, %v10798_v45  ;;  %vm1933_vm2 = vcmp.eq.s32.totalorder %v9915_v50, %v10798_v45  ;;  %v12351_v56 = vld [vmem:[#allocation11_spill] sm:$0xff] }
 0x41f   :  { %9043 = vmatpush3.bf16.msk.msra.mxu0 %vm9042_vm7, %v12301_v59  ;;  %2137 = vmatprep.mubr.f32.mxu0 %v9656_v5  ;;  %vm9052_vm7 = vmpackc.low %vm1930_vm4, %vm1929_vm3  ;;  %vm1934_vm3 = vcmp.eq.s32.totalorder %v9918_v51, %v10798_v45 }
 0x420   :  { %9045 = vmatprep.subr.msk.bf16.mxu0 %vm9044_vm8, %v12301_v59  ;;  %vm1913_vm8 = vcmp.eq.s32.totalorder %v9830_v38, %v10798_v45 }
 0x421   :  { %vm9054_vm13 = vmpackc.low %vm1914_vm10, %vm1913_vm8  ;;  %vm1918_vm8 = vcmp.eq.s32.totalorder %v12294_v7, %v10798_v45  ;;  %vm1935_vm10 = vcmp.eq.s32.totalorder %v12297_v53, %v10798_v45 }
 0x423   :  { %9047 = vmatpush3.bf16.msk.msra.mxu0 %vm9046_vm14, %v12301_v59  ;;  %vm9056_vm14 = vmpackc.low %vm1932_vm12, %vm1931_vm11  ;;  %vm1936_vm11 = vcmp.eq.s32.totalorder %v12298_v48, %v10798_v45 }
 0x424   :  { %9049 = vmatprep.subr.msk.bf16.mxu0 %vm9048_vm15, %v12301_v59  ;;  %vm1915_vm15 = vcmp.eq.s32.totalorder %v9880_v46, %v10798_v45 }
 0x425   :  { %vm9058_vm4 = vmpackc.low %vm1916_vm1, %vm1915_vm15  ;;  %vm1920_vm15 = vcmp.eq.s32.totalorder %v12317_v57, %v10798_v45  ;;  %vm1937_vm1 = vcmp.eq.s32.totalorder %v12318_v61, %v10798_v45 }
 0x427   :  { %9051 = vmatpush3.bf16.msk.msra.mxu0 %vm9050_vm6, %v12301_v59  ;;  %vm9060_vm6 = vmpackc.low %vm1934_vm3, %vm1933_vm2  ;;  %vm1938_vm2 = vcmp.eq.s32.totalorder %v12319_v2, %v10798_v45 }
 0x428   :  { %9053 = vmatprep.subr.msk.bf16.mxu0 %vm9052_vm7, %v12301_v59  ;;  %vm1917_vm7 = vcmp.eq.s32.totalorder %v9930_v54, %v10798_v45 }
 0x429   :  { %vm9062_vm12 = vmpackc.low %vm1918_vm8, %vm1917_vm7  ;;  %vm1922_vm7 = vcmp.eq.s32.totalorder %v12321_v1, %v10798_v45 }
 0x42b   :  { %9055 = vmatpush3.bf16.msk.msra.mxu0 %vm9054_vm13, %v12301_v59  ;;  %vm9064_vm13 = vmpackc.low %vm1936_vm11, %vm1935_vm10  ;;  %vm2243_vm10 = vcmp.eq.s32.totalorder %v9668_v8, %v10981_v3  ;;  %vm2244_vm11 = vcmp.eq.s32.totalorder %v9671_v9, %v10981_v3 }
 0x42c   :  { %9057 = vmatprep.subr.msk.bf16.mxu0 %vm9056_vm14, %v12301_v59  ;;  %vm1919_vm14 = vcmp.eq.s32.totalorder %v12316_v52, %v10798_v45 }
 0x42d   :  { %vm9066_vm3 = vmpackc.low %vm1920_vm15, %vm1919_vm14  ;;  %vm2228_vm14 = vcmp.eq.s32.totalorder %v9680_v12, %v10981_v3 }
 0x42f   :  { %9059 = vmatpush3.bf16.msk.msra.mxu0 %vm9058_vm4, %v12301_v59  ;;  %vm9068_vm4 = vmpackc.low %vm1938_vm2, %vm1937_vm1  ;;  %vm2245_vm1 = vcmp.eq.s32.totalorder %v9705_v15, %v10981_v3  ;;  %vm2246_vm2 = vcmp.eq.s32.totalorder %v9709_v17, %v10981_v3 }
 0x430   :  { %9061 = vmatprep.subr.msk.bf16.mxu0 %vm9060_vm6, %v12301_v59  ;;  %vm1921_vm6 = vcmp.eq.s32.totalorder %v12333_v44, %v10798_v45  ;;  %v12348_v45 = vld [vmem:[#allocation8_spill] sm:$0xff] }
 0x431   :  { %vm9070_vm8 = vmpackc.low %vm1922_vm7, %vm1921_vm6 }
 0x432   :  { %vm9076_vm6 = vmpackc.low %vm2246_vm2, %vm2245_vm1  ;;  %vm2250_vm1 = vcmp.eq.s32.totalorder %v9812_v33, %v10981_v3  ;;  %vm2233_vm2 = vcmp.eq.s32.totalorder %v9821_v36, %v10981_v3 }
 0x433   :  { %9063 = vmatpush3.bf16.msk.msra.mxu0 %vm9062_vm12, %v12301_v59  ;;  %vm9072_vm12 = vmpackc.low %vm2244_vm11, %vm2243_vm10  ;;  %vm2248_vm10 = vcmp.eq.s32.totalorder %v9762_v25, %v10981_v3  ;;  %vm2231_vm11 = vcmp.eq.s32.totalorder %v9771_v28, %v10981_v3 }
 0x434   :  { %9065 = vmatprep.subr.msk.bf16.mxu0 %vm9064_vm13, %v12301_v59  ;;  %vm2227_vm13 = vcmp.eq.s32.totalorder %v9658_v6, %v10981_v3 }
 0x435   :  { %vm9074_vm15 = vmpackc.low %vm2228_vm14, %vm2227_vm13 }
 0x437   :  { %9067 = vmatpush3.bf16.msk.msra.mxu0 %vm9066_vm3, %v12301_v59  ;;  %v7649_v41 = vpop.f32.mrb[14].mxu1  ;;  %vm2229_vm3 = vcmp.eq.s32.totalorder %v9718_v20, %v10981_v3 }
 0x438   :  { %9069 = vmatprep.subr.msk.bf16.mxu0 %vm9068_vm4, %v12301_v59  ;;  %v7650_v49 = vpop.f32.mrb[15].mxu1  ;;  %vm2230_vm4 = vcmp.eq.s32.totalorder %v9727_v21, %v10981_v3 }
 0x439   :  { %v10976_v58 = vadd.f32 %v7650_v49, %v7649_v41  ;;  %vm9078_vm7 = vmpackc.low %vm2230_vm4, %vm2229_vm3  ;;  %vm2234_vm3 = vcmp.eq.s32.totalorder %v9827_v37, %v10981_v3  ;;  %v12352_v41 = vld [vmem:[#allocation12_spill] sm:$0xff]  ;;  %v12353_v49 = vld [vmem:[#allocation13_spill] sm:$0xff] }
 0x43b   :  { %9071 = vmatpush3.bf16.msk.msra.mxu0 %vm9070_vm8, %v12301_v59  ;;  %vm2247_vm8 = vcmp.eq.s32.totalorder %v9758_v24, %v10981_v3 }
 0x43c   :  { %9073 = vmatprep.subr.msk.bf16.mxu0 %vm9072_vm12, %v12301_v59  ;;  %vm2232_vm12 = vcmp.eq.s32.totalorder %v9777_v29, %v10981_v3  ;;  %vm9080_vm13 = vmpackc.low %vm2248_vm10, %vm2247_vm8  ;;  %vm2252_vm8 = vcmp.eq.s32.totalorder %v12348_v45, %v10981_v3  ;;  %vm2235_vm10 = vcmp.eq.s32.totalorder %v12349_v0, %v10981_v3  ;;  %v12354_v0 = vld [vmem:[#allocation14_spill] sm:$0xff] }
 0x43d   :  { %vm9082_vm14 = vmpackc.low %vm2232_vm12, %vm2231_vm11  ;;  %vm2236_vm11 = vcmp.eq.s32.totalorder %v12350_v4, %v10981_v3  ;;  %v12355_v4 = vld [vmem:[#allocation16_spill] sm:$0xff] }
 0x43e   :  { %2138 = vmatmul.mubr.f32.vlgmr.msra.gmra.mrb[16].mxu0 %v10606_v63 }
 0x43f   :  { %2419 = vmatprep.mubr.f32.mxu0 %v12322_v55  ;;  %9075 = vmatpush3.bf16.msk.msra.mxu0 %vm9074_vm15, %v12301_v59  ;;  %vm2249_vm15 = vcmp.eq.s32.totalorder %v9808_v32, %v10981_v3 }
 0x440   :  { %9077 = vmatprep.subr.msk.bf16.mxu0 %vm9076_vm6, %v12301_v59  ;;  %vm9084_vm4 = vmpackc.low %vm2250_vm1, %vm2249_vm15  ;;  %vm2254_vm15 = vcmp.eq.s32.totalorder %v12352_v41, %v10981_v3  ;;  %vm2237_vm1 = vcmp.eq.s32.totalorder %v12353_v49, %v10981_v3  ;;  %v12357_v41 = vld [vmem:[#allocation20_spill] sm:$0xff]  ;;  %v12358_v49 = vld [vmem:[#allocation21_spill] sm:$0xff] }
 0x441   :  { %vm9086_vm6 = vmpackc.low %vm2234_vm3, %vm2233_vm2  ;;  %vm2238_vm2 = vcmp.eq.s32.totalorder %v12354_v0, %v10981_v3  ;;  %v12359_v0 = vld [vmem:[#allocation24_spill] sm:$0xff] }
 0x443   :  { %9079 = vmatpush3.bf16.msk.msra.mxu0 %vm9078_vm7, %v12301_v59  ;;  %vm2251_vm7 = vcmp.eq.s32.totalorder %v9858_v40, %v10981_v3 }
 0x444   :  { %9081 = vmatprep.subr.msk.bf16.mxu0 %vm9080_vm13, %v12301_v59  ;;  %vm9088_vm12 = vmpackc.low %vm2252_vm8, %vm2251_vm7  ;;  %vm2239_vm8 = vcmp.eq.s32.totalorder %v12357_v41, %v10981_v3  ;;  %v12362_v41 = vld [vmem:[#allocation29_spill] sm:$0xff] }
 0x445   :  { %vm9090_vm13 = vmpackc.low %vm2236_vm11, %vm2235_vm10  ;;  %vm2240_vm10 = vcmp.eq.s32.totalorder %v12358_v49, %v10981_v3 }
 0x447   :  { %9083 = vmatpush3.bf16.msk.msra.mxu0 %vm9082_vm14, %v12301_v59  ;;  %vm2253_vm14 = vcmp.eq.s32.totalorder %v12351_v56, %v10981_v3  ;;  %v12356_v56 = vld [vmem:[#allocation17_spill] sm:$0xff] }
 0x448   :  { %9085 = vmatprep.subr.msk.bf16.mxu0 %vm9084_vm4, %v12301_v59  ;;  %vm9092_vm3 = vmpackc.low %vm2254_vm15, %vm2253_vm14  ;;  %vm2256_vm7 = vcmp.eq.s32.totalorder %v12356_v56, %v10981_v3  ;;  %v12361_v56 = vld [vmem:[#allocation28_spill] sm:$0xff] }
 0x449   :  { %vm9094_vm4 = vmpackc.low %vm2238_vm2, %vm2237_vm1  ;;  %vm2241_vm15 = vcmp.eq.s32.totalorder %v12361_v56, %v10981_v3  ;;  %vm2242_vm1 = vcmp.eq.s32.totalorder %v12362_v41, %v10981_v3 }
 0x44b   :  { %9087 = vmatpush3.bf16.msk.msra.mxu0 %vm9086_vm6, %v12301_v59  ;;  %vm2255_vm6 = vcmp.eq.s32.totalorder %v12355_v4, %v10981_v3  ;;  %v12360_v4 = vld [vmem:[#allocation25_spill] sm:$0xff] }
 0x44c   :  { %9089 = vmatprep.subr.msk.bf16.mxu0 %vm9088_vm12, %v12301_v59  ;;  %vm9096_vm11 = vmpackc.low %vm2256_vm7, %vm2255_vm6  ;;  %vm2258_vm14 = vcmp.eq.s32.totalorder %v12360_v4, %v10981_v3  ;;  %vm2276_vm6 = vcmp.eq.s32.totalorder %v9677_v11, %v10981_v3  ;;  %vm2259_vm7 = vcmp.eq.s32.totalorder %v9685_v13, %v10981_v3 }
 0x44d   :  { %vm9098_vm12 = vmpackc.low %vm2240_vm10, %vm2239_vm8  ;;  %vm2260_vm8 = vcmp.eq.s32.totalorder %v9688_v14, %v10981_v3  ;;  %vm2277_vm10 = vcmp.eq.s32.totalorder %v9712_v18, %v10981_v3 }
 0x44f   :  { %9091 = vmatpush3.bf16.msk.msra.mxu0 %vm9090_vm13, %v12301_v59  ;;  %vm2257_vm13 = vcmp.eq.s32.totalorder %v12359_v0, %v10981_v3 }
 0x450   :  { %9093 = vmatprep.subr.msk.bf16.mxu0 %vm9092_vm3, %v12301_v59  ;;  %vm9100_vm2 = vmpackc.low %vm2258_vm14, %vm2257_vm13 }
 0x451   :  { %vm9102_vm3 = vmpackc.low %vm2242_vm1, %vm2241_vm15  ;;  %vm2261_vm15 = vcmp.eq.s32.totalorder %v9730_v22, %v10981_v3  ;;  %vm2262_vm1 = vcmp.eq.s32.totalorder %v9733_v23, %v10981_v3 }
 0x452   :  { %vm9106_vm13 = vmpackc.low %vm2260_vm8, %vm2259_vm7  ;;  %vm2263_vm7 = vcmp.eq.s32.totalorder %v9780_v30, %v10981_v3  ;;  %vm2264_vm8 = vcmp.eq.s32.totalorder %v9783_v31, %v10981_v3 }
 0x453   :  { %9095 = vmatpush3.bf16.msk.msra.mxu0 %vm9094_vm4, %v12301_v59  ;;  %vm2275_vm4 = vcmp.eq.s32.totalorder %v9674_v10, %v10981_v3 }
 0x454   :  { %9097 = vmatprep.subr.msk.bf16.mxu0 %vm9096_vm11, %v12301_v59  ;;  %vm2278_vm11 = vcmp.eq.s32.totalorder %v9715_v19, %v10981_v3 }
 0x455   :  { %vm9108_vm14 = vmpackc.low %vm2278_vm11, %vm2277_vm10  ;;  %vm2281_vm10 = vcmp.eq.s32.totalorder %v9815_v34, %v10981_v3  ;;  %vm2282_vm11 = vcmp.eq.s32.totalorder %v9818_v35, %v10981_v3 }
 0x457   :  { %9099 = vmatpush3.bf16.msk.msra.mxu0 %vm9098_vm12, %v12301_v59  ;;  %vm9104_vm12 = vmpackc.low %vm2276_vm6, %vm2275_vm4 }
 0x458   :  { %9101 = vmatprep.subr.msk.bf16.mxu0 %vm9100_vm2, %v12301_v59  ;;  %vm2279_vm2 = vcmp.eq.s32.totalorder %v9765_v26, %v10981_v3  ;;  %vm9110_vm4 = vmpackc.low %vm2262_vm1, %vm2261_vm15  ;;  %vm2266_vm15 = vcmp.eq.s32.totalorder %v9833_v39, %v10981_v3  ;;  %vm2283_vm1 = vcmp.eq.s32.totalorder %v9865_v42, %v10981_v3 }
 0x45b   :  { %9103 = vmatpush3.bf16.msk.msra.mxu0 %vm9102_vm3, %v12301_v59  ;;  %vm2280_vm3 = vcmp.eq.s32.totalorder %v9768_v27, %v10981_v3 }
 0x45c   :  { %8169 = vmatprep.subr.mxu0 %v12313_v60  ;;  %vm9112_vm6 = vmpackc.low %vm2280_vm3, %vm2279_vm2  ;;  %vm2284_vm2 = vcmp.eq.s32.totalorder %v9868_v43, %v10981_v3 }
 0x45e   :  { %2420 = vmatmul.mubr.f32.vlgmr.msra.gmra.mrb[18].mxu0 %v12332_v16 }
 0x45f   :  { %8171 = vmatprep.mubr.msk.f32.mxu0 %vm9578_vm0, %v12313_v60 }
 0x4f1   :  { %v1865_v4 = vpop.f32.mrb[14].mxu0 }
 0x4f2   :  { %v11068_v0 = vadd.f32 %v1865_v4, %v10885_v62  ;;  %v8163_v56 = vpop.f32.mrb[15].mxu0  ;;  %v6809_v62 = vld [vmem:[%s12188_s1 + $0x28] sm:$0xff] }
 0x4f3   :  { %v11164_v56 = vld [vmem:[%s12190_s3 + $0x7] ss:$0 sm:$0xff] }
 0x511   :  { %v7684_v49 = vpop.f32.mrb[16].mxu0 }
 0x512   :  { %v7685_v41 = vpop.f32.mrb[17].mxu0 }
 0x513   :  { %v7686_v45 = vadd.f32 %v7685_v41, %v7684_v49  ;;  %v12365_v41 = vld [vmem:[#allocation10_spill] sm:$0xff]  ;;  %v12366_v49 = vld [vmem:[#allocation11_spill] sm:$0xff] }
 0x515   :  { %v2140_v16 = vadd.f32 %v7686_v45, %v10976_v58 }
 0x517   :  { %8165 = vmatpush3.msk.msra.mxu1 %vm664_vm5, %v2140_v16  ;;  %v12367_v16 = vld [vmem:[#allocation12_spill] sm:$0xff] }
 0x518   :  { %8167 = vmatmul.mubr.msk.f32.vlgmr.msra.gmra.mrb[16].mxu1 %vm660_vm9, %v6809_v62  ;;  %9105 = vmatprep.subr.msk.bf16.mxu1 %vm9104_vm12, %v12301_v59  ;;  %vm9114_vm12 = vmpackc.low %vm2264_vm8, %vm2263_vm7  ;;  %vm2268_vm7 = vcmp.eq.s32.totalorder %v9883_v47, %v10981_v3  ;;  %vm2285_vm8 = vcmp.eq.s32.totalorder %v9915_v50, %v10981_v3  ;;  %v12368_v62 = vld [vmem:[#allocation13_spill] sm:$0xff] }
 0x519   :  { %9107 = vmatpush3.bf16.msk.msra.mxu1 %vm9106_vm13, %v12301_v59  ;;  %2489 = vmatprep.mubr.f32.mxu1 %v9656_v5  ;;  %vm9116_vm13 = vmpackc.low %vm2282_vm11, %vm2281_vm10  ;;  %vm2286_vm10 = vcmp.eq.s32.totalorder %v9918_v51, %v10981_v3 }
 0x51a   :  { %9109 = vmatprep.subr.msk.bf16.mxu1 %vm9108_vm14, %v12301_v59  ;;  %vm2265_vm14 = vcmp.eq.s32.totalorder %v9830_v38, %v10981_v3 }
 0x51b   :  { %vm9118_vm3 = vmpackc.low %vm2266_vm15, %vm2265_vm14  ;;  %vm2270_vm14 = vcmp.eq.s32.totalorder %v12294_v7, %v10981_v3  ;;  %vm2287_vm15 = vcmp.eq.s32.totalorder %v12297_v53, %v10981_v3 }
 0x51d   :  { %9111 = vmatpush3.bf16.msk.msra.mxu1 %vm9110_vm4, %v12301_v59  ;;  %vm9120_vm4 = vmpackc.low %vm2284_vm2, %vm2283_vm1  ;;  %vm2288_vm1 = vcmp.eq.s32.totalorder %v12298_v48, %v10981_v3 }
 0x51e   :  { %9113 = vmatprep.subr.msk.bf16.mxu1 %vm9112_vm6, %v12301_v59  ;;  %vm2267_vm6 = vcmp.eq.s32.totalorder %v9880_v46, %v10981_v3 }
 0x51f   :  { %vm9122_vm11 = vmpackc.low %vm2268_vm7, %vm2267_vm6  ;;  %vm2272_vm6 = vcmp.eq.s32.totalorder %v12317_v57, %v10981_v3  ;;  %vm2289_vm7 = vcmp.eq.s32.totalorder %v12318_v61, %v10981_v3 }
 0x521   :  { %9115 = vmatpush3.bf16.msk.msra.mxu1 %vm9114_vm12, %v12301_v59  ;;  %vm9124_vm12 = vmpackc.low %vm2286_vm10, %vm2285_vm8  ;;  %vm2290_vm8 = vcmp.eq.s32.totalorder %v12319_v2, %v10981_v3 }
 0x522   :  { %9117 = vmatprep.subr.msk.bf16.mxu1 %vm9116_vm13, %v12301_v59  ;;  %vm2269_vm13 = vcmp.eq.s32.totalorder %v9930_v54, %v10981_v3 }
 0x523   :  { %vm9126_vm2 = vmpackc.low %vm2270_vm14, %vm2269_vm13  ;;  %vm2274_vm13 = vcmp.eq.s32.totalorder %v12321_v1, %v10981_v3 }
 0x525   :  { %9119 = vmatpush3.bf16.msk.msra.mxu1 %vm9118_vm3, %v12301_v59  ;;  %vm9128_vm3 = vmpackc.low %vm2288_vm1, %vm2287_vm15  ;;  %vm2595_vm15 = vcmp.eq.s32.totalorder %v9668_v8, %v11164_v56  ;;  %vm2596_vm1 = vcmp.eq.s32.totalorder %v9671_v9, %v11164_v56 }
 0x526   :  { %9121 = vmatprep.subr.msk.bf16.mxu1 %vm9120_vm4, %v12301_v59  ;;  %vm2271_vm4 = vcmp.eq.s32.totalorder %v12316_v52, %v10981_v3 }
 0x527   :  { %vm9130_vm10 = vmpackc.low %vm2272_vm6, %vm2271_vm4  ;;  %vm2580_vm4 = vcmp.eq.s32.totalorder %v9680_v12, %v11164_v56 }
 0x529   :  { %9123 = vmatpush3.bf16.msk.msra.mxu1 %vm9122_vm11, %v12301_v59  ;;  %vm9132_vm11 = vmpackc.low %vm2290_vm8, %vm2289_vm7  ;;  %vm2597_vm7 = vcmp.eq.s32.totalorder %v9705_v15, %v11164_v56  ;;  %vm2598_vm8 = vcmp.eq.s32.totalorder %v9709_v17, %v11164_v56 }
 0x52a   :  { %9125 = vmatprep.subr.msk.bf16.mxu1 %vm9124_vm12, %v12301_v59  ;;  %vm2273_vm12 = vcmp.eq.s32.totalorder %v12333_v44, %v10981_v3  ;;  %v12364_v3 = vld [vmem:[#allocation9_spill] sm:$0xff] }
 0x52b   :  { %vm9134_vm14 = vmpackc.low %vm2274_vm13, %vm2273_vm12 }
 0x52c   :  { %vm9140_vm12 = vmpackc.low %vm2598_vm8, %vm2597_vm7  ;;  %vm2602_vm7 = vcmp.eq.s32.totalorder %v9812_v33, %v11164_v56  ;;  %vm2585_vm8 = vcmp.eq.s32.totalorder %v9821_v36, %v11164_v56 }
 0x52d   :  { %9127 = vmatpush3.bf16.msk.msra.mxu1 %vm9126_vm2, %v12301_v59  ;;  %vm9136_vm2 = vmpackc.low %vm2596_vm1, %vm2595_vm15  ;;  %vm2600_vm15 = vcmp.eq.s32.totalorder %v9762_v25, %v11164_v56  ;;  %vm2583_vm1 = vcmp.eq.s32.totalorder %v9771_v28, %v11164_v56 }
 0x52e   :  { %9129 = vmatprep.subr.msk.bf16.mxu1 %vm9128_vm3, %v12301_v59  ;;  %vm2579_vm3 = vcmp.eq.s32.totalorder %v9658_v6, %v11164_v56 }
 0x52f   :  { %vm9138_vm6 = vmpackc.low %vm2580_vm4, %vm2579_vm3 }
 0x531   :  { %9131 = vmatpush3.bf16.msk.msra.mxu1 %vm9130_vm10, %v12301_v59  ;;  %v7721_v58 = vpop.f32.mrb[18].mxu0  ;;  %vm2581_vm10 = vcmp.eq.s32.totalorder %v9718_v20, %v11164_v56 }
 0x532   :  { %9133 = vmatprep.subr.msk.bf16.mxu1 %vm9132_vm11, %v12301_v59  ;;  %v7722_v45 = vpop.f32.mrb[19].mxu0  ;;  %vm2582_vm11 = vcmp.eq.s32.totalorder %v9727_v21, %v11164_v56 }
 0x533   :  { %v11159_v4 = vadd.f32 %v7722_v45, %v7721_v58  ;;  %vm9142_vm13 = vmpackc.low %vm2582_vm11, %vm2581_vm10  ;;  %vm2586_vm10 = vcmp.eq.s32.totalorder %v9827_v37, %v11164_v56  ;;  %v12369_v58 = vld [vmem:[#allocation14_spill] sm:$0xff]  ;;  %v12370_v45 = vld [vmem:[#allocation16_spill] sm:$0xff] }
 0x535   :  { %9135 = vmatpush3.bf16.msk.msra.mxu1 %vm9134_vm14, %v12301_v59  ;;  %vm2599_vm14 = vcmp.eq.s32.totalorder %v9758_v24, %v11164_v56 }
 0x536   :  { %9137 = vmatprep.subr.msk.bf16.mxu1 %vm9136_vm2, %v12301_v59  ;;  %vm2584_vm2 = vcmp.eq.s32.totalorder %v9777_v29, %v11164_v56  ;;  %vm9144_vm3 = vmpackc.low %vm2600_vm15, %vm2599_vm14  ;;  %vm2587_vm15 = vcmp.eq.s32.totalorder %v12364_v3, %v11164_v56 }
 0x537   :  { %vm9146_vm4 = vmpackc.low %vm2584_vm2, %vm2583_vm1  ;;  %vm2588_vm1 = vcmp.eq.s32.totalorder %v12365_v41, %v11164_v56 }
 0x538   :  { %2490 = vmatmul.mubr.f32.vlgmr.msra.gmra.mrb[18].mxu1 %v10606_v63  ;;  %v12363_v63 = vld [vmem:[#allocation8_spill] sm:$0xff] }
 0x539   :  { %2771 = vmatprep.mubr.f32.mxu1 %v12322_v55  ;;  %9139 = vmatpush3.bf16.msk.msra.mxu1 %vm9138_vm6, %v12301_v59  ;;  %vm2601_vm6 = vcmp.eq.s32.totalorder %v9808_v32, %v11164_v56  ;;  %vm2604_vm14 = vcmp.eq.s32.totalorder %v12363_v63, %v11164_v56 }
 0x53a   :  { %9141 = vmatprep.subr.msk.bf16.mxu1 %vm9140_vm12, %v12301_v59  ;;  %vm9148_vm11 = vmpackc.low %vm2602_vm7, %vm2601_vm6  ;;  %vm2606_vm6 = vcmp.eq.s32.totalorder %v12367_v16, %v11164_v56  ;;  %vm2589_vm7 = vcmp.eq.s32.totalorder %v12368_v62, %v11164_v56  ;;  %v12372_v16 = vld [vmem:[#allocation20_spill] sm:$0xff]  ;;  %v12373_v62 = vld [vmem:[#allocation21_spill] sm:$0xff] }
 0x53b   :  { %vm9150_vm12 = vmpackc.low %vm2586_vm10, %vm2585_vm8  ;;  %vm2590_vm8 = vcmp.eq.s32.totalorder %v12369_v58, %v11164_v56  ;;  %v12374_v58 = vld [vmem:[#allocation24_spill] sm:$0xff] }
 0x53d   :  { %9143 = vmatpush3.bf16.msk.msra.mxu1 %vm9142_vm13, %v12301_v59  ;;  %vm2603_vm13 = vcmp.eq.s32.totalorder %v9858_v40, %v11164_v56 }
 0x53e   :  { %9145 = vmatprep.subr.msk.bf16.mxu1 %vm9144_vm3, %v12301_v59  ;;  %vm9152_vm2 = vmpackc.low %vm2604_vm14, %vm2603_vm13  ;;  %vm2591_vm14 = vcmp.eq.s32.totalorder %v12372_v16, %v11164_v56  ;;  %v12377_v16 = vld [vmem:[#allocation29_spill] sm:$0xff] }
 0x53f   :  { %vm9154_vm3 = vmpackc.low %vm2588_vm1, %vm2587_vm15  ;;  %vm2592_vm15 = vcmp.eq.s32.totalorder %v12373_v62, %v11164_v56 }
 0x541   :  { %9147 = vmatpush3.bf16.msk.msra.mxu1 %vm9146_vm4, %v12301_v59  ;;  %vm2605_vm4 = vcmp.eq.s32.totalorder %v12366_v49, %v11164_v56  ;;  %v12371_v49 = vld [vmem:[#allocation17_spill] sm:$0xff] }
 0x542   :  { %9149 = vmatprep.subr.msk.bf16.mxu1 %vm9148_vm11, %v12301_v59  ;;  %vm9156_vm10 = vmpackc.low %vm2606_vm6, %vm2605_vm4  ;;  %vm2608_vm13 = vcmp.eq.s32.totalorder %v12371_v49, %v11164_v56  ;;  %v12376_v49 = vld [vmem:[#allocation28_spill] sm:$0xff] }
 0x543   :  { %vm9158_vm11 = vmpackc.low %vm2590_vm8, %vm2589_vm7  ;;  %vm2593_vm6 = vcmp.eq.s32.totalorder %v12376_v49, %v11164_v56  ;;  %vm2594_vm7 = vcmp.eq.s32.totalorder %v12377_v16, %v11164_v56 }
 0x545   :  { %9151 = vmatpush3.bf16.msk.msra.mxu1 %vm9150_vm12, %v12301_v59  ;;  %vm2607_vm12 = vcmp.eq.s32.totalorder %v12370_v45, %v11164_v56  ;;  %v12375_v45 = vld [vmem:[#allocation25_spill] sm:$0xff] }
 0x546   :  { %9153 = vmatprep.subr.msk.bf16.mxu1 %vm9152_vm2, %v12301_v59  ;;  %vm9160_vm1 = vmpackc.low %vm2608_vm13, %vm2607_vm12  ;;  %vm2610_vm4 = vcmp.eq.s32.totalorder %v12375_v45, %v11164_v56  ;;  %vm2628_vm12 = vcmp.eq.s32.totalorder %v9677_v11, %v11164_v56  ;;  %vm2611_vm13 = vcmp.eq.s32.totalorder %v9685_v13, %v11164_v56 }
 0x547   :  { %vm9162_vm2 = vmpackc.low %vm2592_vm15, %vm2591_vm14  ;;  %vm2612_vm14 = vcmp.eq.s32.totalorder %v9688_v14, %v11164_v56  ;;  %vm2629_vm15 = vcmp.eq.s32.totalorder %v9712_v18, %v11164_v56 }
 0x549   :  { %9155 = vmatpush3.bf16.msk.msra.mxu1 %vm9154_vm3, %v12301_v59  ;;  %vm2609_vm3 = vcmp.eq.s32.totalorder %v12374_v58, %v11164_v56  ;;  %v11250_v58 = vld [vmem:[%s12187_s0] sm:$0xff] }
 0x54a   :  { %9157 = vmatprep.subr.msk.bf16.mxu1 %vm9156_vm10, %v12301_v59  ;;  %vm9164_vm8 = vmpackc.low %vm2610_vm4, %vm2609_vm3 }
 0x54b   :  { %vm9166_vm10 = vmpackc.low %vm2594_vm7, %vm2593_vm6  ;;  %vm2613_vm6 = vcmp.eq.s32.totalorder %v9730_v22, %v11164_v56  ;;  %vm2614_vm7 = vcmp.eq.s32.totalorder %v9733_v23, %v11164_v56 }
 0x54c   :  { %vm9170_vm3 = vmpackc.low %vm2612_vm14, %vm2611_vm13  ;;  %vm2615_vm13 = vcmp.eq.s32.totalorder %v9780_v30, %v11164_v56  ;;  %vm2616_vm14 = vcmp.eq.s32.totalorder %v9783_v31, %v11164_v56 }
 0x54d   :  { %9159 = vmatpush3.bf16.msk.msra.mxu1 %vm9158_vm11, %v12301_v59  ;;  %vm2627_vm11 = vcmp.eq.s32.totalorder %v9674_v10, %v11164_v56 }
 0x54e   :  { %9161 = vmatprep.subr.msk.bf16.mxu1 %vm9160_vm1, %v12301_v59  ;;  %vm2630_vm1 = vcmp.eq.s32.totalorder %v9715_v19, %v11164_v56 }
 0x54f   :  { %vm9172_vm4 = vmpackc.low %vm2630_vm1, %vm2629_vm15  ;;  %vm2633_vm15 = vcmp.eq.s32.totalorder %v9815_v34, %v11164_v56  ;;  %vm2634_vm1 = vcmp.eq.s32.totalorder %v9818_v35, %v11164_v56 }
 0x551   :  { %9163 = vmatpush3.bf16.msk.msra.mxu1 %vm9162_vm2, %v12301_v59  ;;  %vm9168_vm2 = vmpackc.low %vm2628_vm12, %vm2627_vm11 }
 0x552   :  { %9165 = vmatprep.subr.msk.bf16.mxu1 %vm9164_vm8, %v12301_v59  ;;  %vm2631_vm8 = vcmp.eq.s32.totalorder %v9765_v26, %v11164_v56  ;;  %vm9174_vm11 = vmpackc.low %vm2614_vm7, %vm2613_vm6  ;;  %vm2618_vm6 = vcmp.eq.s32.totalorder %v9833_v39, %v11164_v56  ;;  %vm2635_vm7 = vcmp.eq.s32.totalorder %v9865_v42, %v11164_v56 }
 0x555   :  { %9167 = vmatpush3.bf16.msk.msra.mxu1 %vm9166_vm10, %v12301_v59  ;;  %vm2632_vm10 = vcmp.eq.s32.totalorder %v9768_v27, %v11164_v56 }
 0x556   :  { %8174 = vmatprep.subr.mxu1 %v12313_v60  ;;  %vm9176_vm12 = vmpackc.low %vm2632_vm10, %vm2631_vm8  ;;  %vm2636_vm8 = vcmp.eq.s32.totalorder %v9868_v43, %v11164_v56 }
 0x558   :  { %2772 = vmatmul.mubr.f32.vlgmr.msra.gmra.mrb[20].mxu1 %v11250_v58 }
 0x559   :  { %8176 = vmatprep.mubr.msk.f32.mxu1 %vm9578_vm0, %v12313_v60 }
 0x5eb   :  { %v2217_v49 = vpop.f32.mrb[16].mxu1 }
 0x5ec   :  { %v11256_v16 = vadd.f32 %v2217_v49, %v11068_v0  ;;  %v8168_v45 = vpop.f32.mrb[17].mxu1  ;;  %v6877_v49 = vld [vmem:[%s12188_s1 + $0x30] sm:$0xff] }
 0x5ed   :  { %v12389_v45 = vld [vmem:[#allocation25_spill] sm:$0xff] }
 0x60b   :  { %v7756_v62 = vpop.f32.mrb[18].mxu1 }
 0x60c   :  { %v7757_v41 = vpop.f32.mrb[19].mxu1 }
 0x60d   :  { %v7758_v3 = vadd.f32 %v7757_v41, %v7756_v62 }
 0x60f   :  { %v2492_v0 = vadd.f32 %v7758_v3, %v11159_v4  ;;  %v11348_v4 = vld [vmem:[%s12187_s0 + $0x8] sm:$0xff] }
 0x611   :  { %8170 = vmatpush3.msk.msra.mxu0 %vm664_vm5, %v2492_v0  ;;  %v12390_v0 = vld [vmem:[#allocation28_spill] sm:$0xff] }
 0x612   :  { %8172 = vmatmul.mubr.msk.f32.vlgmr.msra.gmra.mrb[20].mxu0 %vm660_vm9, %v6877_v49  ;;  %9169 = vmatprep.subr.msk.bf16.mxu0 %vm9168_vm2, %v12301_v59  ;;  %vm9178_vm2 = vmpackc.low %vm2616_vm14, %vm2615_vm13  ;;  %vm2620_vm13 = vcmp.eq.s32.totalorder %v9883_v47, %v11164_v56  ;;  %vm2637_vm14 = vcmp.eq.s32.totalorder %v9915_v50, %v11164_v56  ;;  %v12391_v49 = vld [vmem:[#allocation29_spill] sm:$0xff] }
 0x613   :  { %9171 = vmatpush3.bf16.msk.msra.mxu0 %vm9170_vm3, %v12301_v59  ;;  %2841 = vmatprep.mubr.f32.mxu0 %v9656_v5  ;;  %vm9180_vm3 = vmpackc.low %vm2634_vm1, %vm2633_vm15  ;;  %vm2638_vm15 = vcmp.eq.s32.totalorder %v9918_v51, %v11164_v56 }
 0x614   :  { %9173 = vmatprep.subr.msk.bf16.mxu0 %vm9172_vm4, %v12301_v59  ;;  %vm2617_vm4 = vcmp.eq.s32.totalorder %v9830_v38, %v11164_v56 }
 0x615   :  { %vm9182_vm10 = vmpackc.low %vm2618_vm6, %vm2617_vm4  ;;  %vm2622_vm4 = vcmp.eq.s32.totalorder %v12294_v7, %v11164_v56  ;;  %vm2639_vm6 = vcmp.eq.s32.totalorder %v12297_v53, %v11164_v56 }
 0x617   :  { %9175 = vmatpush3.bf16.msk.msra.mxu0 %vm9174_vm11, %v12301_v59  ;;  %vm9184_vm11 = vmpackc.low %vm2636_vm8, %vm2635_vm7  ;;  %vm2640_vm7 = vcmp.eq.s32.totalorder %v12298_v48, %v11164_v56 }
 0x618   :  { %9177 = vmatprep.subr.msk.bf16.mxu0 %vm9176_vm12, %v12301_v59  ;;  %vm2619_vm12 = vcmp.eq.s32.totalorder %v9880_v46, %v11164_v56 }
 0x619   :  { %vm9186_vm1 = vmpackc.low %vm2620_vm13, %vm2619_vm12  ;;  %vm2624_vm12 = vcmp.eq.s32.totalorder %v12317_v57, %v11164_v56  ;;  %vm2641_vm13 = vcmp.eq.s32.totalorder %v12318_v61, %v11164_v56 }
 0x61b   :  { %9179 = vmatpush3.bf16.msk.msra.mxu0 %vm9178_vm2, %v12301_v59  ;;  %vm9188_vm2 = vmpackc.low %vm2638_vm15, %vm2637_vm14  ;;  %vm2642_vm14 = vcmp.eq.s32.totalorder %v12319_v2, %v11164_v56 }
 0x61c   :  { %9181 = vmatprep.subr.msk.bf16.mxu0 %vm9180_vm3, %v12301_v59  ;;  %vm2621_vm3 = vcmp.eq.s32.totalorder %v9930_v54, %v11164_v56 }
 0x61d   :  { %vm9190_vm8 = vmpackc.low %vm2622_vm4, %vm2621_vm3  ;;  %vm2626_vm3 = vcmp.eq.s32.totalorder %v12321_v1, %v11164_v56 }
 0x61f   :  { %9183 = vmatpush3.bf16.msk.msra.mxu0 %vm9182_vm10, %v12301_v59  ;;  %vm9192_vm10 = vmpackc.low %vm2640_vm7, %vm2639_vm6 }
 0x620   :  { %9185 = vmatprep.subr.msk.bf16.mxu0 %vm9184_vm11, %v12301_v59  ;;  %vm2623_vm11 = vcmp.eq.s32.totalorder %v12316_v52, %v11164_v56 }
 0x621   :  { %vm9194_vm15 = vmpackc.low %vm2624_vm12, %vm2623_vm11 }
 0x623   :  { %9187 = vmatpush3.bf16.msk.msra.mxu0 %vm9186_vm1, %v12301_v59  ;;  %vm9196_vm1 = vmpackc.low %vm2642_vm14, %vm2641_vm13 }
 0x624   :  { %9189 = vmatprep.subr.msk.bf16.mxu0 %vm9188_vm2, %v12301_v59  ;;  %vm2625_vm2 = vcmp.eq.s32.totalorder %v12333_v44, %v11164_v56  ;;  %v11357_v56 = vld [vmem:[%s12190_s3 + $0x8] ss:$0 sm:$0xff] }
 0x625   :  { %vm9198_vm4 = vmpackc.low %vm2626_vm3, %vm2625_vm2  ;;  %vm2947_vm6 = vcmp.eq.s32.totalorder %v9668_v8, %v11357_v56  ;;  %vm2948_vm7 = vcmp.eq.s32.totalorder %v9671_v9, %v11357_v56  ;;  %vm2932_vm11 = vcmp.eq.s32.totalorder %v9680_v12, %v11357_v56  ;;  %vm2949_vm13 = vcmp.eq.s32.totalorder %v9705_v15, %v11357_v56  ;;  %v12378_v8 = vld [vmem:[#allocation9_spill] sm:$0xff]  ;;  %v12379_v9 = vld [vmem:[#allocation10_spill] sm:$0xff] }
 0x626   :  { %vm2950_vm14 = vcmp.eq.s32.totalorder %v9709_v17, %v11357_v56  ;;  %v12380_v15 = vld [vmem:[#allocation11_spill] sm:$0xff]  ;;  %v12381_v17 = vld [vmem:[#allocation12_spill] sm:$0xff] }
 0x627   :  { %9191 = vmatpush3.bf16.msk.msra.mxu0 %vm9190_vm8, %v12301_v59  ;;  %vm9200_vm8 = vmpackc.low %vm2948_vm7, %vm2947_vm6  ;;  %vm2952_vm6 = vcmp.eq.s32.totalorder %v9762_v25, %v11357_v56  ;;  %vm2935_vm7 = vcmp.eq.s32.totalorder %v9771_v28, %v11357_v56  ;;  %v12383_v25 = vld [vmem:[#allocation14_spill] sm:$0xff] }
 0x628   :  { %9193 = vmatprep.subr.msk.bf16.mxu0 %vm9192_vm10, %v12301_v59  ;;  %vm2931_vm10 = vcmp.eq.s32.totalorder %v9658_v6, %v11357_v56  ;;  %vm9204_vm2 = vmpackc.low %vm2950_vm14, %vm2949_vm13  ;;  %vm2954_vm13 = vcmp.eq.s32.totalorder %v9812_v33, %v11357_v56  ;;  %vm2937_vm14 = vcmp.eq.s32.totalorder %v9821_v36, %v11357_v56  ;;  %v12385_v33 = vld [vmem:[#allocation17_spill] sm:$0xff] }
 0x629   :  { %vm9202_vm12 = vmpackc.low %vm2932_vm11, %vm2931_vm10 }
 0x62b   :  { %9195 = vmatpush3.bf16.msk.msra.mxu0 %vm9194_vm15, %v12301_v59  ;;  %v7793_v3 = vpop.f32.mrb[20].mxu1  ;;  %vm2933_vm15 = vcmp.eq.s32.totalorder %v9718_v20, %v11357_v56 }
 0x62c   :  { %9197 = vmatprep.subr.msk.bf16.mxu0 %vm9196_vm1, %v12301_v59  ;;  %v7794_v41 = vpop.f32.mrb[21].mxu1  ;;  %vm2934_vm1 = vcmp.eq.s32.totalorder %v9727_v21, %v11357_v56 }
 0x62d   :  { %v11352_v62 = vadd.f32 %v7794_v41, %v7793_v3  ;;  %vm9206_vm3 = vmpackc.low %vm2934_vm1, %vm2933_vm15  ;;  %vm2938_vm15 = vcmp.eq.s32.totalorder %v9827_v37, %v11357_v56 }
 0x62f   :  { %9199 = vmatpush3.bf16.msk.msra.mxu0 %vm9198_vm4, %v12301_v59  ;;  %vm2951_vm4 = vcmp.eq.s32.totalorder %v9758_v24, %v11357_v56  ;;  %v12382_v24 = vld [vmem:[#allocation13_spill] sm:$0xff] }
 0x630   :  { %9201 = vmatprep.subr.msk.bf16.mxu0 %vm9200_vm8, %v12301_v59  ;;  %vm2936_vm8 = vcmp.eq.s32.totalorder %v9777_v29, %v11357_v56  ;;  %vm9208_vm10 = vmpackc.low %vm2952_vm6, %vm2951_vm4  ;;  %vm2956_vm4 = vcmp.eq.s32.totalorder %v12363_v63, %v11357_v56  ;;  %vm2939_vm6 = vcmp.eq.s32.totalorder %v12378_v8, %v11357_v56  ;;  %v12388_v63 = vld [vmem:[#allocation24_spill] sm:$0xff] }
 0x631   :  { %vm9210_vm11 = vmpackc.low %vm2936_vm8, %vm2935_vm7  ;;  %vm2940_vm7 = vcmp.eq.s32.totalorder %v12379_v9, %v11357_v56 }
 0x632   :  { %2842 = vmatmul.mubr.f32.vlgmr.msra.gmra.mrb[22].mxu0 %v11348_v4 }
 0x633   :  { %3123 = vmatprep.mubr.f32.mxu0 %v12322_v55  ;;  %9203 = vmatpush3.bf16.msk.msra.mxu0 %vm9202_vm12, %v12301_v59  ;;  %vm2953_vm12 = vcmp.eq.s32.totalorder %v9808_v32, %v11357_v56  ;;  %v12384_v32 = vld [vmem:[#allocation16_spill] sm:$0xff]  ;;  %v12387_v55 = vld [vmem:[#allocation21_spill] sm:$0xff] }
 0x634   :  { %9205 = vmatprep.subr.msk.bf16.mxu0 %vm9204_vm2, %v12301_v59  ;;  %vm9212_vm1 = vmpackc.low %vm2954_vm13, %vm2953_vm12  ;;  %vm2958_vm12 = vcmp.eq.s32.totalorder %v12381_v17, %v11357_v56  ;;  %vm2941_vm13 = vcmp.eq.s32.totalorder %v12382_v24, %v11357_v56 }
 0x635   :  { %vm9214_vm2 = vmpackc.low %vm2938_vm15, %vm2937_vm14  ;;  %vm2942_vm14 = vcmp.eq.s32.totalorder %v12383_v25, %v11357_v56 }
 0x637   :  { %9207 = vmatpush3.bf16.msk.msra.mxu0 %vm9206_vm3, %v12301_v59  ;;  %vm2955_vm3 = vcmp.eq.s32.totalorder %v9858_v40, %v11357_v56  ;;  %v12386_v40 = vld [vmem:[#allocation20_spill] sm:$0xff] }
 0x638   :  { %9209 = vmatprep.subr.msk.bf16.mxu0 %vm9208_vm10, %v12301_v59  ;;  %vm9216_vm8 = vmpackc.low %vm2956_vm4, %vm2955_vm3  ;;  %vm2960_vm3 = vcmp.eq.s32.totalorder %v12385_v33, %v11357_v56  ;;  %vm2943_vm4 = vcmp.eq.s32.totalorder %v12386_v40, %v11357_v56 }
 0x639   :  { %vm9218_vm10 = vmpackc.low %vm2940_vm7, %vm2939_vm6  ;;  %vm2944_vm6 = vcmp.eq.s32.totalorder %v12387_v55, %v11357_v56 }
 0x63b   :  { %9211 = vmatpush3.bf16.msk.msra.mxu0 %vm9210_vm11, %v12301_v59  ;;  %vm2957_vm11 = vcmp.eq.s32.totalorder %v12380_v15, %v11357_v56 }
 0x63c   :  { %9213 = vmatprep.subr.msk.bf16.mxu0 %vm9212_vm1, %v12301_v59  ;;  %vm9220_vm15 = vmpackc.low %vm2958_vm12, %vm2957_vm11  ;;  %vm2962_vm11 = vcmp.eq.s32.totalorder %v12389_v45, %v11357_v56  ;;  %vm2945_vm12 = vcmp.eq.s32.totalorder %v12390_v0, %v11357_v56  ;;  %v7070_v45 = vld [vmem:[%s12191_s4 + $0x10] sm:$0xff] }
 0x63d   :  { %vm9222_vm1 = vmpackc.low %vm2942_vm14, %vm2941_vm13  ;;  %vm2946_vm13 = vcmp.eq.s32.totalorder %v12391_v49, %v11357_v56 }
 0x63f   :  { %9215 = vmatpush3.bf16.msk.msra.mxu0 %vm9214_vm2, %v12301_v59  ;;  %vm2959_vm2 = vcmp.eq.s32.totalorder %v12384_v32, %v11357_v56 }
 0x640   :  { %9217 = vmatprep.subr.msk.bf16.mxu0 %vm9216_vm8, %v12301_v59  ;;  %vm9224_vm7 = vmpackc.low %vm2960_vm3, %vm2959_vm2  ;;  %vm2980_vm2 = vcmp.eq.s32.totalorder %v9677_v11, %v11357_v56  ;;  %vm2963_vm3 = vcmp.eq.s32.totalorder %v9685_v13, %v11357_v56 }
 0x641   :  { %vm9226_vm8 = vmpackc.low %vm2944_vm6, %vm2943_vm4  ;;  %vm2964_vm4 = vcmp.eq.s32.totalorder %v9688_v14, %v11357_v56  ;;  %vm2981_vm6 = vcmp.eq.s32.totalorder %v9712_v18, %v11357_v56  ;;  %v3278_v14 = vld [vmem:[%s12189_s2] sm:$0xff] }
 0x642   :  { %v11542_v18 = vld [vmem:[%s12193_s6] ss:$0 sm:$0xff] }
 0x643   :  { %9219 = vmatpush3.bf16.msk.msra.mxu0 %vm9218_vm10, %v12301_v59  ;;  %vm2961_vm10 = vcmp.eq.s32.totalorder %v12388_v63, %v11357_v56  ;;  %v7072_v63 = vld [vmem:[%s12193_s6 + $0x3] ss:$0 sm:$0xff] }
 0x644   :  { %9221 = vmatprep.subr.msk.bf16.mxu0 %vm9220_vm15, %v12301_v59  ;;  %vm9228_vm14 = vmpackc.low %vm2962_vm11, %vm2961_vm10 }
 0x645   :  { %vm9230_vm15 = vmpackc.low %vm2946_vm13, %vm2945_vm12  ;;  %vm2965_vm12 = vcmp.eq.s32.totalorder %v9730_v22, %v11357_v56  ;;  %vm2966_vm13 = vcmp.eq.s32.totalorder %v9733_v23, %v11357_v56  ;;  %v9580_v22 = vmov 0.0|0.0   ;;  %v4933_v23 = vld [vmem:[%s12192_s5] sm:$0xff] }
 0x646   :  { %vm9234_vm10 = vmpackc.low %vm2964_vm4, %vm2963_vm3  ;;  %vm2967_vm3 = vcmp.eq.s32.totalorder %v9780_v30, %v11357_v56  ;;  %vm2968_vm4 = vcmp.eq.s32.totalorder %v9783_v31, %v11357_v56  ;;  %v7033_v31 = vld [vmem:[%s12193_s6 + $0x1] ss:$0 sm:$0xff] }
 0x647   :  { %9223 = vmatpush3.bf16.msk.msra.mxu0 %vm9222_vm1, %v12301_v59  ;;  %vm2979_vm1 = vcmp.eq.s32.totalorder %v9674_v10, %v11357_v56  ;;  %v6945_v10 = vld [vmem:[%s12188_s1 + $0x38] sm:$0xff] }
 0x648   :  { %9225 = vmatprep.subr.msk.bf16.mxu0 %vm9224_vm7, %v12301_v59  ;;  %vm2982_vm7 = vcmp.eq.s32.totalorder %v9715_v19, %v11357_v56  ;;  %v9579_v19 = vmov 0  }
 0x649   :  { %vm9236_vm11 = vmpackc.low %vm2982_vm7, %vm2981_vm6  ;;  %vm2985_vm6 = vcmp.eq.s32.totalorder %v9815_v34, %v11357_v56  ;;  %vm2986_vm7 = vcmp.eq.s32.totalorder %v9818_v35, %v11357_v56  ;;  %9540 = vset.pattern.permute.xlu0 %v9579_v19  ;;  %9541 = vset.pattern.permute.xlu1 %v9579_v19  ;;  %v7108_v19 = vld [vmem:[%s12191_s4 + $0x20] sm:$0xff] }
 0x64a   :  { %3281 = vperm.xlu0 %9540, %v3278_v14  }
 0x64b   :  { %9227 = vmatpush3.bf16.msk.msra.mxu0 %vm9226_vm8, %v12301_v59  ;;  %vm9232_vm8 = vmpackc.low %vm2980_vm2, %vm2979_vm1 }
 0x64c   :  { %9229 = vmatprep.subr.msk.bf16.mxu0 %vm9228_vm14, %v12301_v59  ;;  %vm2983_vm14 = vcmp.eq.s32.totalorder %v9765_v26, %v11357_v56  ;;  %vm9238_vm1 = vmpackc.low %vm2966_vm13, %vm2965_vm12  ;;  %vm2970_vm12 = vcmp.eq.s32.totalorder %v9833_v39, %v11357_v56  ;;  %vm2987_vm13 = vcmp.eq.s32.totalorder %v9865_v42, %v11357_v56  ;;  %v7013_v42 = vld [vmem:[%s12188_s1 + $0x40] sm:$0xff] }
 0x64e   :  { %4936 = vperm.xlu0 %9540, %v4933_v23  }
 0x64f   :  { %9231 = vmatpush3.bf16.msk.msra.mxu0 %vm9230_vm15, %v12301_v59  ;;  %vm2984_vm15 = vcmp.eq.s32.totalorder %v9768_v27, %v11357_v56 }
 0x650   :  { %8179 = vmatprep.subr.mxu0 %v12313_v60  ;;  %vm9240_vm2 = vmpackc.low %vm2984_vm15, %vm2983_vm14  ;;  %vm2988_vm14 = vcmp.eq.s32.totalorder %v9868_v43, %v11357_v56 }
 0x652   :  { %3124 = vmatmul.mubr.f32.vlgmr.msra.gmra.mrb[24].mxu0 %v11250_v58 }
 0x653   :  { %8181 = vmatprep.mubr.msk.f32.mxu0 %vm9578_vm0, %v12313_v60 }
 0x6e5   :  { %v2569_v3 = vpop.f32.mrb[20].mxu0 }
 0x6e6   :  { %v11444_v41 = vadd.f32 %v2569_v3, %v11256_v16  ;;  %v8173_v15 = vpop.f32.mrb[21].mxu0 }
 0x705   :  { %v7828_v17 = vpop.f32.mrb[22].mxu0 }
 0x706   :  { %v7829_v32 = vpop.f32.mrb[23].mxu0 }
 0x707   :  { %v7830_v33 = vadd.f32 %v7829_v32, %v7828_v17 }
 0x709   :  { %v2844_v16 = vadd.f32 %v7830_v33, %v11352_v62  ;;  %v7091_v33 = vld [vmem:[%s12193_s6 + $0x4] ss:$0 sm:$0xff] }
 0x70b   :  { %8175 = vmatpush3.msk.msra.mxu1 %vm664_vm5, %v2844_v16  ;;  %v7089_v16 = vld [vmem:[%s12191_s4 + $0x18] sm:$0xff] }
 0x70c   :  { %8177 = vmatmul.mubr.msk.f32.vlgmr.msra.gmra.mrb[22].mxu1 %vm660_vm9, %v6945_v10  ;;  %9233 = vmatprep.subr.msk.bf16.mxu1 %vm9232_vm8, %v12301_v59  ;;  %vm9242_vm8 = vmpackc.low %vm2968_vm4, %vm2967_vm3  ;;  %vm2972_vm3 = vcmp.eq.s32.totalorder %v9883_v47, %v11357_v56  ;;  %vm2989_vm4 = vcmp.eq.s32.totalorder %v9915_v50, %v11357_v56 }
 0x70d   :  { %9235 = vmatpush3.bf16.msk.msra.mxu1 %vm9234_vm10, %v12301_v59  ;;  %3193 = vmatprep.mubr.f32.mxu1 %v9656_v5  ;;  %vm9244_vm10 = vmpackc.low %vm2986_vm7, %vm2985_vm6  ;;  %vm2990_vm6 = vcmp.eq.s32.totalorder %v9918_v51, %v11357_v56 }
 0x70e   :  { %9237 = vmatprep.subr.msk.bf16.mxu1 %vm9236_vm11, %v12301_v59  ;;  %vm2969_vm11 = vcmp.eq.s32.totalorder %v9830_v38, %v11357_v56 }
 0x70f   :  { %vm9246_vm15 = vmpackc.low %vm2970_vm12, %vm2969_vm11  ;;  %vm2974_vm11 = vcmp.eq.s32.totalorder %v12294_v7, %v11357_v56  ;;  %vm2991_vm12 = vcmp.eq.s32.totalorder %v12297_v53, %v11357_v56  ;;  %v7050_v7 = vld [vmem:[%s12191_s4 + $0x8] sm:$0xff] }
 0x711   :  { %9239 = vmatpush3.bf16.msk.msra.mxu1 %vm9238_vm1, %v12301_v59  ;;  %vm9248_vm1 = vmpackc.low %vm2988_vm14, %vm2987_vm13  ;;  %vm2992_vm13 = vcmp.eq.s32.totalorder %v12298_v48, %v11357_v56  ;;  %v3282_v48 = vpop.permute.xlu0 %3281 }
 0x712   :  { %9241 = vmatprep.subr.msk.bf16.mxu1 %vm9240_vm2, %v12301_v59  ;;  %vm2971_vm2 = vcmp.eq.s32.totalorder %v9880_v46, %v11357_v56 }
 0x713   :  { %vm9250_vm7 = vmpackc.low %vm2972_vm3, %vm2971_vm2  ;;  %vm2976_vm2 = vcmp.eq.s32.totalorder %v12317_v57, %v11357_v56  ;;  %vm2993_vm3 = vcmp.eq.s32.totalorder %v12318_v61, %v11357_v56  ;;  %v3395_v61 = vld [vmem:[%s12191_s4] sm:$0xff] }
 0x715   :  { %9243 = vmatpush3.bf16.msk.msra.mxu1 %vm9242_vm8, %v12301_v59  ;;  %vm9252_vm8 = vmpackc.low %vm2990_vm6, %vm2989_vm4  ;;  %vm2994_vm4 = vcmp.eq.s32.totalorder %v12319_v2, %v11357_v56 }
 0x716   :  { %9245 = vmatprep.subr.msk.bf16.mxu1 %vm9244_vm10, %v12301_v59  ;;  %vm2973_vm10 = vcmp.eq.s32.totalorder %v9930_v54, %v11357_v56  ;;  %v7053_v54 = vld [vmem:[%s12193_s6 + $0x2] ss:$0 sm:$0xff] }
 0x717   :  { %vm9254_vm14 = vmpackc.low %vm2974_vm11, %vm2973_vm10  ;;  %vm2978_vm10 = vcmp.eq.s32.totalorder %v12321_v1, %v11357_v56 }
 0x719   :  { %9247 = vmatpush3.bf16.msk.msra.mxu1 %vm9246_vm15, %v12301_v59  ;;  %vm9256_vm15 = vmpackc.low %vm2992_vm13, %vm2991_vm12  ;;  %vm3293_vm12 = vcmp.eq.s32.totalorder %v9658_v6, %v11542_v18  ;;  %vm3294_vm13 = vcmp.eq.s32.totalorder %v9680_v12, %v11542_v18 }
 0x71a   :  { %9249 = vmatprep.subr.msk.bf16.mxu1 %vm9248_vm1, %v12301_v59  ;;  %vm2975_vm1 = vcmp.eq.s32.totalorder %v12316_v52, %v11357_v56 }
 0x71b   :  { %vm9258_vm6 = vmpackc.low %vm2976_vm2, %vm2975_vm1  ;;  %vm3296_vm1 = vcmp.eq.s32.totalorder %v9727_v21, %v11542_v18 }
 0x71d   :  { %9251 = vmatpush3.bf16.msk.msra.mxu1 %vm9250_vm7, %v12301_v59  ;;  %vm9260_vm7 = vmpackc.low %vm2994_vm4, %vm2993_vm3  ;;  %vm3297_vm3 = vcmp.eq.s32.totalorder %v9771_v28, %v11542_v18  ;;  %vm3298_vm4 = vcmp.eq.s32.totalorder %v9777_v29, %v11542_v18 }
 0x71e   :  { %9253 = vmatprep.subr.msk.bf16.mxu1 %vm9252_vm8, %v12301_v59  ;;  %vm2977_vm8 = vcmp.eq.s32.totalorder %v12333_v44, %v11357_v56 }
 0x71f   :  { %vm9262_vm11 = vmpackc.low %vm2978_vm10, %vm2977_vm8  ;;  %vm3300_vm8 = vcmp.eq.s32.totalorder %v9827_v37, %v11542_v18 }
 0x721   :  { %9255 = vmatpush3.bf16.msk.msra.mxu1 %vm9254_vm14, %v12301_v59  ;;  %vm9265_vm14 = vmpackc.low %vm3294_vm13, %vm3293_vm12  ;;  %vm3302_vm12 = vcmp.eq.s32.totalorder %v12379_v9, %v11542_v18 }
 0x722   :  { %9257 = vmatprep.subr.msk.bf16.mxu1 %vm9256_vm15, %v12301_v59  ;;  %vm3295_vm15 = vcmp.eq.s32.totalorder %v9718_v20, %v11542_v18 }
 0x723   :  { %vm9268_vm2 = vmpackc.low %vm3296_vm1, %vm3295_vm15  ;;  %vm3304_vm15 = vcmp.eq.s32.totalorder %v12383_v25, %v11542_v18 }
 0x725   :  { %9259 = vmatpush3.bf16.msk.msra.mxu1 %vm9258_vm6, %v12301_v59  ;;  %v7865_v5 = vpop.f32.mrb[24].mxu0  ;;  %vm9271_vm6 = vmpackc.low %vm3298_vm4, %vm3297_vm3  ;;  %vm3402_vm3 = vcmp.eq.s32.totalorder %v9680_v12, %v7033_v31 }
 0x726   :  { %9261 = vmatprep.subr.msk.bf16.mxu1 %vm9260_vm7, %v12301_v59  ;;  %v7866_v11 = vpop.f32.mrb[25].mxu0  ;;  %vm3299_vm7 = vcmp.eq.s32.totalorder %v9821_v36, %v11542_v18 }
 0x727   :  { %v7867_v13 = vadd.f32 %v7866_v11, %v7865_v5  ;;  %vm9274_vm10 = vmpackc.low %vm3300_vm8, %vm3299_vm7  ;;  %vm3404_vm7 = vcmp.eq.s32.totalorder %v9727_v21, %v7033_v31 }
 0x729   :  { %9263 = vmatpush3.bf16.msk.msra.mxu1 %vm9262_vm11, %v12301_v59  ;;  %vm3301_vm11 = vcmp.eq.s32.totalorder %v12378_v8, %v11542_v18 }
 0x72a   :  { %9264 = vmatprep.subr.bf16.mxu1 %v9580_v22  ;;  %vm9277_vm13 = vmpackc.low %vm3302_vm12, %vm3301_vm11  ;;  %vm3408_vm12 = vcmp.eq.s32.totalorder %v9827_v37, %v7033_v31 }
 0x72c   :  { %3194 = vmatmul.mubr.f32.vlgmr.msra.gmra.mrb[24].mxu1 %v11348_v4 }
 0x72d   :  { %8216 = vmatprep.mubr.msk.f32.mxu1 %vm9578_vm0, %v12313_v60  ;;  %9266 = vmatpush3.bf16.msk.msra.mxu1 %vm9265_vm14, %v12301_v59  ;;  %vm3303_vm14 = vcmp.eq.s32.totalorder %v12382_v24, %v11542_v18 }
 0x72e   :  { %9267 = vmatprep.subr.bf16.mxu1 %v9580_v22  ;;  %vm9280_vm1 = vmpackc.low %vm3304_vm15, %vm3303_vm14  ;;  %vm3409_vm14 = vcmp.eq.s32.totalorder %v12378_v8, %v7033_v31  ;;  %vm3410_vm15 = vcmp.eq.s32.totalorder %v12379_v9, %v7033_v31 }
 0x731   :  { %9269 = vmatpush3.bf16.msk.msra.mxu1 %vm9268_vm2, %v12301_v59  ;;  %vm3401_vm2 = vcmp.eq.s32.totalorder %v9658_v6, %v7033_v31 }
 0x732   :  { %9270 = vmatprep.subr.bf16.mxu1 %v9580_v22  ;;  %vm9289_vm4 = vmpackc.low %vm3402_vm3, %vm3401_vm2  ;;  %vm3411_vm2 = vcmp.eq.s32.totalorder %v12382_v24, %v7033_v31  ;;  %vm3412_vm3 = vcmp.eq.s32.totalorder %v12383_v25, %v7033_v31 }
 0x735   :  { %9272 = vmatpush3.bf16.msk.msra.mxu1 %vm9271_vm6, %v12301_v59  ;;  %vm3403_vm6 = vcmp.eq.s32.totalorder %v9718_v20, %v7033_v31 }
 0x736   :  { %9273 = vmatprep.subr.bf16.mxu1 %v9580_v22  ;;  %vm9292_vm8 = vmpackc.low %vm3404_vm7, %vm3403_vm6  ;;  %vm3305_vm6 = vcmp.eq.s32.totalorder %v12386_v40, %v11542_v18  ;;  %vm3306_vm7 = vcmp.eq.s32.totalorder %v12387_v55, %v11542_v18 }
 0x739   :  { %9275 = vmatpush3.bf16.msk.msra.mxu1 %vm9274_vm10, %v12301_v59  ;;  %vm3405_vm10 = vcmp.eq.s32.totalorder %v9771_v28, %v7033_v31 }
 0x73a   :  { %9276 = vmatprep.subr.bf16.mxu1 %v9580_v22 }
 0x73d   :  { %9278 = vmatpush3.bf16.msk.msra.mxu1 %vm9277_vm13, %v12301_v59 }
 0x73e   :  { %9279 = vmatprep.subr.bf16.mxu1 %v9580_v22 }
 0x741   :  { %9281 = vmatpush3.bf16.msk.msra.mxu1 %vm9280_vm1, %v12301_v59  ;;  %vm9301_vm1 = vmpackc.low %vm3410_vm15, %vm3409_vm14  ;;  %vm3416_vm14 = vcmp.eq.s32.totalorder %v12391_v49, %v7033_v31 }
 0x742   :  { %9282 = vmatprep.subr.bf16.mxu1 %v9580_v22 }
 0x7df   :  { %v2921_v26 = vpop.f32.mrb[22].mxu1 }
 0x7e0   :  { %v11585_v27 = vadd.f32 %v2921_v26, %v11444_v41  ;;  %v8178_v30 = vpop.f32.mrb[23].mxu1 }
 0x7ff   :  { %v7900_v34 = vpop.f32.mrb[24].mxu1 }
 0x800   :  { %v7901_v35 = vpop.f32.mrb[25].mxu1 }
 0x801   :  { %v7902_v38 = vadd.f32 %v7901_v35, %v7900_v34  ;;  %v7129_v34 = vld [vmem:[%s12193_s6 + $0x6] ss:$0 sm:$0xff]  ;;  %v7127_v35 = vld [vmem:[%s12191_s4 + $0x28] sm:$0xff] }
 0x803   :  { %v3196_v39 = vadd.f32 %v7902_v38, %v7867_v13 }
 0x805   :  { %8180 = vmatpush3.msk.msra.mxu0 %vm664_vm5, %v3196_v39  ;;  %vm3406_vm5 = vcmp.eq.s32.totalorder %v9777_v29, %v7033_v31 }
 0x806   :  { %8182 = vmatmul.mubr.msk.f32.vlgmr.msra.gmra.mrb[26].mxu0 %vm660_vm9, %v7013_v42  ;;  %9288 = vmatprep.subr.bf16.mxu0 %v9580_v22  ;;  %vm9295_vm11 = vmpackc.low %vm3406_vm5, %vm3405_vm10  ;;  %vm3407_vm9 = vcmp.eq.s32.totalorder %v9821_v36, %v7033_v31  ;;  %vm3414_vm10 = vcmp.eq.s32.totalorder %v12387_v55, %v7033_v31 }
 0x807   :  { %9290 = vmatpush3.bf16.msk.msra.mxu0 %vm9289_vm4, %v12301_v59  ;;  %8251 = vmatprep.mubr.msk.f32.mxu0 %vm9578_vm0, %v12313_v60  ;;  %vm9298_vm13 = vmpackc.low %vm3408_vm12, %vm3407_vm9  ;;  %vm3307_vm9 = vcmp.eq.s32.totalorder %v12390_v0, %v11542_v18  ;;  %vm3308_vm12 = vcmp.eq.s32.totalorder %v12391_v49, %v11542_v18  ;;  %v7110_v18 = vld [vmem:[%s12193_s6 + $0x5] ss:$0 sm:$0xff] }
 0x808   :  { %9291 = vmatprep.subr.bf16.mxu0 %v9580_v22  ;;  %vm9304_vm4 = vmpackc.low %vm3412_vm3, %vm3411_vm2  ;;  %vm3657_vm3 = vcmp.eq.s32.totalorder %v9658_v6, %v7053_v54 }
 0x809   :  { %vm9283_vm5 = vmpackc.low %vm3306_vm7, %vm3305_vm6  ;;  %vm3505_vm6 = vcmask 64512  }
 0x80a   :  { %9284 = vmatpush3.bf16.msk.msra.mxu1 %vm9283_vm5, %v12301_v59  ;;  %vm9286_vm15 = vmpackc.low %vm3308_vm12, %vm3307_vm9  ;;  %vm3662_vm9 = vcmp.eq.s32.totalorder %v9777_v29, %v7053_v54 }
 0x80b   :  { %9293 = vmatpush3.bf16.msk.msra.mxu0 %vm9292_vm8, %v12301_v59  ;;  %vm3413_vm8 = vcmp.eq.s32.totalorder %v12386_v40, %v7033_v31  ;;  %9285 = vmatprep.subr.bf16.mxu1 %v9580_v22 }
 0x80c   :  { %9294 = vmatprep.subr.bf16.mxu0 %v9580_v22 }
 0x80e   :  { %9287 = vmatpush3.bf16.msk.msra.mxu1 %vm9286_vm15, %v12301_v59 }
 0x80f   :  { %9296 = vmatpush3.bf16.msk.msra.mxu0 %vm9295_vm11, %v12301_v59  ;;  %vm9307_vm11 = vmpackc.low %vm3414_vm10, %vm3413_vm8  ;;  %8254 = vmatprep.subr.mxu1 %v12313_v60  ;;  %vm3659_vm8 = vcmp.eq.s32.totalorder %v9718_v20, %v7053_v54  ;;  %vm3660_vm10 = vcmp.eq.s32.totalorder %v9727_v21, %v7053_v54 }
 0x810   :  { %9297 = vmatprep.subr.bf16.mxu0 %v9580_v22  ;;  %vm9316_vm5 = vmpackc.low %vm3660_vm10, %vm3659_vm8  ;;  %vm3669_vm10 = vcmp.eq.s32.totalorder %v12386_v40, %v7053_v54 }
 0x813   :  { %9299 = vmatpush3.bf16.msk.msra.mxu0 %vm9298_vm13, %v12301_v59  ;;  %vm3415_vm13 = vcmp.eq.s32.totalorder %v12390_v0, %v7033_v31 }
 0x814   :  { %9300 = vmatprep.subr.bf16.mxu0 %v9580_v22 }
 0x817   :  { %9302 = vmatpush3.bf16.msk.msra.mxu0 %vm9301_vm1, %v12301_v59  ;;  %vm9310_vm1 = vmpackc.low %vm3416_vm14, %vm3415_vm13  ;;  %vm3663_vm13 = vcmp.eq.s32.totalorder %v9821_v36, %v7053_v54  ;;  %vm3664_vm14 = vcmp.eq.s32.totalorder %v9827_v37, %v7053_v54 }
 0x818   :  { %9303 = vmatprep.subr.bf16.mxu0 %v9580_v22  ;;  %vm9322_vm15 = vmpackc.low %vm3664_vm14, %vm3663_vm13  ;;  %vm3840_vm14 = vcmp.eq.s32.totalorder %v9658_v6, %v7072_v63 }
 0x81b   :  { %9305 = vmatpush3.bf16.msk.msra.mxu0 %vm9304_vm4, %v12301_v59  ;;  %vm3658_vm4 = vcmp.eq.s32.totalorder %v9680_v12, %v7053_v54 }
 0x81c   :  { %9306 = vmatprep.subr.bf16.mxu0 %v9580_v22  ;;  %vm9313_vm7 = vmpackc.low %vm3658_vm4, %vm3657_vm3  ;;  %vm3667_vm4 = vcmp.eq.s32.totalorder %v12382_v24, %v7053_v54 }
 0x81f   :  { %9308 = vmatpush3.bf16.msk.msra.mxu0 %vm9307_vm11, %v12301_v59  ;;  %vm3661_vm11 = vcmp.eq.s32.totalorder %v9771_v28, %v7053_v54 }
 0x820   :  { %9309 = vmatprep.subr.bf16.mxu0 %v9580_v22  ;;  %vm9319_vm12 = vmpackc.low %vm3662_vm9, %vm3661_vm11  ;;  %vm3671_vm9 = vcmp.eq.s32.totalorder %v12390_v0, %v7053_v54 }
 0x823   :  { %9311 = vmatpush3.bf16.msk.msra.mxu0 %vm9310_vm1, %v12301_v59  ;;  %vm3665_vm1 = vcmp.eq.s32.totalorder %v12378_v8, %v7053_v54 }
 0x824   :  { %8259 = vmatprep.subr.mxu0 %v12313_v60 }
 0x8d9   :  { %v3273_v43 = vpop.f32.mrb[26].mxu0 }
 0x8da   :  { %v3277_v46 = vadd.f32 %v3273_v43, %v11585_v27  ;;  %v8183_v47 = vpop.f32.mrb[27].mxu0 }
 0x8db   :  { %v7148_v47 = vld [vmem:[%s12193_s6 + $0x7] ss:$0 sm:$0xff] }
 0x8dc   :  { %v3284_v50 = vadd.f32 %v3282_v48, %v3277_v46  ;;  %v7146_v48 = vld [vmem:[%s12191_s4 + $0x30] sm:$0xff] }
 0x8de   :  { %vm3285_vm2 = vcmp.ge.f32.partialorder %v3284_v50, 0.0  ;;  %v3286_v51 = vmul.f32 0.2, %v3284_v50 }
 0x8e0   :  { %v11643_v53 = vsel %vm3285_vm2, %v3284_v50, %v3286_v51  ;;  %vm3666_vm2 = vcmp.eq.s32.totalorder %v12379_v9, %v7053_v54 }
 0x8e1   :  { %8217 = vmatmul.mubr.f32.vlgmr.msra.gmra.mrb[26].mxu1 %v11643_v53  ;;  %8252 = vmatmul.mubr.f32.vlgmr.msra.gmra.mrb[28].mxu0 %v11643_v53  ;;  %vm9325_vm3 = vmpackc.low %vm3666_vm2, %vm3665_vm1  ;;  %vm3842_vm2 = vcmp.eq.s32.totalorder %v9718_v20, %v7072_v63 }
 0x8e2   :  { %8256 = vmatprep.mubr.msk.f32.mxu1 %vm9578_vm0, %v12313_v60  ;;  %8261 = vmatprep.mubr.msk.f32.mxu0 %vm9578_vm0, %v12313_v60 }
 0x9b4   :  { %v3391_v52 = vpop.f32.mrb[26].mxu1  ;;  %v3499_v57 = vpop.f32.mrb[28].mxu0 }
 0x9b5   :  { %v8218_v2 = vpop.f32.mrb[27].mxu1  ;;  %v8253_v1 = vpop.f32.mrb[29].mxu0  ;;  %8255 = vmatpush3.msra.mxu1 %v3499_v57  ;;  %8260 = vmatpush3.msra.mxu0 %v3391_v52  ;;  %v7167_v57 = vld [vmem:[%s12193_s6 + $0x8] ss:$0 sm:$0xff] }
 0x9b6   :  { %8257 = vmatmul.mubr.msk.f32.vlgmr.msra.gmra.mrb[28].mxu1 %vm3505_vm6, %v7050_v7  ;;  %9312 = vmatprep.subr.bf16.mxu1 %v9580_v22 }
 0x9b7   :  { %8262 = vmatmul.mubr.msk.f32.vlgmr.msra.gmra.mrb[30].mxu0 %vm3505_vm6, %v3395_v61  ;;  %9314 = vmatpush3.bf16.msk.msra.mxu1 %vm9313_vm7, %v12301_v59  ;;  %vm3668_vm7 = vcmp.eq.s32.totalorder %v12383_v25, %v7053_v54  ;;  %v7165_v61 = vld [vmem:[%s12191_s4 + $0x38] sm:$0xff] }
 0x9b8   :  { %9315 = vmatprep.subr.bf16.mxu1 %v9580_v22  ;;  %8296 = vmatprep.mubr.msk.f32.mxu1 %vm9578_vm0, %v12313_v60  ;;  %vm9328_vm8 = vmpackc.low %vm3668_vm7, %vm3667_vm4  ;;  %vm3844_vm7 = vcmp.eq.s32.totalorder %v9771_v28, %v7072_v63 }
 0x9b9   :  { %8299 = vmatprep.subr.mxu0 %v12313_v60  ;;  %8301 = vmatprep.mubr.msk.f32.mxu0 %vm9578_vm0, %v12313_v60 }
 0x9bb   :  { %9317 = vmatpush3.bf16.msk.msra.mxu1 %vm9316_vm5, %v12301_v59  ;;  %vm3670_vm5 = vcmp.eq.s32.totalorder %v12387_v55, %v7053_v54 }
 0x9bc   :  { %9318 = vmatprep.subr.bf16.mxu1 %v9580_v22  ;;  %vm9331_vm11 = vmpackc.low %vm3670_vm5, %vm3669_vm10  ;;  %vm3846_vm5 = vcmp.eq.s32.totalorder %v9821_v36, %v7072_v63 }
 0x9bf   :  { %9320 = vmatpush3.bf16.msk.msra.mxu1 %vm9319_vm12, %v12301_v59  ;;  %vm3672_vm12 = vcmp.eq.s32.totalorder %v12391_v49, %v7053_v54 }
 0x9c0   :  { %9321 = vmatprep.subr.bf16.mxu1 %v9580_v22  ;;  %vm9334_vm13 = vmpackc.low %vm3672_vm12, %vm3671_vm9  ;;  %vm3848_vm12 = vcmp.eq.s32.totalorder %v12378_v8, %v7072_v63 }
 0x9c3   :  { %9323 = vmatpush3.bf16.msk.msra.mxu1 %vm9322_vm15, %v12301_v59  ;;  %vm3841_vm15 = vcmp.eq.s32.totalorder %v9680_v12, %v7072_v63 }
 0x9c4   :  { %9324 = vmatprep.subr.bf16.mxu1 %v9580_v22  ;;  %vm9337_vm1 = vmpackc.low %vm3841_vm15, %vm3840_vm14  ;;  %vm3850_vm15 = vcmp.eq.s32.totalorder %v12382_v24, %v7072_v63 }
 0x9c7   :  { %9326 = vmatpush3.bf16.msk.msra.mxu1 %vm9325_vm3, %v12301_v59  ;;  %vm3843_vm3 = vcmp.eq.s32.totalorder %v9727_v21, %v7072_v63 }
 0x9c8   :  { %9327 = vmatprep.subr.bf16.mxu1 %v9580_v22  ;;  %vm9340_vm4 = vmpackc.low %vm3843_vm3, %vm3842_vm2  ;;  %vm3852_vm3 = vcmp.eq.s32.totalorder %v12386_v40, %v7072_v63 }
 0x9cb   :  { %9329 = vmatpush3.bf16.msk.msra.mxu1 %vm9328_vm8, %v12301_v59  ;;  %vm3845_vm8 = vcmp.eq.s32.totalorder %v9777_v29, %v7072_v63 }
 0x9cc   :  { %9330 = vmatprep.subr.bf16.mxu1 %v9580_v22  ;;  %vm9343_vm10 = vmpackc.low %vm3845_vm8, %vm3844_vm7  ;;  %vm3854_vm8 = vcmp.eq.s32.totalorder %v12390_v0, %v7072_v63 }
 0x9cf   :  { %9332 = vmatpush3.bf16.msk.msra.mxu1 %vm9331_vm11, %v12301_v59  ;;  %vm3847_vm11 = vcmp.eq.s32.totalorder %v9827_v37, %v7072_v63 }
 0x9d0   :  { %9333 = vmatprep.subr.bf16.mxu1 %v9580_v22  ;;  %vm9346_vm9 = vmpackc.low %vm3847_vm11, %vm3846_vm5  ;;  %vm4023_vm11 = vcmp.eq.s32.totalorder %v9658_v6, %v7091_v33 }
 0x9d3   :  { %9335 = vmatpush3.bf16.msk.msra.mxu1 %vm9334_vm13, %v12301_v59  ;;  %vm3849_vm13 = vcmp.eq.s32.totalorder %v12379_v9, %v7072_v63 }
 0x9d4   :  { %8339 = vmatprep.subr.mxu1 %v12313_v60  ;;  %vm9349_vm14 = vmpackc.low %vm3849_vm13, %vm3848_vm12  ;;  %vm4025_vm13 = vcmp.eq.s32.totalorder %v9718_v20, %v7091_v33 }
 0x9d6   :  { %8297 = vmatmul.mubr.f32.vlgmr.msra.gmra.mrb[30].mxu1 %v11643_v53 }
 0x9d7   :  { %8341 = vmatprep.mubr.msk.f32.mxu1 %vm9578_vm0, %v12313_v60 }
 0xa89   :  { %v3575_v44 = vpop.f32.mrb[28].mxu1 }
 0xa8a   :  { %v8258_v58 = vpop.f32.mrb[29].mxu1  ;;  %v3648_v4 = vpop.f32.mrb[30].mxu0 }
 0xa8b   :  { %v3649_v62 = vadd.f32 %v3648_v4, %v3575_v44  ;;  %v8263_v56 = vpop.f32.mrb[31].mxu0  ;;  %v7201_v4 = vld [vmem:[%s12196_s9 + $0x2] ss:$0 sm:$0xff] }
 0xaa9   :  { %v3755_v3 = vpop.f32.mrb[30].mxu1 }
 0xaaa   :  { %v8298_v41 = vpop.f32.mrb[31].mxu1  ;;  %8300 = vmatpush3.msra.mxu0 %v3755_v3 }
 0xaab   :  { %8302 = vmatmul.mubr.msk.f32.vlgmr.msra.gmra.mrb[32].mxu0 %vm3505_vm6, %v7070_v45  ;;  %9336 = vmatprep.subr.bf16.mxu0 %v9580_v22  ;;  %v5027_v45 = vld [vmem:[%s12194_s7] sm:$0x1] }
 0xaac   :  { %9338 = vmatpush3.bf16.msk.msra.mxu0 %vm9337_vm1, %v12301_v59  ;;  %8336 = vmatprep.mubr.msk.f32.mxu0 %vm9578_vm0, %v12313_v60  ;;  %vm3851_vm1 = vcmp.eq.s32.totalorder %v12383_v25, %v7072_v63 }
 0xaad   :  { %9339 = vmatprep.subr.bf16.mxu0 %v9580_v22  ;;  %vm9352_vm2 = vmpackc.low %vm3851_vm1, %vm3850_vm15  ;;  %vm4027_vm1 = vcmp.eq.s32.totalorder %v9771_v28, %v7091_v33 }
 0xab0   :  { %9341 = vmatpush3.bf16.msk.msra.mxu0 %vm9340_vm4, %v12301_v59  ;;  %vm3853_vm4 = vcmp.eq.s32.totalorder %v12387_v55, %v7072_v63 }
 0xab1   :  { %9342 = vmatprep.subr.bf16.mxu0 %v9580_v22  ;;  %vm9355_vm7 = vmpackc.low %vm3853_vm4, %vm3852_vm3  ;;  %vm4029_vm4 = vcmp.eq.s32.totalorder %v9821_v36, %v7091_v33 }
 0xab4   :  { %9344 = vmatpush3.bf16.msk.msra.mxu0 %vm9343_vm10, %v12301_v59  ;;  %vm3855_vm10 = vcmp.eq.s32.totalorder %v12391_v49, %v7072_v63 }
 0xab5   :  { %9345 = vmatprep.subr.bf16.mxu0 %v9580_v22  ;;  %vm9358_vm5 = vmpackc.low %vm3855_vm10, %vm3854_vm8  ;;  %vm4031_vm10 = vcmp.eq.s32.totalorder %v12378_v8, %v7091_v33 }
 0xab8   :  { %9347 = vmatpush3.bf16.msk.msra.mxu0 %vm9346_vm9, %v12301_v59  ;;  %vm4024_vm9 = vcmp.eq.s32.totalorder %v9680_v12, %v7091_v33 }
 0xab9   :  { %9348 = vmatprep.subr.bf16.mxu0 %v9580_v22  ;;  %vm9361_vm12 = vmpackc.low %vm4024_vm9, %vm4023_vm11  ;;  %vm4033_vm9 = vcmp.eq.s32.totalorder %v12382_v24, %v7091_v33 }
 0xabc   :  { %9350 = vmatpush3.bf16.msk.msra.mxu0 %vm9349_vm14, %v12301_v59  ;;  %vm4026_vm14 = vcmp.eq.s32.totalorder %v9727_v21, %v7091_v33 }
 0xabd   :  { %9351 = vmatprep.subr.bf16.mxu0 %v9580_v22  ;;  %vm9364_vm15 = vmpackc.low %vm4026_vm14, %vm4025_vm13  ;;  %vm4035_vm14 = vcmp.eq.s32.totalorder %v12386_v40, %v7091_v33 }
 0xac0   :  { %9353 = vmatpush3.bf16.msk.msra.mxu0 %vm9352_vm2, %v12301_v59  ;;  %vm4028_vm2 = vcmp.eq.s32.totalorder %v9777_v29, %v7091_v33 }
 0xac1   :  { %9354 = vmatprep.subr.bf16.mxu0 %v9580_v22  ;;  %vm9367_vm3 = vmpackc.low %vm4028_vm2, %vm4027_vm1  ;;  %vm4037_vm2 = vcmp.eq.s32.totalorder %v12390_v0, %v7091_v33 }
 0xac4   :  { %9356 = vmatpush3.bf16.msk.msra.mxu0 %vm9355_vm7, %v12301_v59  ;;  %vm4030_vm7 = vcmp.eq.s32.totalorder %v9827_v37, %v7091_v33 }
 0xac5   :  { %9357 = vmatprep.subr.bf16.mxu0 %v9580_v22  ;;  %vm9370_vm8 = vmpackc.low %vm4030_vm7, %vm4029_vm4  ;;  %vm4206_vm7 = vcmp.eq.s32.totalorder %v9658_v6, %v7110_v18 }
 0xac8   :  { %9359 = vmatpush3.bf16.msk.msra.mxu0 %vm9358_vm5, %v12301_v59  ;;  %vm4032_vm5 = vcmp.eq.s32.totalorder %v12379_v9, %v7091_v33 }
 0xac9   :  { %8379 = vmatprep.subr.mxu0 %v12313_v60  ;;  %vm9373_vm11 = vmpackc.low %vm4032_vm5, %vm4031_vm10  ;;  %vm4208_vm5 = vcmp.eq.s32.totalorder %v9718_v20, %v7110_v18 }
 0xacb   :  { %8337 = vmatmul.mubr.f32.vlgmr.msra.gmra.mrb[34].mxu0 %v11643_v53 }
 0xacc   :  { %8381 = vmatprep.mubr.msk.f32.mxu0 %vm9578_vm0, %v12313_v60 }
 0xb7e   :  { %v3830_v15 = vpop.f32.mrb[32].mxu0 }
 0xb7f   :  { %v3834_v17 = vadd.f32 %v3830_v15, %v3649_v62  ;;  %v8303_v32 = vpop.f32.mrb[33].mxu0  ;;  %v7198_v62 = vld [vmem:[%s12194_s7 + $0x1] sm:$0x1] }
 0xb9e   :  { %v3938_v10 = vpop.f32.mrb[34].mxu0 }
 0xb9f   :  { %v8338_v5 = vpop.f32.mrb[35].mxu0  ;;  %8340 = vmatpush3.msra.mxu1 %v3938_v10 }
 0xba0   :  { %8342 = vmatmul.mubr.msk.f32.vlgmr.msra.gmra.mrb[32].mxu1 %vm3505_vm6, %v7089_v16  ;;  %9360 = vmatprep.subr.bf16.mxu1 %v9580_v22  ;;  %v7207_v16 = vld [vmem:[%s12194_s7 + $0x2] sm:$0x1] }
 0xba1   :  { %9362 = vmatpush3.bf16.msk.msra.mxu1 %vm9361_vm12, %v12301_v59  ;;  %8376 = vmatprep.mubr.msk.f32.mxu1 %vm9578_vm0, %v12313_v60  ;;  %vm4034_vm12 = vcmp.eq.s32.totalorder %v12383_v25, %v7091_v33 }
 0xba2   :  { %9363 = vmatprep.subr.bf16.mxu1 %v9580_v22  ;;  %vm9376_vm13 = vmpackc.low %vm4034_vm12, %vm4033_vm9  ;;  %vm4210_vm12 = vcmp.eq.s32.totalorder %v9771_v28, %v7110_v18 }
 0xba5   :  { %9365 = vmatpush3.bf16.msk.msra.mxu1 %vm9364_vm15, %v12301_v59  ;;  %vm4036_vm15 = vcmp.eq.s32.totalorder %v12387_v55, %v7091_v33 }
 0xba6   :  { %9366 = vmatprep.subr.bf16.mxu1 %v9580_v22  ;;  %vm9379_vm1 = vmpackc.low %vm4036_vm15, %vm4035_vm14  ;;  %vm4212_vm15 = vcmp.eq.s32.totalorder %v9821_v36, %v7110_v18 }
 0xba9   :  { %9368 = vmatpush3.bf16.msk.msra.mxu1 %vm9367_vm3, %v12301_v59  ;;  %vm4038_vm3 = vcmp.eq.s32.totalorder %v12391_v49, %v7091_v33  ;;  %v7209_v33 = vld [vmem:[%s12196_s9 + $0x3] ss:$0 sm:$0xff] }
 0xbaa   :  { %9369 = vmatprep.subr.bf16.mxu1 %v9580_v22  ;;  %vm9382_vm4 = vmpackc.low %vm4038_vm3, %vm4037_vm2  ;;  %vm4214_vm3 = vcmp.eq.s32.totalorder %v12378_v8, %v7110_v18 }
 0xbad   :  { %9371 = vmatpush3.bf16.msk.msra.mxu1 %vm9370_vm8, %v12301_v59  ;;  %vm4207_vm8 = vcmp.eq.s32.totalorder %v9680_v12, %v7110_v18 }
 0xbae   :  { %9372 = vmatprep.subr.bf16.mxu1 %v9580_v22  ;;  %vm9385_vm10 = vmpackc.low %vm4207_vm8, %vm4206_vm7  ;;  %vm4216_vm8 = vcmp.eq.s32.totalorder %v12382_v24, %v7110_v18 }
 0xbb1   :  { %9374 = vmatpush3.bf16.msk.msra.mxu1 %vm9373_vm11, %v12301_v59  ;;  %vm4209_vm11 = vcmp.eq.s32.totalorder %v9727_v21, %v7110_v18 }
 0xbb2   :  { %9375 = vmatprep.subr.bf16.mxu1 %v9580_v22  ;;  %vm9388_vm9 = vmpackc.low %vm4209_vm11, %vm4208_vm5  ;;  %vm4218_vm11 = vcmp.eq.s32.totalorder %v12386_v40, %v7110_v18 }
 0xbb5   :  { %9377 = vmatpush3.bf16.msk.msra.mxu1 %vm9376_vm13, %v12301_v59  ;;  %vm4211_vm13 = vcmp.eq.s32.totalorder %v9777_v29, %v7110_v18 }
 0xbb6   :  { %9378 = vmatprep.subr.bf16.mxu1 %v9580_v22  ;;  %vm9391_vm14 = vmpackc.low %vm4211_vm13, %vm4210_vm12  ;;  %vm4220_vm13 = vcmp.eq.s32.totalorder %v12390_v0, %v7110_v18 }
 0xbb9   :  { %9380 = vmatpush3.bf16.msk.msra.mxu1 %vm9379_vm1, %v12301_v59  ;;  %vm4213_vm1 = vcmp.eq.s32.totalorder %v9827_v37, %v7110_v18 }
 0xbba   :  { %9381 = vmatprep.subr.bf16.mxu1 %v9580_v22  ;;  %vm9394_vm2 = vmpackc.low %vm4213_vm1, %vm4212_vm15  ;;  %vm4389_vm1 = vcmp.eq.s32.totalorder %v9658_v6, %v7129_v34 }
 0xbbd   :  { %9383 = vmatpush3.bf16.msk.msra.mxu1 %vm9382_vm4, %v12301_v59  ;;  %vm4215_vm4 = vcmp.eq.s32.totalorder %v12379_v9, %v7110_v18 }
 0xbbe   :  { %8419 = vmatprep.subr.mxu1 %v12313_v60  ;;  %vm9397_vm7 = vmpackc.low %vm4215_vm4, %vm4214_vm3  ;;  %vm4391_vm4 = vcmp.eq.s32.totalorder %v9718_v20, %v7129_v34 }
 0xbc0   :  { %8377 = vmatmul.mubr.f32.vlgmr.msra.gmra.mrb[34].mxu1 %v11643_v53 }
 0xbc1   :  { %8421 = vmatprep.mubr.msk.f32.mxu1 %vm9578_vm0, %v12313_v60 }
 0xc73   :  { %v4013_v11 = vpop.f32.mrb[32].mxu1 }
 0xc74   :  { %v4017_v13 = vadd.f32 %v4013_v11, %v3834_v17  ;;  %v8343_v14 = vpop.f32.mrb[33].mxu1 }
 0xc93   :  { %v4121_v23 = vpop.f32.mrb[34].mxu1 }
 0xc94   :  { %v8378_v26 = vpop.f32.mrb[35].mxu1  ;;  %8380 = vmatpush3.msra.mxu0 %v4121_v23 }
 0xc95   :  { %8382 = vmatmul.mubr.msk.f32.vlgmr.msra.gmra.mrb[36].mxu0 %vm3505_vm6, %v7108_v19  ;;  %9384 = vmatprep.subr.bf16.mxu0 %v9580_v22  ;;  %v7215_v19 = vld [vmem:[%s12194_s7 + $0x3] sm:$0x1] }
 0xc96   :  { %9386 = vmatpush3.bf16.msk.msra.mxu0 %vm9385_vm10, %v12301_v59  ;;  %8416 = vmatprep.mubr.msk.f32.mxu0 %vm9578_vm0, %v12313_v60  ;;  %vm4217_vm10 = vcmp.eq.s32.totalorder %v12383_v25, %v7110_v18 }
 0xc97   :  { %9387 = vmatprep.subr.bf16.mxu0 %v9580_v22  ;;  %vm9400_vm5 = vmpackc.low %vm4217_vm10, %vm4216_vm8  ;;  %vm4393_vm10 = vcmp.eq.s32.totalorder %v9771_v28, %v7129_v34 }
 0xc9a   :  { %9389 = vmatpush3.bf16.msk.msra.mxu0 %vm9388_vm9, %v12301_v59  ;;  %vm4219_vm9 = vcmp.eq.s32.totalorder %v12387_v55, %v7110_v18 }
 0xc9b   :  { %9390 = vmatprep.subr.bf16.mxu0 %v9580_v22  ;;  %vm9403_vm12 = vmpackc.low %vm4219_vm9, %vm4218_vm11  ;;  %vm4395_vm9 = vcmp.eq.s32.totalorder %v9821_v36, %v7129_v34 }
 0xc9e   :  { %9392 = vmatpush3.bf16.msk.msra.mxu0 %vm9391_vm14, %v12301_v59  ;;  %vm4221_vm14 = vcmp.eq.s32.totalorder %v12391_v49, %v7110_v18  ;;  %v7217_v18 = vld [vmem:[%s12196_s9 + $0x4] ss:$0 sm:$0xff] }
 0xc9f   :  { %9393 = vmatprep.subr.bf16.mxu0 %v9580_v22  ;;  %vm9406_vm15 = vmpackc.low %vm4221_vm14, %vm4220_vm13  ;;  %vm4397_vm14 = vcmp.eq.s32.totalorder %v12378_v8, %v7129_v34 }
 0xca2   :  { %9395 = vmatpush3.bf16.msk.msra.mxu0 %vm9394_vm2, %v12301_v59  ;;  %vm4390_vm2 = vcmp.eq.s32.totalorder %v9680_v12, %v7129_v34 }
 0xca3   :  { %9396 = vmatprep.subr.bf16.mxu0 %v9580_v22  ;;  %vm9409_vm3 = vmpackc.low %vm4390_vm2, %vm4389_vm1  ;;  %vm4399_vm2 = vcmp.eq.s32.totalorder %v12382_v24, %v7129_v34 }
 0xca6   :  { %9398 = vmatpush3.bf16.msk.msra.mxu0 %vm9397_vm7, %v12301_v59  ;;  %vm4392_vm7 = vcmp.eq.s32.totalorder %v9727_v21, %v7129_v34 }
 0xca7   :  { %9399 = vmatprep.subr.bf16.mxu0 %v9580_v22  ;;  %vm9412_vm8 = vmpackc.low %vm4392_vm7, %vm4391_vm4  ;;  %vm4401_vm7 = vcmp.eq.s32.totalorder %v12386_v40, %v7129_v34 }
 0xcaa   :  { %9401 = vmatpush3.bf16.msk.msra.mxu0 %vm9400_vm5, %v12301_v59  ;;  %vm4394_vm5 = vcmp.eq.s32.totalorder %v9777_v29, %v7129_v34 }
 0xcab   :  { %9402 = vmatprep.subr.bf16.mxu0 %v9580_v22  ;;  %vm9415_vm11 = vmpackc.low %vm4394_vm5, %vm4393_vm10  ;;  %vm4403_vm5 = vcmp.eq.s32.totalorder %v12390_v0, %v7129_v34 }
 0xcae   :  { %9404 = vmatpush3.bf16.msk.msra.mxu0 %vm9403_vm12, %v12301_v59  ;;  %vm4396_vm12 = vcmp.eq.s32.totalorder %v9827_v37, %v7129_v34 }
 0xcaf   :  { %9405 = vmatprep.subr.bf16.mxu0 %v9580_v22  ;;  %vm9418_vm13 = vmpackc.low %vm4396_vm12, %vm4395_vm9  ;;  %vm4572_vm12 = vcmp.eq.s32.totalorder %v9658_v6, %v7148_v47 }
 0xcb2   :  { %9407 = vmatpush3.bf16.msk.msra.mxu0 %vm9406_vm15, %v12301_v59  ;;  %vm4398_vm15 = vcmp.eq.s32.totalorder %v12379_v9, %v7129_v34 }
 0xcb3   :  { %8459 = vmatprep.subr.mxu0 %v12313_v60  ;;  %vm9421_vm1 = vmpackc.low %vm4398_vm15, %vm4397_vm14  ;;  %vm4574_vm15 = vcmp.eq.s32.totalorder %v9718_v20, %v7148_v47 }
 0xcb5   :  { %8417 = vmatmul.mubr.f32.vlgmr.msra.gmra.mrb[38].mxu0 %v11643_v53 }
 0xcb6   :  { %8461 = vmatprep.mubr.msk.f32.mxu0 %vm9578_vm0, %v12313_v60 }
 0xd68   :  { %v4196_v27 = vpop.f32.mrb[36].mxu0 }
 0xd69   :  { %v4200_v30 = vadd.f32 %v4196_v27, %v4017_v13  ;;  %v8383_v31 = vpop.f32.mrb[37].mxu0 }
 0xd88   :  { %v4304_v38 = vpop.f32.mrb[38].mxu0 }
 0xd89   :  { %v8418_v39 = vpop.f32.mrb[39].mxu0  ;;  %8420 = vmatpush3.msra.mxu1 %v4304_v38 }
 0xd8a   :  { %8422 = vmatmul.mubr.msk.f32.vlgmr.msra.gmra.mrb[36].mxu1 %vm3505_vm6, %v7127_v35  ;;  %9408 = vmatprep.subr.bf16.mxu1 %v9580_v22  ;;  %v7223_v35 = vld [vmem:[%s12194_s7 + $0x4] sm:$0x1] }
 0xd8b   :  { %9410 = vmatpush3.bf16.msk.msra.mxu1 %vm9409_vm3, %v12301_v59  ;;  %8456 = vmatprep.mubr.msk.f32.mxu1 %vm9578_vm0, %v12313_v60  ;;  %vm4400_vm3 = vcmp.eq.s32.totalorder %v12383_v25, %v7129_v34 }
 0xd8c   :  { %9411 = vmatprep.subr.bf16.mxu1 %v9580_v22  ;;  %vm9424_vm4 = vmpackc.low %vm4400_vm3, %vm4399_vm2  ;;  %vm4576_vm3 = vcmp.eq.s32.totalorder %v9771_v28, %v7148_v47 }
 0xd8f   :  { %9413 = vmatpush3.bf16.msk.msra.mxu1 %vm9412_vm8, %v12301_v59  ;;  %vm4402_vm8 = vcmp.eq.s32.totalorder %v12387_v55, %v7129_v34 }
 0xd90   :  { %9414 = vmatprep.subr.bf16.mxu1 %v9580_v22  ;;  %vm9427_vm10 = vmpackc.low %vm4402_vm8, %vm4401_vm7  ;;  %vm4578_vm8 = vcmp.eq.s32.totalorder %v9821_v36, %v7148_v47 }
 0xd93   :  { %9416 = vmatpush3.bf16.msk.msra.mxu1 %vm9415_vm11, %v12301_v59  ;;  %vm4404_vm11 = vcmp.eq.s32.totalorder %v12391_v49, %v7129_v34  ;;  %v7225_v34 = vld [vmem:[%s12196_s9 + $0x5] ss:$0 sm:$0xff] }
 0xd94   :  { %9417 = vmatprep.subr.bf16.mxu1 %v9580_v22  ;;  %vm9430_vm9 = vmpackc.low %vm4404_vm11, %vm4403_vm5  ;;  %vm4580_vm11 = vcmp.eq.s32.totalorder %v12378_v8, %v7148_v47 }
 0xd97   :  { %9419 = vmatpush3.bf16.msk.msra.mxu1 %vm9418_vm13, %v12301_v59  ;;  %vm4573_vm13 = vcmp.eq.s32.totalorder %v9680_v12, %v7148_v47 }
 0xd98   :  { %9420 = vmatprep.subr.bf16.mxu1 %v9580_v22  ;;  %vm9433_vm14 = vmpackc.low %vm4573_vm13, %vm4572_vm12  ;;  %vm4582_vm13 = vcmp.eq.s32.totalorder %v12382_v24, %v7148_v47 }
 0xd9b   :  { %9422 = vmatpush3.bf16.msk.msra.mxu1 %vm9421_vm1, %v12301_v59  ;;  %vm4575_vm1 = vcmp.eq.s32.totalorder %v9727_v21, %v7148_v47 }
 0xd9c   :  { %9423 = vmatprep.subr.bf16.mxu1 %v9580_v22  ;;  %vm9436_vm2 = vmpackc.low %vm4575_vm1, %vm4574_vm15  ;;  %vm4584_vm1 = vcmp.eq.s32.totalorder %v12386_v40, %v7148_v47 }
 0xd9f   :  { %9425 = vmatpush3.bf16.msk.msra.mxu1 %vm9424_vm4, %v12301_v59  ;;  %vm4577_vm4 = vcmp.eq.s32.totalorder %v9777_v29, %v7148_v47 }
 0xda0   :  { %9426 = vmatprep.subr.bf16.mxu1 %v9580_v22  ;;  %vm9439_vm7 = vmpackc.low %vm4577_vm4, %vm4576_vm3  ;;  %vm4586_vm4 = vcmp.eq.s32.totalorder %v12390_v0, %v7148_v47 }
 0xda3   :  { %9428 = vmatpush3.bf16.msk.msra.mxu1 %vm9427_vm10, %v12301_v59  ;;  %vm4579_vm10 = vcmp.eq.s32.totalorder %v9827_v37, %v7148_v47 }
 0xda4   :  { %9429 = vmatprep.subr.bf16.mxu1 %v9580_v22  ;;  %vm9442_vm5 = vmpackc.low %vm4579_vm10, %vm4578_vm8  ;;  %vm4755_vm10 = vcmp.eq.s32.totalorder %v9658_v6, %v7167_v57 }
 0xda7   :  { %9431 = vmatpush3.bf16.msk.msra.mxu1 %vm9430_vm9, %v12301_v59  ;;  %vm4581_vm9 = vcmp.eq.s32.totalorder %v12379_v9, %v7148_v47 }
 0xda8   :  { %8499 = vmatprep.subr.mxu1 %v12313_v60  ;;  %vm9445_vm12 = vmpackc.low %vm4581_vm9, %vm4580_vm11  ;;  %vm4757_vm9 = vcmp.eq.s32.totalorder %v9718_v20, %v7167_v57 }
 0xdaa   :  { %8457 = vmatmul.mubr.f32.vlgmr.msra.gmra.mrb[38].mxu1 %v11643_v53 }
 0xdab   :  { %8501 = vmatprep.mubr.msk.f32.mxu1 %vm9578_vm0, %v12313_v60 }
 0xe5d   :  { %v4379_v42 = vpop.f32.mrb[36].mxu1 }
 0xe5e   :  { %v4383_v43 = vadd.f32 %v4379_v42, %v4200_v30  ;;  %v8423_v46 = vpop.f32.mrb[37].mxu1 }
 0xe7d   :  { %v4487_v50 = vpop.f32.mrb[38].mxu1 }
 0xe7e   :  { %v8458_v51 = vpop.f32.mrb[39].mxu1  ;;  %8460 = vmatpush3.msra.mxu0 %v4487_v50 }
 0xe7f   :  { %8462 = vmatmul.mubr.msk.f32.vlgmr.msra.gmra.mrb[40].mxu0 %vm3505_vm6, %v7146_v48  ;;  %9432 = vmatprep.subr.bf16.mxu0 %v9580_v22  ;;  %v7231_v48 = vld [vmem:[%s12194_s7 + $0x5] sm:$0x1] }
 0xe80   :  { %9434 = vmatpush3.bf16.msk.msra.mxu0 %vm9433_vm14, %v12301_v59  ;;  %8496 = vmatprep.mubr.msk.f32.mxu0 %vm9578_vm0, %v12313_v60  ;;  %vm4583_vm14 = vcmp.eq.s32.totalorder %v12383_v25, %v7148_v47 }
 0xe81   :  { %9435 = vmatprep.subr.bf16.mxu0 %v9580_v22  ;;  %vm9448_vm15 = vmpackc.low %vm4583_vm14, %vm4582_vm13  ;;  %vm4759_vm14 = vcmp.eq.s32.totalorder %v9771_v28, %v7167_v57 }
 0xe84   :  { %9437 = vmatpush3.bf16.msk.msra.mxu0 %vm9436_vm2, %v12301_v59  ;;  %vm4585_vm2 = vcmp.eq.s32.totalorder %v12387_v55, %v7148_v47 }
 0xe85   :  { %9438 = vmatprep.subr.bf16.mxu0 %v9580_v22  ;;  %vm9451_vm3 = vmpackc.low %vm4585_vm2, %vm4584_vm1  ;;  %vm4761_vm2 = vcmp.eq.s32.totalorder %v9821_v36, %v7167_v57 }
 0xe88   :  { %9440 = vmatpush3.bf16.msk.msra.mxu0 %vm9439_vm7, %v12301_v59  ;;  %vm4587_vm7 = vcmp.eq.s32.totalorder %v12391_v49, %v7148_v47  ;;  %v7233_v47 = vld [vmem:[%s12196_s9 + $0x6] ss:$0 sm:$0xff] }
 0xe89   :  { %9441 = vmatprep.subr.bf16.mxu0 %v9580_v22  ;;  %vm9454_vm8 = vmpackc.low %vm4587_vm7, %vm4586_vm4  ;;  %vm4763_vm7 = vcmp.eq.s32.totalorder %v12378_v8, %v7167_v57  ;;  %v7184_v8 = vld [vmem:[%s12191_s4 + $0x40] sm:$0xff] }
 0xe8c   :  { %9443 = vmatpush3.bf16.msk.msra.mxu0 %vm9442_vm5, %v12301_v59  ;;  %vm4756_vm5 = vcmp.eq.s32.totalorder %v9680_v12, %v7167_v57 }
 0xe8d   :  { %9444 = vmatprep.subr.bf16.mxu0 %v9580_v22  ;;  %vm9457_vm11 = vmpackc.low %vm4756_vm5, %vm4755_vm10  ;;  %vm4765_vm5 = vcmp.eq.s32.totalorder %v12382_v24, %v7167_v57 }
 0xe90   :  { %9446 = vmatpush3.bf16.msk.msra.mxu0 %vm9445_vm12, %v12301_v59  ;;  %vm4758_vm12 = vcmp.eq.s32.totalorder %v9727_v21, %v7167_v57 }
 0xe91   :  { %9447 = vmatprep.subr.bf16.mxu0 %v9580_v22  ;;  %vm9460_vm13 = vmpackc.low %vm4758_vm12, %vm4757_vm9  ;;  %vm4767_vm12 = vcmp.eq.s32.totalorder %v12386_v40, %v7167_v57 }
 0xe94   :  { %9449 = vmatpush3.bf16.msk.msra.mxu0 %vm9448_vm15, %v12301_v59  ;;  %vm4760_vm15 = vcmp.eq.s32.totalorder %v9777_v29, %v7167_v57 }
 0xe95   :  { %9450 = vmatprep.subr.bf16.mxu0 %v9580_v22  ;;  %vm9463_vm1 = vmpackc.low %vm4760_vm15, %vm4759_vm14  ;;  %vm4769_vm15 = vcmp.eq.s32.totalorder %v12390_v0, %v7167_v57 }
 0xe98   :  { %9452 = vmatpush3.bf16.msk.msra.mxu0 %vm9451_vm3, %v12301_v59  ;;  %vm4762_vm3 = vcmp.eq.s32.totalorder %v9827_v37, %v7167_v57  ;;  %v7186_v37 = vld [vmem:[%s12196_s9] ss:$0 sm:$0xff] }
 0xe99   :  { %9453 = vmatprep.subr.bf16.mxu0 %v9580_v22  ;;  %vm9466_vm4 = vmpackc.low %vm4762_vm3, %vm4761_vm2  ;;  %vm4945_vm3 = vcmp.eq.s32.totalorder %v9658_v6, %v7186_v37 }
 0xe9c   :  { %9455 = vmatpush3.bf16.msk.msra.mxu0 %vm9454_vm8, %v12301_v59  ;;  %vm4764_vm8 = vcmp.eq.s32.totalorder %v12379_v9, %v7167_v57 }
 0xe9d   :  { %8539 = vmatprep.subr.mxu0 %v12313_v60  ;;  %vm9469_vm10 = vmpackc.low %vm4764_vm8, %vm4763_vm7  ;;  %vm4947_vm8 = vcmp.eq.s32.totalorder %v9718_v20, %v7186_v37 }
 0xe9f   :  { %8497 = vmatmul.mubr.f32.vlgmr.msra.gmra.mrb[42].mxu0 %v11643_v53 }
 0xea0   :  { %8541 = vmatprep.mubr.msk.f32.mxu0 %vm9578_vm0, %v12313_v60 }
 0xf52   :  { %v4562_v54 = vpop.f32.mrb[40].mxu0 }
 0xf53   :  { %v4566_v7 = vadd.f32 %v4562_v54, %v4383_v43  ;;  %v8463_v52 = vpop.f32.mrb[41].mxu0 }
 0xf72   :  { %v4670_v2 = vpop.f32.mrb[42].mxu0 }
 0xf73   :  { %v8498_v1 = vpop.f32.mrb[43].mxu0  ;;  %8500 = vmatpush3.msra.mxu1 %v4670_v2 }
 0xf74   :  { %8502 = vmatmul.mubr.msk.f32.vlgmr.msra.gmra.mrb[40].mxu1 %vm3505_vm6, %v7165_v61  ;;  %9456 = vmatprep.subr.bf16.mxu1 %v9580_v22  ;;  %v7239_v61 = vld [vmem:[%s12194_s7 + $0x6] sm:$0x1] }
 0xf75   :  { %9458 = vmatpush3.bf16.msk.msra.mxu1 %vm9457_vm11, %v12301_v59  ;;  %8536 = vmatprep.mubr.msk.f32.mxu1 %vm9578_vm0, %v12313_v60  ;;  %vm4766_vm11 = vcmp.eq.s32.totalorder %v12383_v25, %v7167_v57  ;;  %v7192_v25 = vld [vmem:[%s12196_s9 + $0x1] ss:$0 sm:$0xff] }
 0xf76   :  { %9459 = vmatprep.subr.bf16.mxu1 %v9580_v22  ;;  %vm9472_vm9 = vmpackc.low %vm4766_vm11, %vm4765_vm5  ;;  %vm5033_vm11 = vcmp.eq.s32.totalorder %v9658_v6, %v7192_v25 }
 0xf79   :  { %9461 = vmatpush3.bf16.msk.msra.mxu1 %vm9460_vm13, %v12301_v59  ;;  %vm4768_vm13 = vcmp.eq.s32.totalorder %v12387_v55, %v7167_v57 }
 0xf7a   :  { %9462 = vmatprep.subr.bf16.mxu1 %v9580_v22  ;;  %vm9475_vm14 = vmpackc.low %vm4768_vm13, %vm4767_vm12  ;;  %vm4953_vm12 = vcmask 261120  }
 0xf7d   :  { %9464 = vmatpush3.bf16.msk.msra.mxu1 %vm9463_vm1, %v12301_v59  ;;  %vm4770_vm1 = vcmp.eq.s32.totalorder %v12391_v49, %v7167_v57  ;;  %v4937_v49 = vpop.permute.xlu0 %4936  ;;  %v7241_v57 = vld [vmem:[%s12196_s9 + $0x7] ss:$0 sm:$0xff] }
 0xf7e   :  { %9465 = vmatprep.subr.bf16.mxu1 %v9580_v22  ;;  %vm9478_vm2 = vmpackc.low %vm4770_vm1, %vm4769_vm15  ;;  %vm5036_vm15 = vcmp.eq.s32.totalorder %v9727_v21, %v7192_v25 }
 0xf81   :  { %9467 = vmatpush3.bf16.msk.msra.mxu1 %vm9466_vm4, %v12301_v59  ;;  %vm4946_vm4 = vcmp.eq.s32.totalorder %v9680_v12, %v7186_v37 }
 0xf82   :  { %9468 = vmatprep.subr.bf16.mxu1 %v9580_v22  ;;  %vm9481_vm7 = vmpackc.low %vm4946_vm4, %vm4945_vm3  ;;  %vm5265_vm3 = vcmp.eq.s32.totalorder %v9680_v12, %v7201_v4 }
 0xf85   :  { %9470 = vmatpush3.bf16.msk.msra.mxu1 %vm9469_vm10, %v12301_v59  ;;  %vm4948_vm10 = vcmp.eq.s32.totalorder %v9727_v21, %v7186_v37  ;;  %v7249_v37 = vld [vmem:[%s12196_s9 + $0x8] ss:$0 sm:$0xff] }
 0xf86   :  { %9471 = vmatprep.subr.bf16.mxu1 %v9580_v22  ;;  %vm9484_vm5 = vmpackc.low %vm4948_vm10, %vm4947_vm8  ;;  %vm5267_vm8 = vcmp.eq.s32.totalorder %v9727_v21, %v7201_v4 }
 0xf89   :  { %9473 = vmatpush3.bf16.msk.msra.mxu1 %vm9472_vm9, %v12301_v59  ;;  %vm5034_vm9 = vcmp.eq.s32.totalorder %v9680_v12, %v7192_v25 }
 0xf8a   :  { %9474 = vmatprep.subr.bf16.mxu1 %v9580_v22  ;;  %vm9487_vm13 = vmpackc.low %vm5034_vm9, %vm5033_vm11  ;;  %vm5424_vm11 = vcmp.eq.s32.totalorder %v9680_v12, %v7209_v33 }
 0xf8d   :  { %9476 = vmatpush3.bf16.msk.msra.mxu1 %vm9475_vm14, %v12301_v59  ;;  %vm5035_vm14 = vcmp.eq.s32.totalorder %v9718_v20, %v7192_v25 }
 0xf8e   :  { %9477 = vmatprep.subr.bf16.mxu1 %v9580_v22  ;;  %vm9490_vm1 = vmpackc.low %vm5036_vm15, %vm5035_vm14  ;;  %vm5426_vm14 = vcmp.eq.s32.totalorder %v9727_v21, %v7209_v33 }
 0xf91   :  { %9479 = vmatpush3.bf16.msk.msra.mxu1 %vm9478_vm2, %v12301_v59  ;;  %vm5264_vm2 = vcmp.eq.s32.totalorder %v9658_v6, %v7201_v4 }
 0xf92   :  { %8587 = vmatprep.subr.mxu1 %v12313_v60  ;;  %vm9493_vm4 = vmpackc.low %vm5265_vm3, %vm5264_vm2  ;;  %vm5583_vm2 = vcmp.eq.s32.totalorder %v9680_v12, %v7217_v18 }
 0xf94   :  { %8537 = vmatmul.mubr.f32.vlgmr.msra.gmra.mrb[42].mxu1 %v11643_v53 }
 0xf95   :  { %8589 = vmatprep.mubr.msk.f32.mxu1 %vm9578_vm0, %v12313_v60 }
0x1047   :  { %v4745_v28 = vpop.f32.mrb[40].mxu1 }
0x1048   :  { %v4749_v29 = vadd.f32 %v4745_v28, %v4566_v7  ;;  %v8503_v36 = vpop.f32.mrb[41].mxu1 }
0x1067   :  { %v4853_v9 = vpop.f32.mrb[42].mxu1 }
0x1068   :  { %v8538_v24 = vpop.f32.mrb[43].mxu1  ;;  %8540 = vmatpush3.msra.mxu0 %v4853_v9 }
0x1069   :  { %8542 = vmatmul.mubr.msk.f32.vlgmr.msra.gmra.mrb[44].mxu0 %vm3505_vm6, %v7184_v8  ;;  %9480 = vmatprep.subr.bf16.mxu0 %v9580_v22  ;;  %v7247_v8 = vld [vmem:[%s12194_s7 + $0x7] sm:$0x1] }
0x106a   :  { %9482 = vmatpush3.bf16.msk.msra.mxu0 %vm9481_vm7, %v12301_v59  ;;  %8552 = vmatprep.mubr.msk.f32.mxu0 %vm9578_vm0, %v12313_v60  ;;  %vm5266_vm7 = vcmp.eq.s32.totalorder %v9718_v20, %v7201_v4 }
0x106b   :  { %9483 = vmatprep.subr.bf16.mxu0 %v9580_v22  ;;  %vm9496_vm10 = vmpackc.low %vm5267_vm8, %vm5266_vm7  ;;  %vm5585_vm7 = vcmp.eq.s32.totalorder %v9727_v21, %v7217_v18 }
0x106e   :  { %9485 = vmatpush3.bf16.msk.msra.mxu0 %vm9484_vm5, %v12301_v59  ;;  %vm5423_vm5 = vcmp.eq.s32.totalorder %v9658_v6, %v7209_v33 }
0x106f   :  { %9486 = vmatprep.subr.bf16.mxu0 %v9580_v22  ;;  %vm9499_vm9 = vmpackc.low %vm5424_vm11, %vm5423_vm5  ;;  %vm5742_vm5 = vcmp.eq.s32.totalorder %v9680_v12, %v7225_v34 }
0x113c   :  { %v4928_v40 = vpop.f32.mrb[44].mxu0 }
0x113d   :  { %v4932_v55 = vadd.f32 %v4928_v40, %v4749_v29  ;;  %v8543_v0 = vpop.f32.mrb[45].mxu0  ;;  %v7255_v40 = vld [vmem:[%s12194_s7 + $0x8] sm:$0x1]  ;;  %s9581_s7 = smov [#allocation3]  }
0x113e   :  { %s6397_s14 = sshll.u32 %s9581_s7, 4  ;;  %s6398_s14 = int_to_ptr.vmem [resolvable:$true] %s6397_s14 }
0x113f   :  { %v11996_v53 = vadd.f32 %v4937_v49, %v4932_v55  ;;  %s9552_s15 = scalar_lea.vmem %s6398_s14, 16  ;;  %s9556_s16 = scalar_lea.vmem %s6398_s14, 32 }
0x1140   :  { %p9553_p0 = scmp.ne.s32.totalorder %s6398_s14, %s9552_s15  ;;  %p9557_p1 = scmp.lt.s32.totalorder %s6398_s14, %s6398_s14 }
0x1141   :  { %8553 = vmatmul.mubr.msk.f32.vlgmr.msra.gmra.mrb[46].mxu0 %vm4953_vm12, %v11996_v53  ;;  %p9558_p2 = scmp.lt.s32.totalorder %s9556_s16, %s9552_s15 }
0x1142   :  { %9488 = vmatpush3.bf16.msk.msra.mxu0 %vm9487_vm13, %v12301_v59  ;;  %8563 = vmatprep.mubr.msk.f32.mxu0 %vm9578_vm0, %v12313_v60  ;;  %vm5425_vm13 = vcmp.eq.s32.totalorder %v9718_v20, %v7209_v33 }
0x1143   :  { %9489 = vmatprep.subr.bf16.mxu0 %v9580_v22  ;;  %vm9502_vm15 = vmpackc.low %vm5426_vm14, %vm5425_vm13  ;;  %vm5744_vm13 = vcmp.eq.s32.totalorder %v9727_v21, %v7225_v34  ;;  %p9559_p3 = por %p9558_p2, %p9557_p1 }
0x1145   :  { %p9560_p4 = pnand %p9559_p3, %p9553_p0 }
0x1146   :  { %9491 = vmatpush3.bf16.msk.msra.mxu0 %vm9490_vm1, %v12301_v59  ;;  %vm5582_vm1 = vcmp.eq.s32.totalorder %v9658_v6, %v7217_v18 }
0x1147   :  { %8566 = vmatprep.subr.mxu0 %v12313_v60  ;;  %vm9505_vm3 = vmpackc.low %vm5583_vm2, %vm5582_vm1  ;;  %vm5901_vm1 = vcmp.eq.s32.totalorder %v9680_v12, %v7233_v47 }
0x1149   :  { %8564 = vmatmul.mubr.msk.f32.vlgmr.msra.gmra.mrb[48].mxu0 %vm4953_vm12, %v11996_v53 }
0x114a   :  { %8568 = vmatprep.mubr.msk.f32.mxu0 %vm9578_vm0, %v12313_v60 }
0x1214   :  { %v5023_v44 = vpop.f32.mrb[46].mxu0 }
0x1215   :  { %v8554_v58 = vpop.f32.mrb[47].mxu0 }
0x121c   :  { %v5107_v56 = vpop.f32.mrb[48].mxu0 }
0x121d   :  { %v8565_v63 = vpop.f32.mrb[49].mxu0  ;;  %8567 = vmatpush3.msra.mxu0 %v5107_v56 }
0x121e   :  { %8569 = vmatmul.mubr.msk.f32.vlgmr.msra.gmra.mrb[50].mxu0 %vm3505_vm6, %v7198_v62  ;;  %8571 = vmatprep.subr.mxu0 %v12313_v60 }
0x121f   :  { %8572 = vmatpush3.msra.mxu0 %v5023_v44  ;;  %8573 = vmatprep.mubr.msk.f32.mxu0 %vm9578_vm0, %v12313_v60 }
0x1220   :  { %9492 = vmatprep.subr.bf16.mxu0 %v9580_v22 }
0x1222   :  { %8574 = vmatmul.mubr.msk.f32.vlgmr.msra.gmra.mrb[52].mxu0 %vm3505_vm6, %v5027_v45 }
0x1223   :  { %9494 = vmatpush3.bf16.msk.msra.mxu0 %vm9493_vm4, %v12301_v59  ;;  %8584 = vmatprep.mubr.msk.f32.mxu0 %vm9578_vm0, %v12313_v60  ;;  %vm5584_vm4 = vcmp.eq.s32.totalorder %v9718_v20, %v7217_v18 }
0x1224   :  { %9495 = vmatprep.subr.bf16.mxu0 %v9580_v22  ;;  %vm9508_vm8 = vmpackc.low %vm5585_vm7, %vm5584_vm4  ;;  %vm5903_vm4 = vcmp.eq.s32.totalorder %v9727_v21, %v7233_v47 }
0x1227   :  { %9497 = vmatpush3.bf16.msk.msra.mxu0 %vm9496_vm10, %v12301_v59  ;;  %vm5741_vm10 = vcmp.eq.s32.totalorder %v9658_v6, %v7225_v34 }
0x1228   :  { %8603 = vmatprep.subr.mxu0 %v12313_v60  ;;  %vm9511_vm11 = vmpackc.low %vm5742_vm5, %vm5741_vm10  ;;  %vm6060_vm10 = vcmp.eq.s32.totalorder %v9680_v12, %v7241_v57 }
0x122a   :  { %8585 = vmatmul.mubr.msk.f32.vlgmr.msra.gmra.mrb[54].mxu0 %vm4953_vm12, %v11996_v53 }
0x122b   :  { %8605 = vmatprep.mubr.msk.f32.mxu0 %vm9578_vm0, %v12313_v60 }
0x12f1   :  { %v5182_v3 = vpop.f32.mrb[50].mxu0 }
0x12f2   :  { %v8570_v41 = vpop.f32.mrb[51].mxu0 }
0x12f5   :  { %v5255_v15 = vpop.f32.mrb[52].mxu0 }
0x12f6   :  { %v5256_v17 = vadd.f32 %v5255_v15, %v5182_v3  ;;  %v8575_v32 = vpop.f32.mrb[53].mxu0 }
0x12fd   :  { %v5338_v10 = vpop.f32.mrb[54].mxu0 }
0x12fe   :  { %v8586_v5 = vpop.f32.mrb[55].mxu0  ;;  %8588 = vmatpush3.msra.mxu1 %v5338_v10 }
0x12ff   :  { %8590 = vmatmul.mubr.msk.f32.vlgmr.msra.gmra.mrb[44].mxu1 %vm3505_vm6, %v7207_v16  ;;  %9498 = vmatprep.subr.bf16.mxu1 %v9580_v22 }
0x1300   :  { %9500 = vmatpush3.bf16.msk.msra.mxu1 %vm9499_vm9, %v12301_v59  ;;  %8600 = vmatprep.mubr.msk.f32.mxu1 %vm9578_vm0, %v12313_v60  ;;  %vm5743_vm9 = vcmp.eq.s32.totalorder %v9718_v20, %v7225_v34 }
0x1301   :  { %9501 = vmatprep.subr.bf16.mxu1 %v9580_v22  ;;  %vm9514_vm14 = vmpackc.low %vm5744_vm13, %vm5743_vm9  ;;  %vm6062_vm9 = vcmp.eq.s32.totalorder %v9727_v21, %v7241_v57 }
0x1304   :  { %9503 = vmatpush3.bf16.msk.msra.mxu1 %vm9502_vm15, %v12301_v59  ;;  %vm5900_vm15 = vcmp.eq.s32.totalorder %v9658_v6, %v7233_v47 }
0x1305   :  { %8619 = vmatprep.subr.mxu1 %v12313_v60  ;;  %vm9517_vm2 = vmpackc.low %vm5901_vm1, %vm5900_vm15  ;;  %vm6219_vm15 = vcmp.eq.s32.totalorder %v9680_v12, %v7249_v37  ;;  %v6372_v12 = vld [vmem:[#allocation2] sm:$0x1] }
0x1306   :  { %6375 = vperm.xlu1 %9541, %v6372_v12  }
0x1307   :  { %8601 = vmatmul.mubr.msk.f32.vlgmr.msra.gmra.mrb[46].mxu1 %vm4953_vm12, %v11996_v53 }
0x1308   :  { %8621 = vmatprep.mubr.msk.f32.mxu1 %vm9578_vm0, %v12313_v60 }
0x13d2   :  { %v5413_v11 = vpop.f32.mrb[44].mxu1 }
0x13d3   :  { %v5417_v13 = vadd.f32 %v5413_v11, %v5256_v17  ;;  %v8591_v14 = vpop.f32.mrb[45].mxu1 }
0x13da   :  { %v5497_v23 = vpop.f32.mrb[46].mxu1 }
0x13db   :  { %v8602_v26 = vpop.f32.mrb[47].mxu1  ;;  %8604 = vmatpush3.msra.mxu0 %v5497_v23 }
0x13dc   :  { %8606 = vmatmul.mubr.msk.f32.vlgmr.msra.gmra.mrb[56].mxu0 %vm3505_vm6, %v7215_v19  ;;  %9504 = vmatprep.subr.bf16.mxu0 %v9580_v22 }
0x13dd   :  { %9506 = vmatpush3.bf16.msk.msra.mxu0 %vm9505_vm3, %v12301_v59  ;;  %8616 = vmatprep.mubr.msk.f32.mxu0 %vm9578_vm0, %v12313_v60  ;;  %vm5902_vm3 = vcmp.eq.s32.totalorder %v9718_v20, %v7233_v47 }
0x13de   :  { %9507 = vmatprep.subr.bf16.mxu0 %v9580_v22  ;;  %vm9520_vm7 = vmpackc.low %vm5903_vm4, %vm5902_vm3  ;;  %vm6221_vm3 = vcmp.eq.s32.totalorder %v9727_v21, %v7249_v37 }
0x13e1   :  { %9509 = vmatpush3.bf16.msk.msra.mxu0 %vm9508_vm8, %v12301_v59  ;;  %vm6059_vm8 = vcmp.eq.s32.totalorder %v9658_v6, %v7241_v57 }
0x13e2   :  { %8635 = vmatprep.subr.mxu0 %v12313_v60  ;;  %vm9523_vm5 = vmpackc.low %vm6060_vm10, %vm6059_vm8 }
0x13e4   :  { %8617 = vmatmul.mubr.msk.f32.vlgmr.msra.gmra.mrb[58].mxu0 %vm4953_vm12, %v11996_v53 }
0x13e5   :  { %8637 = vmatprep.mubr.msk.f32.mxu0 %vm9578_vm0, %v12313_v60 }
0x14af   :  { %v5572_v27 = vpop.f32.mrb[56].mxu0 }
0x14b0   :  { %v5576_v30 = vadd.f32 %v5572_v27, %v5417_v13  ;;  %v8607_v31 = vpop.f32.mrb[57].mxu0 }
0x14b7   :  { %v5656_v38 = vpop.f32.mrb[58].mxu0 }
0x14b8   :  { %v8618_v39 = vpop.f32.mrb[59].mxu0  ;;  %8620 = vmatpush3.msra.mxu1 %v5656_v38 }
0x14b9   :  { %8622 = vmatmul.mubr.msk.f32.vlgmr.msra.gmra.mrb[48].mxu1 %vm3505_vm6, %v7223_v35  ;;  %9510 = vmatprep.subr.bf16.mxu1 %v9580_v22 }
0x14ba   :  { %9512 = vmatpush3.bf16.msk.msra.mxu1 %vm9511_vm11, %v12301_v59  ;;  %8632 = vmatprep.mubr.msk.f32.mxu1 %vm9578_vm0, %v12313_v60  ;;  %vm6061_vm11 = vcmp.eq.s32.totalorder %v9718_v20, %v7241_v57 }
0x14bb   :  { %9513 = vmatprep.subr.bf16.mxu1 %v9580_v22  ;;  %vm9526_vm13 = vmpackc.low %vm6062_vm9, %vm6061_vm11 }
0x14be   :  { %9515 = vmatpush3.bf16.msk.msra.mxu1 %vm9514_vm14, %v12301_v59  ;;  %vm6218_vm14 = vcmp.eq.s32.totalorder %v9658_v6, %v7249_v37 }
0x14bf   :  { %8651 = vmatprep.subr.mxu1 %v12313_v60  ;;  %vm9529_vm1 = vmpackc.low %vm6219_vm15, %vm6218_vm14 }
0x14c1   :  { %8633 = vmatmul.mubr.msk.f32.vlgmr.msra.gmra.mrb[50].mxu1 %vm4953_vm12, %v11996_v53 }
0x14c2   :  { %8653 = vmatprep.mubr.msk.f32.mxu1 %vm9578_vm0, %v12313_v60 }
0x158c   :  { %v5731_v42 = vpop.f32.mrb[48].mxu1 }
0x158d   :  { %v5735_v43 = vadd.f32 %v5731_v42, %v5576_v30  ;;  %v8623_v46 = vpop.f32.mrb[49].mxu1 }
0x1594   :  { %v5815_v50 = vpop.f32.mrb[50].mxu1 }
0x1595   :  { %v8634_v51 = vpop.f32.mrb[51].mxu1  ;;  %8636 = vmatpush3.msra.mxu0 %v5815_v50 }
0x1596   :  { %8638 = vmatmul.mubr.msk.f32.vlgmr.msra.gmra.mrb[60].mxu0 %vm3505_vm6, %v7231_v48  ;;  %9516 = vmatprep.subr.bf16.mxu0 %v9580_v22 }
0x1597   :  { %9518 = vmatpush3.bf16.msk.msra.mxu0 %vm9517_vm2, %v12301_v59  ;;  %8648 = vmatprep.mubr.msk.f32.mxu0 %vm9578_vm0, %v12313_v60  ;;  %vm6220_vm2 = vcmp.eq.s32.totalorder %v9718_v20, %v7249_v37 }
0x1598   :  { %9519 = vmatprep.subr.bf16.mxu0 %v9580_v22  ;;  %vm9532_vm4 = vmpackc.low %vm6221_vm3, %vm6220_vm2 }
0x159b   :  { %9521 = vmatpush3.bf16.msk.msra.mxu0 %vm9520_vm7, %v12301_v59 }
0x159c   :  { %8667 = vmatprep.subr.mxu0 %v12313_v60 }
0x159e   :  { %8649 = vmatmul.mubr.msk.f32.vlgmr.msra.gmra.mrb[62].mxu0 %vm4953_vm12, %v11996_v53 }
0x159f   :  { %8669 = vmatprep.mubr.msk.f32.mxu0 %vm9578_vm0, %v12313_v60 }
0x1669   :  { %v5890_v54 = vpop.f32.mrb[60].mxu0 }
0x166a   :  { %v5894_v7 = vadd.f32 %v5890_v54, %v5735_v43  ;;  %v8639_v52 = vpop.f32.mrb[61].mxu0 }
0x1671   :  { %v5974_v2 = vpop.f32.mrb[62].mxu0 }
0x1672   :  { %v8650_v1 = vpop.f32.mrb[63].mxu0  ;;  %8652 = vmatpush3.msra.mxu1 %v5974_v2 }
0x1673   :  { %8654 = vmatmul.mubr.msk.f32.vlgmr.msra.gmra.mrb[52].mxu1 %vm3505_vm6, %v7239_v61  ;;  %9522 = vmatprep.subr.bf16.mxu1 %v9580_v22 }
0x1674   :  { %9524 = vmatpush3.bf16.msk.msra.mxu1 %vm9523_vm5, %v12301_v59  ;;  %8664 = vmatprep.mubr.msk.f32.mxu1 %vm9578_vm0, %v12313_v60 }
0x1675   :  { %9525 = vmatprep.subr.bf16.mxu1 %v9580_v22 }
0x1678   :  { %9527 = vmatpush3.bf16.msk.msra.mxu1 %vm9526_vm13, %v12301_v59 }
0x1679   :  { %8683 = vmatprep.subr.mxu1 %v12313_v60 }
0x167b   :  { %8665 = vmatmul.mubr.msk.f32.vlgmr.msra.gmra.mrb[54].mxu1 %vm4953_vm12, %v11996_v53 }
0x167c   :  { %8685 = vmatprep.mubr.msk.f32.mxu1 %vm9578_vm0, %v12313_v60 }
0x1746   :  { %v6049_v28 = vpop.f32.mrb[52].mxu1 }
0x1747   :  { %v6053_v29 = vadd.f32 %v6049_v28, %v5894_v7  ;;  %v8655_v36 = vpop.f32.mrb[53].mxu1 }
0x174e   :  { %v6133_v9 = vpop.f32.mrb[54].mxu1 }
0x174f   :  { %v8666_v24 = vpop.f32.mrb[55].mxu1  ;;  %8668 = vmatpush3.msra.mxu0 %v6133_v9 }
0x1750   :  { %8670 = vmatmul.mubr.msk.f32.vlgmr.msra.gmra.mrb[64].mxu0 %vm3505_vm6, %v7247_v8  ;;  %9528 = vmatprep.subr.bf16.mxu0 %v9580_v22 }
0x1751   :  { %9530 = vmatpush3.bf16.msk.msra.mxu0 %vm9529_vm1, %v12301_v59  ;;  %8680 = vmatprep.mubr.msk.f32.mxu0 %vm9578_vm0, %v12313_v60  ;;  %v6380_v60 = vsub.s32 0, %v9658_v6  ;;  %vm6389_vm0 = vcmask 253952  }
0x1752   :  { %9531 = vmatprep.subr.bf16.mxu0 %v9580_v22 }
0x1755   :  { %9533 = vmatpush3.bf16.msk.msra.mxu0 %vm9532_vm4, %v12301_v59  ;;  %v6376_v59 = vpop.permute.xlu1 %6375 }
0x1756   :  { %v6381_v22 = vrot.slane %v6376_v59, %v6380_v60 }
0x1758   :  { %8681 = vmatmul.mubr.msk.f32.vlgmr.msra.gmra.mrb[66].mxu0 %vm4953_vm12, %v11996_v53 }
0x1823   :  { %v6208_v20 = vpop.f32.mrb[64].mxu0 }
0x1824   :  { %v6212_v21 = vadd.f32 %v6208_v20, %v6053_v29  ;;  %v8671_v25 = vpop.f32.mrb[65].mxu0 }
0x182b   :  { %v6292_v55 = vpop.f32.mrb[66].mxu0 }
0x182c   :  { %v8682_v0 = vpop.f32.mrb[67].mxu0  ;;  %8684 = vmatpush3.msra.mxu1 %v6292_v55 }
0x182d   :  { %8686 = vmatmul.mubr.msk.f32.vlgmr.msra.gmra.mrb[56].mxu1 %vm3505_vm6, %v7255_v40 }
0x1900   :  { %v6367_v49 = vpop.f32.mrb[56].mxu1 }
0x1901   :  { %v6371_v53 = vadd.f32 %v6367_v49, %v6212_v21  ;;  %v8687_v44 = vpop.f32.mrb[57].mxu1 }
0x1903   :  { %v6382_v58 = vadd.f32 %v6381_v22, %v6371_v53 }
0x1905   :  { %v6383_v4 = vsub.f32 0.0, %v6382_v58 }
0x1907   :  { %v6384_v62 = vmul.f32 1.442695, %v6383_v4 }
0x1909   :  { %9544 = vpow2.f32 %v6384_v62 }
0x1913   :  { %v9545_v56 = vpop.eup %9544 }
0x1914   :  { %v6386_v63 = vadd.f32 1.0, %v9545_v56 }
0x1916   :  { %9546 = vrcp.f32 %v6386_v63 }
0x1920   :  { %v9547_v45 = vpop.eup %9546 }
0x1921   :  { %6390 = vst.msk [vmem:[#allocation3] sm:$0x1] %vm6389_vm0, %v9547_v45 }
0x1922   :  { %9563 = shalt.err (!%p9560_p4)
}
0x1923   :  { %s9564_s17 = scalar_lea.hbm %s12197_s10, 16 }
0x1924   :  { %p9565_p5 = scmp.ne.s32.totalorder %s12197_s10, %s9564_s17  ;;  %p9568_p6 = scmp.lt.u32.totalorder %s9564_s17, %s12197_s10 }
0x1926   :  { %p9570_p7 = pnand %p9568_p6, %p9565_p5 }
0x1928   :  { %9573 = shalt.err (!%p9570_p7)
}
0x1929   :  { %6400 = dma.vmem_to_hbm [thread:$0]  %s6398_s14, 16, %s12197_s10, [#allocation4]  }
0x192a   :  { %9574 = dma.done.wait [#allocation4], 16  }
0x192b   :  { %9575 = vsyncadd [#allocation4], 4294967280 }
0x192c   :  { %6404 = vsyncpa [#allocation4], 1 }

</bundles_post_ra>
